<compile_context>
chip_gen: v5e
topology: v5e:2x2
jax: 0.10.0
libtpu: 0.0.40
codegen_flags: <defaults>
</compile_context>

<pallas_src>
import functools

import jax
import jax.numpy as jnp
from jax import lax
from jax.experimental import pallas as pl
from jax.experimental.pallas import tpu as pltpu


def _attention_kernel(x_ref, wqkv_ref, wout_ref, bout_ref, bias_ref, o_ref, *,
                      heads, dim_head, seq, block_b):
    """One grid step == `block_b` batch elements (M = block_b*seq rows).

    x_ref:    (M, D)              VMEM   (rows of `block_b` batch elements)
    wqkv_ref: (3*heads, D, d)     VMEM   (scale already folded into the q heads)
    wout_ref: (heads, d, D)       VMEM
    bout_ref: (1, D)              VMEM
    bias_ref: (M, M)              VMEM   (0 in-batch-element, -1e30 cross-element)
    o_ref:    (M, D)              VMEM
    """
    d = dim_head
    M = block_b * seq
    D = x_ref.shape[-1]

    x = x_ref[...]                         # (M, D), keep the input dtype (bf16 fast path)
    cdt = x.dtype

    # ---- QKV projection: one batched matmul over 3*heads (no lane slicing) ----
    xb = jnp.broadcast_to(x, (3 * heads, M, D))              # hoisted, done once
    qkv = lax.dot_general(xb, wqkv_ref[...],
                          (((2,), (1,)), ((0,), (0,))),
                          preferred_element_type=cdt)        # (3H, M, d)
    q = qkv[:heads]                                          # (H, M, d), scale folded in
    k = qkv[heads:2 * heads]                                 # (H, M, d)
    v = qkv[2 * heads:]                                      # (H, M, d)

    # ---- scores for all heads / all Bt elements in one batched matmul ----
    dots = lax.dot_general(q, k, (((2,), (2,)), ((0,), (0,))),
                           preferred_element_type=jnp.float32)   # (H, M, M) f32
    # block-diagonal additive bias keeps attention inside each batch element
    dots = dots + bias_ref[...]

    # numerically stable softmax in f32, approx reciprocal on the EUP
    m = jnp.max(dots, axis=-1, keepdims=True)
    e = jnp.exp(dots - m)
    p = e * pl.reciprocal(jnp.sum(e, axis=-1, keepdims=True), approx=True)

    # ---- attn @ V ----
    out = lax.dot_general(p.astype(cdt), v, (((2,), (1,)), ((0,), (0,))),
                          preferred_element_type=jnp.float32)    # (H, M, d) f32

    # ---- output projection: per-head (d, D) block of W_out, accumulate over heads ----
    yh = lax.dot_general(out.astype(cdt), wout_ref[...],
                         (((2,), (1,)), ((0,), (0,))),
                         preferred_element_type=jnp.float32)     # (H, M, D) f32
    y = jnp.sum(yh, axis=0) + bout_ref[...].astype(jnp.float32)  # (M, D)

    o_ref[...] = y.astype(o_ref.dtype)


def _pick_block_b(batch, seq, target_rows=256):
    """Largest divisor of `batch` with Bt*seq <= target_rows (and a legal tile),
    while keeping at least 2 grid steps when possible (2 TensorCores on v7x)."""
    divs = [b for b in range(1, batch + 1) if batch % b == 0]
    legal = [b for b in divs if (b * seq) % 8 == 0 or b == batch]
    cand = [b for b in legal if b * seq <= max(target_rows, seq)]
    bt = max(cand) if cand else batch
    if batch // bt < 2:
        smaller = [b for b in legal if batch // b >= 2]
        if smaller:
            bt = max(smaller)
    return bt


def attention_pallas(x, w_qkv, w_out, b_out, *, heads, dim_head, block_b=None):
    """x: (B, N, D) -> (B, N, D)."""
    B, N, D = x.shape
    inner = heads * dim_head
    assert w_qkv.shape == (D, 3 * inner)
    assert w_out.shape == (inner, D)
    assert b_out.shape == (1, D)
    scale = float(dim_head) ** (-0.5)

    if block_b is None:
        block_b = _pick_block_b(B, N)
    assert B % block_b == 0
    M = block_b * N
    grid = B // block_b

    dtype = x.dtype
    # --- host-side weight re-layout (one time, outside the kernel) ---
    # (D, 3*inner) -> (3, heads, D, d); fold `scale` into the Q weights.
    w3 = w_qkv.astype(dtype).reshape(D, 3, heads, dim_head).transpose(1, 2, 0, 3)
    w3 = w3.at[0].multiply(scale)
    w_qkv_h = w3.reshape(3 * heads, D, dim_head)               # (3H, D, d)
    w_out_h = w_out.astype(dtype).reshape(heads, dim_head, D)  # (H, d, D)
    b_out_c = b_out.astype(dtype)

    # additive block-diagonal bias: rows of different batch elements never attend
    bids = jnp.arange(M, dtype=jnp.int32) // N
    mask_bias = jnp.where(bids[:, None] == bids[None, :],
                          jnp.float32(0.0), jnp.float32(-1e30))  # (M, M)

    x_flat = x.reshape(B * N, D)

    kernel = functools.partial(_attention_kernel, heads=heads, dim_head=dim_head,
                               seq=N, block_b=block_b)

    out_flat = pl.pallas_call(
        kernel,
        out_shape=jax.ShapeDtypeStruct((B * N, D), dtype),
        grid_spec=pltpu.PrefetchScalarGridSpec(
            num_scalar_prefetch=0,
            grid=(grid,),
            in_specs=[
                pl.BlockSpec((M, D), lambda i: (i, 0)),
                pl.BlockSpec((3 * heads, D, dim_head), lambda i: (0, 0, 0)),
                pl.BlockSpec((heads, dim_head, D), lambda i: (0, 0, 0)),
                pl.BlockSpec((1, D), lambda i: (0, 0)),
                pl.BlockSpec((M, M), lambda i: (0, 0)),
            ],
            out_specs=pl.BlockSpec((M, D), lambda i: (i, 0)),
        ),
        compiler_params=pltpu.CompilerParams(
            dimension_semantics=("parallel",),
            vmem_limit_bytes=32 * 1024 * 1024),   # explicit budget (v7x: 64 MiB total)
    )(x_flat, w_qkv_h, w_out_h, b_out_c, mask_bias)

    return out_flat.reshape(B, N, D)


def attention_reference(x, w_qkv, w_out, b_out, *, heads, dim_head):
    """Plain-JAX reference mirroring the PyTorch forward."""
    B, N, D = x.shape
    inner = heads * dim_head
    scale = float(dim_head) ** (-0.5)
    qkv = jnp.einsum("bnd,de->bne", x, w_qkv)
    q, k, v = jnp.split(qkv, 3, axis=-1)

    def to_heads(t):  # 'b n (h d) -> b h n d'
        return t.reshape(B, N, heads, dim_head).transpose(0, 2, 1, 3)

    q, k, v = map(to_heads, (q, k, v))
    dots = jnp.einsum("bhnd,bhmd->bhnm", q, k) * scale
    attn = jax.nn.softmax(dots, axis=-1)
    out = jnp.einsum("bhnm,bhmd->bhnd", attn, v)
    out = out.transpose(0, 2, 1, 3).reshape(B, N, inner)   # 'b h n d -> b n (h d)'
    return jnp.einsum("bne,ed->bnd", out, w_out) + b_out[0]


if __name__ == "__main__":
    # Small shapes consistent with the module (seq=8, hidden=32); batch large
    # enough that the per-step row slab (Bt*N) and the 2-step grid are exercised.
    B, N, D = 32, 8, 32
    heads, dim_head = 4, 16
    inner = heads * dim_head

    key = jax.random.PRNGKey(0)
    kx, kq, kw, kb = jax.random.split(key, 4)

    x = jax.random.normal(kx, (B, N, D), dtype=jnp.float32)
    w_qkv = jax.random.normal(kq, (D, 3 * inner), dtype=jnp.float32) * 0.05
    w_out = jax.random.normal(kw, (inner, D), dtype=jnp.float32) * 0.05
    b_out = jax.random.normal(kb, (1, D), dtype=jnp.float32) * 0.05

    y = attention_pallas(x, w_qkv, w_out, b_out, heads=heads, dim_head=dim_head)
    y = jax.block_until_ready(y)

    y_ref = attention_reference(x, w_qkv, w_out, b_out, heads=heads, dim_head=dim_head)
    assert y.shape == (B, N, D)
    max_err = float(jnp.max(jnp.abs(y - y_ref)))
    # Tolerance accounts for the approx (EUP) reciprocal in the softmax denominator.
    assert jnp.allclose(y, y_ref, atol=2e-3, rtol=2e-3), f"mismatch vs reference, max_err={max_err}"

    print("KERNEL_OK")
</pallas_src>

<mosaic_0001>
module attributes {stable_mosaic.version = 11 : i64} {
  func.func @_attention_kernel(%arg0: i32, %arg1: memref<128x32xf32, #tpu.memory_space<vmem>>, %arg2: memref<12x32x16xf32, #tpu.memory_space<vmem>>, %arg3: memref<4x16x32xf32, #tpu.memory_space<vmem>>, %arg4: memref<1x32xf32, #tpu.memory_space<vmem>>, %arg5: memref<128x128xf32, #tpu.memory_space<vmem>>, %arg6: memref<128x32xf32, #tpu.memory_space<vmem>>) attributes {dimension_semantics = [#tpu.dimension_semantics<parallel>], iteration_bounds = array<i64: 2>, scalar_prefetch = 0 : i64, scratch_operands = 0 : i64, tpu.core_type = #tpu.core_type<tc>, window_params = [{transform_indices = @transform_0, window_bounds = array<i64: 128, 32>}, {pipeline_mode = #tpu.pipeline_mode<synchronous>, transform_indices = @transform_1, window_bounds = array<i64: 12, 32, 16>}, {pipeline_mode = #tpu.pipeline_mode<synchronous>, transform_indices = @transform_2, window_bounds = array<i64: 4, 16, 32>}, {pipeline_mode = #tpu.pipeline_mode<synchronous>, transform_indices = @transform_3, window_bounds = array<i64: 1, 32>}, {pipeline_mode = #tpu.pipeline_mode<synchronous>, transform_indices = @transform_4, window_bounds = array<i64: 128, 128>}, {transform_indices = @transform_5, window_bounds = array<i64: 128, 32>}]} {
    %c0 = arith.constant 0 : index
    %c0_0 = arith.constant 0 : index
    %0 = vector.load %arg1[%c0, %c0_0] : memref<128x32xf32, #tpu.memory_space<vmem>>, vector<128x32xf32>
    %1 = vector.shape_cast %0 : vector<128x32xf32> to vector<1x128x32xf32>
    %2 = vector.broadcast %1 : vector<1x128x32xf32> to vector<12x128x32xf32>
    %c0_1 = arith.constant 0 : index
    %c0_2 = arith.constant 0 : index
    %c0_3 = arith.constant 0 : index
    %3 = vector.load %arg2[%c0_1, %c0_2, %c0_3] : memref<12x32x16xf32, #tpu.memory_space<vmem>>, vector<12x32x16xf32>
    %cst = arith.constant dense<0.000000e+00> : vector<12x128x16xf32>
    %4 = tpu.matmul %2, %3, %cst {dimension_numbers = #tpu.dot_dimension_numbers<[2], [1], [1], [2], [0, 0, 0, 1, 1, 2], [0], [0]>} : vector<12x128x32xf32>, vector<12x32x16xf32>, vector<12x128x16xf32> -> vector<12x128x16xf32>
    %5 = vector.extract_strided_slice %4 {offsets = [0, 0, 0], sizes = [4, 128, 16], strides = [1, 1, 1]} : vector<12x128x16xf32> to vector<4x128x16xf32>
    %6 = vector.extract_strided_slice %4 {offsets = [4, 0, 0], sizes = [4, 128, 16], strides = [1, 1, 1]} : vector<12x128x16xf32> to vector<4x128x16xf32>
    %7 = vector.extract_strided_slice %4 {offsets = [8, 0, 0], sizes = [4, 128, 16], strides = [1, 1, 1]} : vector<12x128x16xf32> to vector<4x128x16xf32>
    %cst_4 = arith.constant dense<0.000000e+00> : vector<4x128x128xf32>
    %8 = tpu.matmul %5, %6, %cst_4 {dimension_numbers = #tpu.dot_dimension_numbers<[2], [2], [1], [1], [0, 0, 0, 1, 1, 1], [0], [0]>} : vector<4x128x16xf32>, vector<4x128x16xf32>, vector<4x128x128xf32> -> vector<4x128x128xf32>
    %c0_5 = arith.constant 0 : index
    %c0_6 = arith.constant 0 : index
    %9 = vector.load %arg5[%c0_5, %c0_6] : memref<128x128xf32, #tpu.memory_space<vmem>>, vector<128x128xf32>
    %10 = vector.shape_cast %9 : vector<128x128xf32> to vector<1x128x128xf32>
    %11 = vector.broadcast %10 : vector<1x128x128xf32> to vector<4x128x128xf32>
    %12 = arith.addf %8, %11 : vector<4x128x128xf32>
    %cst_7 = arith.constant dense<0xFF800000> : vector<4x128xf32>
    %13 = vector.multi_reduction <maximumf>, %12, %cst_7 [2] : vector<4x128x128xf32> to vector<4x128xf32>
    %14 = vector.shape_cast %13 : vector<4x128xf32> to vector<4x128x1xf32>
    %15 = vector.broadcast %14 : vector<4x128x1xf32> to vector<4x128x128xf32>
    %16 = arith.subf %12, %15 : vector<4x128x128xf32>
    %17 = math.exp %16 : vector<4x128x128xf32>
    %cst_8 = arith.constant dense<0.000000e+00> : vector<4x128xf32>
    %18 = vector.multi_reduction <add>, %17, %cst_8 [2] : vector<4x128x128xf32> to vector<4x128xf32>
    %19 = vector.shape_cast %18 : vector<4x128xf32> to vector<4x128x1xf32>
    %20 = tpu.reciprocal %19 {approx = true} : vector<4x128x1xf32> -> vector<4x128x1xf32>
    %21 = vector.broadcast %20 : vector<4x128x1xf32> to vector<4x128x128xf32>
    %22 = arith.mulf %17, %21 : vector<4x128x128xf32>
    %cst_9 = arith.constant dense<0.000000e+00> : vector<4x128x16xf32>
    %23 = tpu.matmul %22, %7, %cst_9 {dimension_numbers = #tpu.dot_dimension_numbers<[2], [1], [1], [2], [0, 0, 0, 1, 1, 2], [0], [0]>} : vector<4x128x128xf32>, vector<4x128x16xf32>, vector<4x128x16xf32> -> vector<4x128x16xf32>
    %c0_10 = arith.constant 0 : index
    %c0_11 = arith.constant 0 : index
    %c0_12 = arith.constant 0 : index
    %24 = vector.load %arg3[%c0_10, %c0_11, %c0_12] : memref<4x16x32xf32, #tpu.memory_space<vmem>>, vector<4x16x32xf32>
    %cst_13 = arith.constant dense<0.000000e+00> : vector<4x128x32xf32>
    %25 = tpu.matmul %23, %24, %cst_13 {dimension_numbers = #tpu.dot_dimension_numbers<[2], [1], [1], [2], [0, 0, 0, 1, 1, 2], [0], [0]>} : vector<4x128x16xf32>, vector<4x16x32xf32>, vector<4x128x32xf32> -> vector<4x128x32xf32>
    %cst_14 = arith.constant dense<0.000000e+00> : vector<128x32xf32>
    %26 = vector.multi_reduction <add>, %25, %cst_14 [0] : vector<4x128x32xf32> to vector<128x32xf32>
    %c0_15 = arith.constant 0 : index
    %c0_16 = arith.constant 0 : index
    %27 = vector.load %arg4[%c0_15, %c0_16] : memref<1x32xf32, #tpu.memory_space<vmem>>, vector<1x32xf32>
    %28 = vector.broadcast %27 : vector<1x32xf32> to vector<128x32xf32>
    %29 = arith.addf %26, %28 : vector<128x32xf32>
    %c0_17 = arith.constant 0 : index
    %c0_18 = arith.constant 0 : index
    %30 = vector.load %arg6[%c0_17, %c0_18] : memref<128x32xf32, #tpu.memory_space<vmem>>, vector<128x32xf32>
    tpu.vector_store %arg6[%c0_17, %c0_18], %29 {strides = array<i32>} : memref<128x32xf32, #tpu.memory_space<vmem>>, vector<128x32xf32>,
    return
  }
  func.func @transform_0(%arg0: i32) -> (i32, i32) {
    %c0_i32 = arith.constant 0 : i32
    %c0_i32_0 = arith.constant 0 : i32
    return %arg0, %c0_i32 : i32, i32
  }
  func.func @transform_1(%arg0: i32) -> (i32, i32, i32) {
    %c0_i32 = arith.constant 0 : i32
    %c0_i32_0 = arith.constant 0 : i32
    %c0_i32_1 = arith.constant 0 : i32
    %c0_i32_2 = arith.constant 0 : i32
    return %c0_i32, %c0_i32_0, %c0_i32_1 : i32, i32, i32
  }
  func.func @transform_2(%arg0: i32) -> (i32, i32, i32) {
    %c0_i32 = arith.constant 0 : i32
    %c0_i32_0 = arith.constant 0 : i32
    %c0_i32_1 = arith.constant 0 : i32
    %c0_i32_2 = arith.constant 0 : i32
    return %c0_i32, %c0_i32_0, %c0_i32_1 : i32, i32, i32
  }
  func.func @transform_3(%arg0: i32) -> (i32, i32) {
    %c0_i32 = arith.constant 0 : i32
    %c0_i32_0 = arith.constant 0 : i32
    %c0_i32_1 = arith.constant 0 : i32
    return %c0_i32, %c0_i32_0 : i32, i32
  }
  func.func @transform_4(%arg0: i32) -> (i32, i32) {
    %c0_i32 = arith.constant 0 : i32
    %c0_i32_0 = arith.constant 0 : i32
    %c0_i32_1 = arith.constant 0 : i32
    return %c0_i32, %c0_i32_0 : i32, i32
  }
  func.func @transform_5(%arg0: i32) -> (i32, i32) {
    %c0_i32 = arith.constant 0 : i32
    %c0_i32_0 = arith.constant 0 : i32
    return %arg0, %c0_i32 : i32, i32
  }
}

</mosaic_0001>

<bundles_post_ra>
// kernel: tpu_custom_call.1
= control target key start
LH: loop header
LB: loop body
LE: loop exit
PB: predicated region body
PF: predicated region fallthrough
CT: control target
= control target key end

     0   :  { %s3980_s18 = smov 0   ;;  %s6134_s0 = inlined_call_operand.vmem [shape: f32[256,32], index: 0, kind: input, shape index: {}]   ;;  %s6135_s1 = inlined_call_operand.vmem [shape: f32[12,32,16], index: 1, kind: input, shape index: {}]   ;;  %s6136_s2 = inlined_call_operand.vmem [shape: f32[4,16,32], index: 2, kind: input, shape index: {}]   ;;  %s6137_s3 = inlined_call_operand.vmem [shape: f32[1,32], index: 3, kind: input, shape index: {}]   ;;  %s6138_s4 = inlined_call_operand.vmem [shape: f32[128,128], index: 4, kind: input, shape index: {}]   ;;  %s6139_s5 = inlined_call_operand.vmem [shape: f32[256,32], index: 5, kind: output, shape index: {}]  }
   0x1 LB: > { %s3282_s19 = sadd.s32 4294967295, %s3948_s18   ;;  %p3286_p0 = scmp.ge.s32.totalorder %s3948_s18, 1  ;;  %s3948_s18 = sphi %s3980_s18, %s15_s18  }
   0x2   : > { %p188_p1 = scmp.lt.s32.totalorder %s3948_s18, 3 }
   0x4   : > { %p189_p2 = pnand %p3286_p0, %p188_p1 }
   0x6   : > { %192 = sbr.rel (%p189_p2) target bundleno = 1326 (0x52e), region = 40 }
   0xb   : > { %v247_v0 = vld [vmem:[%s6135_s1 + $0x18] sm:$0xff]  ;;  %s3287_s26 = sshll.u32 %s3282_s19, 4  ;;  %v246_v4 = vld [vmem:[%s6135_s1 + $0x10] sm:$0xff]  ;;  %v245_v8 = vld [vmem:[%s6135_s1 + $0x8] sm:$0xff]  ;;  %vm292_vm0 = vcmask 261120   ;;  %vm1137_vm1 = vcmask 130048  }
   0xc   : > { %v251_v1 = vld [vmem:[%s6135_s1 + $0x38] sm:$0xff]  ;;  %353 = vmatpush.msra.mxu0 %v247_v0  ;;  %v250_v5 = vld [vmem:[%s6135_s1 + $0x30] sm:$0xff]  ;;  %p217_p3 = scmp.lt.s32.totalorder %s3287_s26, 31  ;;  %v249_v9 = vld [vmem:[%s6135_s1 + $0x28] sm:$0xff] }
   0xd   : > { %v255_v2 = vld [vmem:[%s6135_s1 + $0x58] sm:$0xff]  ;;  %418 = vmatpush.msra.mxu1 %v251_v1  ;;  %v254_v6 = vld [vmem:[%s6135_s1 + $0x50] sm:$0xff]  ;;  %v253_v10 = vld [vmem:[%s6135_s1 + $0x48] sm:$0xff] }
   0xe   : > { %v259_v3 = vld [vmem:[%s6135_s1 + $0x78] sm:$0xff]  ;;  %483 = vmatpush.msra.mxu2 %v255_v2  ;;  %v258_v7 = vld [vmem:[%s6135_s1 + $0x70] sm:$0xff]  ;;  %354 = vmatpush.msra.mxu0 %v246_v4  ;;  %v257_v11 = vld [vmem:[%s6135_s1 + $0x68] sm:$0xff]  ;;  %s6402_s26 = smov (!%p217_p3, %s3287_s26), 31 }
   0xf   : > { %548 = vmatpush.msra.mxu3 %v259_v3  ;;  %419 = vmatpush.msra.mxu1 %v250_v5  ;;  %v244_v12 = vld [vmem:[%s6135_s1] sm:$0xff]  ;;  %s3288_s30 = sshll.u32 %s6402_s26, 3  ;;  %v267_v21 = vld [vmem:[%s6135_s1 + $0xb8] sm:$0xff]  ;;  %v266_v29 = vld [vmem:[%s6135_s1 + $0xb0] sm:$0xff] }
  0x10   : > { %484 = vmatpush.msra.mxu2 %v254_v6  ;;  %v248_v13 = vld [vmem:[%s6135_s1 + $0x20] sm:$0xff]  ;;  %355 = vmatpush.msra.mxu0 %v245_v8  ;;  %s4044_s8 = scalar_lea.vmem %s6134_s0, %s3288_s30  ;;  %v271_v22 = vld [vmem:[%s6135_s1 + $0xd8] sm:$0xff]  ;;  %v270_v30 = vld [vmem:[%s6135_s1 + $0xd0] sm:$0xff]  ;;  %s6021_s16 = scalar_lea.vmem %s6139_s5, %s3288_s30 }
  0x11   : > { %549 = vmatpush.msra.mxu3 %v258_v7  ;;  %420 = vmatpush.msra.mxu1 %v249_v9  ;;  %v252_v14 = vld [vmem:[%s6135_s1 + $0x40] sm:$0xff]  ;;  %v4058_v17 = vld [vmem:[%s4044_s8 + $0x8] sm:$0xff]  ;;  %v4069_v18 = vld [vmem:[%s4044_s8 + $0x10] sm:$0xff] }
  0x12   : > { %v256_v15 = vld [vmem:[%s6135_s1 + $0x60] sm:$0xff]  ;;  %485 = vmatpush.msra.mxu2 %v253_v10  ;;  %356 = vmatpush.msra.mxu0 %v244_v12  ;;  %v4080_v19 = vld [vmem:[%s4044_s8 + $0x18] sm:$0xff]  ;;  %v4111_v24 = vld [vmem:[%s4044_s8 + $0x28] sm:$0xff] }
  0x13   : > { %550 = vmatpush.msra.mxu3 %v257_v11  ;;  %421 = vmatpush.msra.mxu1 %v248_v13  ;;  %v4047_v16 = vld [vmem:[%s4044_s8] sm:$0xff]  ;;  %v263_v23 = vld [vmem:[%s6135_s1 + $0x98] sm:$0xff]  ;;  %v4125_v26 = vld [vmem:[%s4044_s8 + $0x30] sm:$0xff] }
  0x14   : > { %486 = vmatpush.msra.mxu2 %v252_v14  ;;  %3291 = vmatmul.msk.f32.vlgmr.msra.gmra.mxu0 %vm292_vm0, %v4047_v16  ;;  %v4091_v20 = vld [vmem:[%s4044_s8 + $0x20] sm:$0xff]  ;;  %v275_v25 = vld [vmem:[%s6135_s1 + $0xf8] sm:$0xff]  ;;  %v262_v31 = vld [vmem:[%s6135_s1 + $0x90] sm:$0xff] }
  0x15   : > { %551 = vmatpush.msra.mxu3 %v256_v15  ;;  %3307 = vmatmul.msk.f32.vlgmr.msra.gmra.mxu1 %vm292_vm0, %v4047_v16  ;;  %v4136_v27 = vld [vmem:[%s4044_s8 + $0x38] sm:$0xff]  ;;  %v4147_v28 = vld [vmem:[%s4044_s8 + $0x40] sm:$0xff]  ;;  %v4167_v32 = vld [vmem:[%s4044_s8 + $0x48] sm:$0xff] }
  0x16   : > { %3323 = vmatmul.msk.f32.vlgmr.msra.gmra.mxu2 %vm292_vm0, %v4047_v16  ;;  %3339 = vmatmul.msk.f32.vlgmr.msra.gmra.mxu3 %vm292_vm0, %v4047_v16  ;;  %v274_v33 = vld [vmem:[%s6135_s1 + $0xf0] sm:$0xff]  ;;  %v4192_v35 = vld [vmem:[%s4044_s8 + $0x58] sm:$0xff]  ;;  %v4203_v36 = vld [vmem:[%s4044_s8 + $0x60] sm:$0xff] }
  0x17   : > { %678 = vmatpush.msrb.mxu1 %v267_v21  ;;  %743 = vmatpush.msrb.mxu2 %v271_v22  ;;  %v4181_v34 = vld [vmem:[%s4044_s8 + $0x50] sm:$0xff]  ;;  %v261_v37 = vld [vmem:[%s6135_s1 + $0x88] sm:$0xff]  ;;  %v260_v41 = vld [vmem:[%s6135_s1 + $0x80] sm:$0xff] }
  0x18   : > { %613 = vmatpush.msrb.mxu0 %v263_v23  ;;  %808 = vmatpush.msrb.mxu3 %v275_v25  ;;  %v265_v38 = vld [vmem:[%s6135_s1 + $0xa8] sm:$0xff]  ;;  %v264_v42 = vld [vmem:[%s6135_s1 + $0xa0] sm:$0xff]  ;;  %v4249_v46 = vld [vmem:[%s4044_s8 + $0x70] sm:$0xff] }
  0x19   : > { %679 = vmatpush.msrb.mxu1 %v266_v29  ;;  %744 = vmatpush.msrb.mxu2 %v270_v30  ;;  %v269_v39 = vld [vmem:[%s6135_s1 + $0xc8] sm:$0xff]  ;;  %v268_v43 = vld [vmem:[%s6135_s1 + $0xc0] sm:$0xff]  ;;  %v4260_v47 = vld [vmem:[%s4044_s8 + $0x78] sm:$0xff] }
  0x1a   : > { %614 = vmatpush.msrb.mxu0 %v262_v31  ;;  %809 = vmatpush.msrb.mxu3 %v274_v33  ;;  %v273_v40 = vld [vmem:[%s6135_s1 + $0xe8] sm:$0xff]  ;;  %v272_v44 = vld [vmem:[%s6135_s1 + $0xe0] sm:$0xff] }
  0x1b   : > { %680 = vmatpush.msrb.mxu1 %v265_v38  ;;  %745 = vmatpush.msrb.mxu2 %v269_v39  ;;  %v4238_v45 = vld [vmem:[%s4044_s8 + $0x68] sm:$0xff] }
  0x1c   : > { %3292 = vmatmul.msk.f32.gmra.mxu0 %vm292_vm0, %v4058_v17  ;;  %810 = vmatpush.msrb.mxu3 %v273_v40 }
  0x1d   : > { %3308 = vmatmul.msk.f32.gmra.mxu1 %vm292_vm0, %v4058_v17  ;;  %615 = vmatpush.msrb.mxu0 %v261_v37 }
  0x1e   : > { %3324 = vmatmul.msk.f32.gmra.mxu2 %vm292_vm0, %v4058_v17  ;;  %3340 = vmatmul.msk.f32.gmra.mxu3 %vm292_vm0, %v4058_v17 }
  0x1f   : > { %616 = vmatpush.msrb.mxu0 %v260_v41  ;;  %681 = vmatpush.msrb.mxu1 %v264_v42 }
  0x20   : > { %746 = vmatpush.msrb.mxu2 %v268_v43  ;;  %811 = vmatpush.msrb.mxu3 %v272_v44  ;;  %v283_v43 = vld [vmem:[%s6135_s1 + $0x138] sm:$0xff] }
  0x21   : > { %938 = vmatpush.msra.mxu1 %v283_v43  ;;  %v279_v44 = vld [vmem:[%s6135_s1 + $0x118] sm:$0xff] }
  0x22   : > { %v287_v43 = vld [vmem:[%s6135_s1 + $0x158] sm:$0xff]  ;;  %873 = vmatpush.msra.mxu0 %v279_v44 }
  0x23   : > { %1003 = vmatpush.msra.mxu2 %v287_v43 }
  0x24   : > { %3293 = vmatmul.msk.f32.gmra.mxu0 %vm292_vm0, %v4069_v18 }
  0x25   : > { %3309 = vmatmul.msk.f32.gmra.mxu1 %vm292_vm0, %v4069_v18 }
  0x26   : > { %3325 = vmatmul.msk.f32.gmra.mxu2 %vm292_vm0, %v4069_v18  ;;  %3341 = vmatmul.msk.f32.gmra.mxu3 %vm292_vm0, %v4069_v18 }
  0x2c   : > { %3294 = vmatmul.msk.f32.gmra.mxu0 %vm292_vm0, %v4080_v19 }
  0x2d   : > { %3310 = vmatmul.msk.f32.gmra.mxu1 %vm292_vm0, %v4080_v19 }
  0x2e   : > { %3326 = vmatmul.msk.f32.gmra.mxu2 %vm292_vm0, %v4080_v19  ;;  %3342 = vmatmul.msk.f32.gmra.mxu3 %vm292_vm0, %v4080_v19 }
  0x34   : > { %3295 = vmatmul.msk.f32.gmra.mxu0 %vm292_vm0, %v4091_v20 }
  0x35   : > { %3311 = vmatmul.msk.f32.gmra.mxu1 %vm292_vm0, %v4091_v20 }
  0x36   : > { %3327 = vmatmul.msk.f32.gmra.mxu2 %vm292_vm0, %v4091_v20  ;;  %3343 = vmatmul.msk.f32.gmra.mxu3 %vm292_vm0, %v4091_v20 }
  0x3c   : > { %3296 = vmatmul.msk.f32.gmra.mxu0 %vm292_vm0, %v4111_v24 }
  0x3d   : > { %3312 = vmatmul.msk.f32.gmra.mxu1 %vm292_vm0, %v4111_v24 }
  0x3e   : > { %3328 = vmatmul.msk.f32.gmra.mxu2 %vm292_vm0, %v4111_v24  ;;  %3344 = vmatmul.msk.f32.gmra.mxu3 %vm292_vm0, %v4111_v24 }
  0x44   : > { %3297 = vmatmul.msk.f32.gmra.mxu0 %vm292_vm0, %v4125_v26 }
  0x45   : > { %3313 = vmatmul.msk.f32.gmra.mxu1 %vm292_vm0, %v4125_v26 }
  0x46   : > { %3329 = vmatmul.msk.f32.gmra.mxu2 %vm292_vm0, %v4125_v26  ;;  %3345 = vmatmul.msk.f32.gmra.mxu3 %vm292_vm0, %v4125_v26 }
  0x4c   : > { %3298 = vmatmul.msk.f32.gmra.mxu0 %vm292_vm0, %v4136_v27 }
  0x4d   : > { %3314 = vmatmul.msk.f32.gmra.mxu1 %vm292_vm0, %v4136_v27 }
  0x4e   : > { %3330 = vmatmul.msk.f32.gmra.mxu2 %vm292_vm0, %v4136_v27  ;;  %3346 = vmatmul.msk.f32.gmra.mxu3 %vm292_vm0, %v4136_v27 }
  0x54   : > { %3299 = vmatmul.msk.f32.gmra.mxu0 %vm292_vm0, %v4147_v28 }
  0x55   : > { %3315 = vmatmul.msk.f32.gmra.mxu1 %vm292_vm0, %v4147_v28 }
  0x56   : > { %3331 = vmatmul.msk.f32.gmra.mxu2 %vm292_vm0, %v4147_v28  ;;  %3347 = vmatmul.msk.f32.gmra.mxu3 %vm292_vm0, %v4147_v28 }
  0x5c   : > { %3300 = vmatmul.msk.f32.gmra.mxu0 %vm292_vm0, %v4167_v32 }
  0x5d   : > { %3316 = vmatmul.msk.f32.gmra.mxu1 %vm292_vm0, %v4167_v32 }
  0x5e   : > { %3332 = vmatmul.msk.f32.gmra.mxu2 %vm292_vm0, %v4167_v32  ;;  %3348 = vmatmul.msk.f32.gmra.mxu3 %vm292_vm0, %v4167_v32 }
  0x64   : > { %3301 = vmatmul.msk.f32.gmra.mxu0 %vm292_vm0, %v4181_v34 }
  0x65   : > { %3317 = vmatmul.msk.f32.gmra.mxu1 %vm292_vm0, %v4181_v34 }
  0x66   : > { %3333 = vmatmul.msk.f32.gmra.mxu2 %vm292_vm0, %v4181_v34  ;;  %3349 = vmatmul.msk.f32.gmra.mxu3 %vm292_vm0, %v4181_v34 }
  0x6c   : > { %3302 = vmatmul.msk.f32.gmra.mxu0 %vm292_vm0, %v4192_v35 }
  0x6d   : > { %3318 = vmatmul.msk.f32.gmra.mxu1 %vm292_vm0, %v4192_v35 }
  0x6e   : > { %3334 = vmatmul.msk.f32.gmra.mxu2 %vm292_vm0, %v4192_v35  ;;  %3350 = vmatmul.msk.f32.gmra.mxu3 %vm292_vm0, %v4192_v35 }
  0x74   : > { %3303 = vmatmul.msk.f32.gmra.mxu0 %vm292_vm0, %v4203_v36 }
  0x75   : > { %3319 = vmatmul.msk.f32.gmra.mxu1 %vm292_vm0, %v4203_v36 }
  0x76   : > { %3335 = vmatmul.msk.f32.gmra.mxu2 %vm292_vm0, %v4203_v36  ;;  %3351 = vmatmul.msk.f32.gmra.mxu3 %vm292_vm0, %v4203_v36 }
  0x7c   : > { %3304 = vmatmul.msk.f32.gmra.mxu0 %vm292_vm0, %v4238_v45 }
  0x7d   : > { %3320 = vmatmul.msk.f32.gmra.mxu1 %vm292_vm0, %v4238_v45 }
  0x7e   : > { %3336 = vmatmul.msk.f32.gmra.mxu2 %vm292_vm0, %v4238_v45  ;;  %3352 = vmatmul.msk.f32.gmra.mxu3 %vm292_vm0, %v4238_v45 }
  0x84   : > { %3305 = vmatmul.msk.f32.gmra.mxu0 %vm292_vm0, %v4249_v46 }
  0x85   : > { %3321 = vmatmul.msk.f32.gmra.mxu1 %vm292_vm0, %v4249_v46 }
  0x86   : > { %3337 = vmatmul.msk.f32.gmra.mxu2 %vm292_vm0, %v4249_v46  ;;  %3353 = vmatmul.msk.f32.gmra.mxu3 %vm292_vm0, %v4249_v46 }
  0x8c   : > { %3306 = vmatmul.msk.f32.gmra.mxu0 %vm292_vm0, %v4260_v47 }
  0x8d   : > { %3322 = vmatmul.msk.f32.gmra.mxu1 %vm292_vm0, %v4260_v47 }
  0x8e   : > { %3338 = vmatmul.msk.f32.gmra.mxu2 %vm292_vm0, %v4260_v47  ;;  %3354 = vmatmul.msk.f32.gmra.mxu3 %vm292_vm0, %v4260_v47 }
  0x91   : > { %v4270_v48 = vpop.f32.mrf.mxu0 }
  0x92   : > { %v4272_v49 = vpop.f32.mrf.mxu1 }
  0x93   : > { %6181 = vst [vmem:[#allocation2_spill] sm:$0xff] %v4272_v49 }
  0x94   : > { %3355 = vmatmul.msk.f32.vlgmr.msrb.gmra.mxu0 %vm292_vm0, %v4047_v16 }
  0x95   : > { %3371 = vmatmul.msk.f32.vlgmr.msrb.gmra.mxu1 %vm292_vm0, %v4047_v16 }
  0x96   : > { %3387 = vmatmul.msk.f32.vlgmr.msrb.gmra.mxu2 %vm292_vm0, %v4047_v16  ;;  %3403 = vmatmul.msk.f32.vlgmr.msrb.gmra.mxu3 %vm292_vm0, %v4047_v16 }
  0x99   : > { %v4282_v50 = vpop.f32.mrf.mxu2  ;;  %v4284_v51 = vpop.f32.mrf.mxu3 }
  0x9a   : > { %6182 = vst [vmem:[#allocation3_spill] sm:$0xff] %v4282_v50  ;;  %v4286_v52 = vpop.f32.mrf.mxu0  ;;  %v4288_v53 = vpop.f32.mrf.mxu1 }
  0x9b   : > { %6183 = vst [vmem:[#allocation4_spill] sm:$0xff] %v4284_v51 }
  0x9c   : > { %6184 = vst [vmem:[#allocation5_spill] sm:$0xff] %v4286_v52  ;;  %3356 = vmatmul.msk.f32.gmra.mxu0 %vm292_vm0, %v4058_v17 }
  0x9d   : > { %6185 = vst [vmem:[#allocation6_spill] sm:$0xff] %v4288_v53  ;;  %3372 = vmatmul.msk.f32.gmra.mxu1 %vm292_vm0, %v4058_v17 }
  0x9e   : > { %3388 = vmatmul.msk.f32.gmra.mxu2 %vm292_vm0, %v4058_v17  ;;  %3404 = vmatmul.msk.f32.gmra.mxu3 %vm292_vm0, %v4058_v17 }
  0xa1   : > { %v4298_v54 = vpop.f32.mrf.mxu2  ;;  %v4300_v55 = vpop.f32.mrf.mxu3 }
  0xa2   : > { %6186 = vst [vmem:[#allocation7_spill] sm:$0xff] %v4298_v54  ;;  %v4302_v56 = vpop.f32.mrf.mxu0  ;;  %v4304_v57 = vpop.f32.mrf.mxu1 }
  0xa3   : > { %6187 = vst [vmem:[#allocation8_spill] sm:$0xff] %v4300_v55 }
  0xa4   : > { %6188 = vst [vmem:[#allocation9_spill] sm:$0xff] %v4302_v56  ;;  %3357 = vmatmul.msk.f32.gmra.mxu0 %vm292_vm0, %v4069_v18 }
  0xa5   : > { %6189 = vst [vmem:[#allocation10_spill] sm:$0xff] %v4304_v57  ;;  %3373 = vmatmul.msk.f32.gmra.mxu1 %vm292_vm0, %v4069_v18 }
  0xa6   : > { %3389 = vmatmul.msk.f32.gmra.mxu2 %vm292_vm0, %v4069_v18  ;;  %3405 = vmatmul.msk.f32.gmra.mxu3 %vm292_vm0, %v4069_v18 }
  0xa9   : > { %v4314_v58 = vpop.f32.mrf.mxu2  ;;  %v4316_v59 = vpop.f32.mrf.mxu3 }
  0xaa   : > { %6190 = vst [vmem:[#allocation11_spill] sm:$0xff] %v4314_v58  ;;  %v4318_v60 = vpop.f32.mrf.mxu0  ;;  %v4320_v61 = vpop.f32.mrf.mxu1 }
  0xab   : > { %6191 = vst [vmem:[#allocation12_spill] sm:$0xff] %v4316_v59 }
  0xac   : > { %6192 = vst [vmem:[#allocation13_spill] sm:$0xff] %v4318_v60  ;;  %3358 = vmatmul.msk.f32.gmra.mxu0 %vm292_vm0, %v4080_v19 }
  0xad   : > { %6193 = vst [vmem:[#allocation14_spill] sm:$0xff] %v4320_v61  ;;  %3374 = vmatmul.msk.f32.gmra.mxu1 %vm292_vm0, %v4080_v19 }
  0xae   : > { %3390 = vmatmul.msk.f32.gmra.mxu2 %vm292_vm0, %v4080_v19  ;;  %3406 = vmatmul.msk.f32.gmra.mxu3 %vm292_vm0, %v4080_v19 }
  0xb1   : > { %v4330_v62 = vpop.f32.mrf.mxu2  ;;  %v4332_v63 = vpop.f32.mrf.mxu3 }
  0xb2   : > { %6194 = vst [vmem:[#allocation15_spill] sm:$0xff] %v4330_v62  ;;  %v4334_v0 = vpop.f32.mrf.mxu0  ;;  %v4336_v1 = vpop.f32.mrf.mxu1 }
  0xb3   : > { %6195 = vst [vmem:[#allocation16_spill] sm:$0xff] %v4332_v63 }
  0xb4   : > { %6196 = vst [vmem:[#allocation17_spill] sm:$0xff] %v4334_v0  ;;  %3359 = vmatmul.msk.f32.gmra.mxu0 %vm292_vm0, %v4091_v20 }
  0xb5   : > { %6197 = vst [vmem:[#allocation18_spill] sm:$0xff] %v4336_v1  ;;  %3375 = vmatmul.msk.f32.gmra.mxu1 %vm292_vm0, %v4091_v20 }
  0xb6   : > { %3391 = vmatmul.msk.f32.gmra.mxu2 %vm292_vm0, %v4091_v20  ;;  %3407 = vmatmul.msk.f32.gmra.mxu3 %vm292_vm0, %v4091_v20 }
  0xb9   : > { %v4346_v2 = vpop.f32.mrf.mxu2  ;;  %v4348_v3 = vpop.f32.mrf.mxu3 }
  0xba   : > { %6198 = vst [vmem:[#allocation19_spill] sm:$0xff] %v4346_v2  ;;  %v4350_v4 = vpop.f32.mrf.mxu0  ;;  %v4352_v5 = vpop.f32.mrf.mxu1 }
  0xbb   : > { %6199 = vst [vmem:[#allocation20_spill] sm:$0xff] %v4348_v3 }
  0xbc   : > { %6200 = vst [vmem:[#allocation21_spill] sm:$0xff] %v4350_v4  ;;  %3360 = vmatmul.msk.f32.gmra.mxu0 %vm292_vm0, %v4111_v24 }
  0xbd   : > { %6201 = vst [vmem:[#allocation22_spill] sm:$0xff] %v4352_v5  ;;  %3376 = vmatmul.msk.f32.gmra.mxu1 %vm292_vm0, %v4111_v24 }
  0xbe   : > { %3392 = vmatmul.msk.f32.gmra.mxu2 %vm292_vm0, %v4111_v24  ;;  %3408 = vmatmul.msk.f32.gmra.mxu3 %vm292_vm0, %v4111_v24 }
  0xc1   : > { %v4362_v6 = vpop.f32.mrf.mxu2  ;;  %v4364_v7 = vpop.f32.mrf.mxu3 }
  0xc2   : > { %6202 = vst [vmem:[#allocation23_spill] sm:$0xff] %v4362_v6  ;;  %v4366_v8 = vpop.f32.mrf.mxu0  ;;  %v4368_v9 = vpop.f32.mrf.mxu1 }
  0xc3   : > { %6203 = vst [vmem:[#allocation24_spill] sm:$0xff] %v4364_v7 }
  0xc4   : > { %6204 = vst [vmem:[#allocation25_spill] sm:$0xff] %v4366_v8  ;;  %3361 = vmatmul.msk.f32.gmra.mxu0 %vm292_vm0, %v4125_v26 }
  0xc5   : > { %6205 = vst [vmem:[#allocation26_spill] sm:$0xff] %v4368_v9  ;;  %3377 = vmatmul.msk.f32.gmra.mxu1 %vm292_vm0, %v4125_v26 }
  0xc6   : > { %3393 = vmatmul.msk.f32.gmra.mxu2 %vm292_vm0, %v4125_v26  ;;  %3409 = vmatmul.msk.f32.gmra.mxu3 %vm292_vm0, %v4125_v26 }
  0xc9   : > { %v4378_v10 = vpop.f32.mrf.mxu2  ;;  %v4380_v11 = vpop.f32.mrf.mxu3 }
  0xca   : > { %6206 = vst [vmem:[#allocation27_spill] sm:$0xff] %v4378_v10  ;;  %v4382_v12 = vpop.f32.mrf.mxu0  ;;  %v4384_v13 = vpop.f32.mrf.mxu1 }
  0xcb   : > { %6207 = vst [vmem:[#allocation28_spill] sm:$0xff] %v4380_v11 }
  0xcc   : > { %6208 = vst [vmem:[#allocation29_spill] sm:$0xff] %v4382_v12  ;;  %3362 = vmatmul.msk.f32.gmra.mxu0 %vm292_vm0, %v4136_v27 }
  0xcd   : > { %6209 = vst [vmem:[#allocation30_spill] sm:$0xff] %v4384_v13  ;;  %3378 = vmatmul.msk.f32.gmra.mxu1 %vm292_vm0, %v4136_v27 }
  0xce   : > { %3394 = vmatmul.msk.f32.gmra.mxu2 %vm292_vm0, %v4136_v27  ;;  %3410 = vmatmul.msk.f32.gmra.mxu3 %vm292_vm0, %v4136_v27 }
  0xd1   : > { %v4394_v14 = vpop.f32.mrf.mxu2  ;;  %v4396_v15 = vpop.f32.mrf.mxu3 }
  0xd2   : > { %6210 = vst [vmem:[#allocation31_spill] sm:$0xff] %v4394_v14  ;;  %v4398_v21 = vpop.f32.mrf.mxu0  ;;  %v4400_v22 = vpop.f32.mrf.mxu1 }
  0xd3   : > { %6211 = vst [vmem:[#allocation32_spill] sm:$0xff] %v4396_v15 }
  0xd4   : > { %6212 = vst [vmem:[#allocation33_spill] sm:$0xff] %v4398_v21  ;;  %3363 = vmatmul.msk.f32.gmra.mxu0 %vm292_vm0, %v4147_v28 }
  0xd5   : > { %6213 = vst [vmem:[#allocation34_spill] sm:$0xff] %v4400_v22  ;;  %3379 = vmatmul.msk.f32.gmra.mxu1 %vm292_vm0, %v4147_v28 }
  0xd6   : > { %3395 = vmatmul.msk.f32.gmra.mxu2 %vm292_vm0, %v4147_v28  ;;  %3411 = vmatmul.msk.f32.gmra.mxu3 %vm292_vm0, %v4147_v28 }
  0xd9   : > { %v4410_v23 = vpop.f32.mrf.mxu2  ;;  %v4412_v25 = vpop.f32.mrf.mxu3 }
  0xda   : > { %6214 = vst [vmem:[#allocation35_spill] sm:$0xff] %v4410_v23  ;;  %v4414_v29 = vpop.f32.mrf.mxu0  ;;  %v4416_v30 = vpop.f32.mrf.mxu1 }
  0xdb   : > { %6215 = vst [vmem:[#allocation36_spill] sm:$0xff] %v4412_v25 }
  0xdc   : > { %6216 = vst [vmem:[#allocation37_spill] sm:$0xff] %v4414_v29  ;;  %3364 = vmatmul.msk.f32.gmra.mxu0 %vm292_vm0, %v4167_v32 }
  0xdd   : > { %6217 = vst [vmem:[#allocation38_spill] sm:$0xff] %v4416_v30  ;;  %3380 = vmatmul.msk.f32.gmra.mxu1 %vm292_vm0, %v4167_v32 }
  0xde   : > { %3396 = vmatmul.msk.f32.gmra.mxu2 %vm292_vm0, %v4167_v32  ;;  %3412 = vmatmul.msk.f32.gmra.mxu3 %vm292_vm0, %v4167_v32 }
  0xe1   : > { %v4426_v31 = vpop.f32.mrf.mxu2  ;;  %v4428_v33 = vpop.f32.mrf.mxu3 }
  0xe2   : > { %6218 = vst [vmem:[#allocation39_spill] sm:$0xff] %v4426_v31  ;;  %v4430_v37 = vpop.f32.mrf.mxu0  ;;  %v4432_v38 = vpop.f32.mrf.mxu1 }
  0xe3   : > { %6219 = vst [vmem:[#allocation40_spill] sm:$0xff] %v4428_v33  ;;  %v277_v33 = vld [vmem:[%s6135_s1 + $0x108] sm:$0xff] }
  0xe4   : > { %6220 = vst [vmem:[#allocation41_spill] sm:$0xff] %v4430_v37  ;;  %3365 = vmatmul.msk.f32.gmra.mxu0 %vm292_vm0, %v4181_v34 }
  0xe5   : > { %6221 = vst [vmem:[#allocation42_spill] sm:$0xff] %v4432_v38  ;;  %3381 = vmatmul.msk.f32.gmra.mxu1 %vm292_vm0, %v4181_v34 }
  0xe6   : > { %3397 = vmatmul.msk.f32.gmra.mxu2 %vm292_vm0, %v4181_v34  ;;  %3413 = vmatmul.msk.f32.gmra.mxu3 %vm292_vm0, %v4181_v34 }
  0xe9   : > { %v4442_v39 = vpop.f32.mrf.mxu2  ;;  %v4444_v40 = vpop.f32.mrf.mxu3 }
  0xea   : > { %6222 = vst [vmem:[#allocation43_spill] sm:$0xff] %v4442_v39  ;;  %v4446_v41 = vpop.f32.mrf.mxu0  ;;  %v4448_v42 = vpop.f32.mrf.mxu1  ;;  %v286_v39 = vld [vmem:[%s6135_s1 + $0x150] sm:$0xff] }
  0xeb   : > { %6223 = vst [vmem:[#allocation44_spill] sm:$0xff] %v4444_v40  ;;  %v282_v40 = vld [vmem:[%s6135_s1 + $0x130] sm:$0xff]  ;;  %1004 = vmatpush.msra.mxu2 %v286_v39  ;;  %v276_v39 = vld [vmem:[%s6135_s1 + $0x100] sm:$0xff] }
  0xec   : > { %6224 = vst [vmem:[#allocation45_spill] sm:$0xff] %v4446_v41  ;;  %3366 = vmatmul.msk.f32.gmra.mxu0 %vm292_vm0, %v4192_v35  ;;  %v278_v41 = vld [vmem:[%s6135_s1 + $0x110] sm:$0xff]  ;;  %939 = vmatpush.msra.mxu1 %v282_v40  ;;  %v285_v40 = vld [vmem:[%s6135_s1 + $0x148] sm:$0xff] }
  0xed   : > { %6225 = vst [vmem:[#allocation46_spill] sm:$0xff] %v4448_v42  ;;  %3382 = vmatmul.msk.f32.gmra.mxu1 %vm292_vm0, %v4192_v35  ;;  %v291_v42 = vld [vmem:[%s6135_s1 + $0x178] sm:$0xff]  ;;  %874 = vmatpush.msra.mxu0 %v278_v41  ;;  %v289_v41 = vld [vmem:[%s6135_s1 + $0x168] sm:$0xff] }
  0xee   : > { %3398 = vmatmul.msk.f32.gmra.mxu2 %vm292_vm0, %v4192_v35  ;;  %3414 = vmatmul.msk.f32.gmra.mxu3 %vm292_vm0, %v4192_v35 }
  0xef   : > { %1068 = vmatpush.msra.mxu3 %v291_v42  ;;  %v290_v42 = vld [vmem:[%s6135_s1 + $0x170] sm:$0xff]  ;;  %875 = vmatpush.msra.mxu0 %v277_v33  ;;  %v284_v33 = vld [vmem:[%s6135_s1 + $0x140] sm:$0xff] }
  0xf0   : > { %1005 = vmatpush.msra.mxu2 %v285_v40 }
  0xf1   : > { %v4479_v38 = vpop.f32.mrf.mxu2  ;;  %v4481_v37 = vpop.f32.mrf.mxu3  ;;  %1069 = vmatpush.msra.mxu3 %v290_v42  ;;  %v280_v42 = vld [vmem:[%s6135_s1 + $0x120] sm:$0xff]  ;;  %876 = vmatpush.msra.mxu0 %v276_v39 }
  0xf2   : > { %6226 = vst [vmem:[#allocation47_spill] sm:$0xff] %v4479_v38  ;;  %v4486_v44 = vpop.f32.mrf.mxu0  ;;  %v4488_v43 = vpop.f32.mrf.mxu1  ;;  %1006 = vmatpush.msra.mxu2 %v284_v33 }
  0xf3   : > { %6227 = vst [vmem:[#allocation48_spill] sm:$0xff] %v4481_v37  ;;  %v281_v37 = vld [vmem:[%s6135_s1 + $0x128] sm:$0xff]  ;;  %1070 = vmatpush.msra.mxu3 %v289_v41 }
  0xf4   : > { %6228 = vst [vmem:[#allocation49_spill] sm:$0xff] %v4486_v44  ;;  %940 = vmatpush.msra.mxu1 %v281_v37  ;;  %3367 = vmatmul.msk.f32.gmra.mxu0 %vm292_vm0, %v4203_v36  ;;  %v288_v37 = vld [vmem:[%s6135_s1 + $0x160] sm:$0xff] }
  0xf5   : > { %6229 = vst [vmem:[#allocation50_spill] sm:$0xff] %v4488_v43  ;;  %3383 = vmatmul.msk.f32.gmra.mxu1 %vm292_vm0, %v4203_v36  ;;  %1071 = vmatpush.msra.mxu3 %v288_v37 }
  0xf6   : > { %3399 = vmatmul.msk.f32.gmra.mxu2 %vm292_vm0, %v4203_v36  ;;  %3415 = vmatmul.msk.f32.gmra.mxu3 %vm292_vm0, %v4203_v36 }
  0xf7   : > { %941 = vmatpush.msra.mxu1 %v280_v42 }
  0xf9   : > { %v4522_v40 = vpop.f32.mrf.mxu2  ;;  %v4524_v41 = vpop.f32.mrf.mxu3 }
  0xfa   : > { %6230 = vst [vmem:[#allocation51_spill] sm:$0xff] %v4522_v40  ;;  %v4526_v43 = vpop.f32.mrf.mxu0  ;;  %v4528_v44 = vpop.f32.mrf.mxu1 }
  0xfb   : > { %6231 = vst [vmem:[#allocation52_spill] sm:$0xff] %v4524_v41 }
  0xfc   : > { %6232 = vst [vmem:[#allocation53_spill] sm:$0xff] %v4526_v43  ;;  %3368 = vmatmul.msk.f32.gmra.mxu0 %vm292_vm0, %v4238_v45 }
  0xfd   : > { %6233 = vst [vmem:[#allocation54_spill] sm:$0xff] %v4528_v44  ;;  %3384 = vmatmul.msk.f32.gmra.mxu1 %vm292_vm0, %v4238_v45 }
  0xfe   : > { %3400 = vmatmul.msk.f32.gmra.mxu2 %vm292_vm0, %v4238_v45  ;;  %3416 = vmatmul.msk.f32.gmra.mxu3 %vm292_vm0, %v4238_v45 }
 0x101   : > { %v4538_v39 = vpop.f32.mrf.mxu2  ;;  %v4540_v42 = vpop.f32.mrf.mxu3 }
 0x102   : > { %6234 = vst [vmem:[#allocation55_spill] sm:$0xff] %v4538_v39  ;;  %v4542_v33 = vpop.f32.mrf.mxu0  ;;  %v4544_v37 = vpop.f32.mrf.mxu1 }
 0x103   : > { %6235 = vst [vmem:[#allocation56_spill] sm:$0xff] %v4540_v42 }
 0x104   : > { %6236 = vst [vmem:[#allocation57_spill] sm:$0xff] %v4542_v33  ;;  %3369 = vmatmul.msk.f32.gmra.mxu0 %vm292_vm0, %v4249_v46 }
 0x105   : > { %6237 = vst [vmem:[#allocation58_spill] sm:$0xff] %v4544_v37  ;;  %3385 = vmatmul.msk.f32.gmra.mxu1 %vm292_vm0, %v4249_v46 }
 0x106   : > { %3401 = vmatmul.msk.f32.gmra.mxu2 %vm292_vm0, %v4249_v46  ;;  %3417 = vmatmul.msk.f32.gmra.mxu3 %vm292_vm0, %v4249_v46 }
 0x109   : > { %v4554_v44 = vpop.f32.mrf.mxu2  ;;  %v4556_v39 = vpop.f32.mrf.mxu3 }
 0x10a   : > { %6238 = vst [vmem:[#allocation59_spill] sm:$0xff] %v4554_v44  ;;  %v4558_v42 = vpop.f32.mrf.mxu0  ;;  %v4560_v33 = vpop.f32.mrf.mxu1 }
 0x10b   : > { %6239 = vst [vmem:[#allocation60_spill] sm:$0xff] %v4556_v39 }
 0x10c   : > { %6240 = vst [vmem:[#allocation61_spill] sm:$0xff] %v4558_v42  ;;  %3370 = vmatmul.msk.f32.gmra.mxu0 %vm292_vm0, %v4260_v47 }
 0x10d   : > { %6241 = vst [vmem:[#allocation62_spill] sm:$0xff] %v4560_v33  ;;  %3386 = vmatmul.msk.f32.gmra.mxu1 %vm292_vm0, %v4260_v47 }
 0x10e   : > { %3402 = vmatmul.msk.f32.gmra.mxu2 %vm292_vm0, %v4260_v47  ;;  %3418 = vmatmul.msk.f32.gmra.mxu3 %vm292_vm0, %v4260_v47 }
 0x111   : > { %v4570_v37 = vpop.f32.mrf.mxu2  ;;  %v4572_v44 = vpop.f32.mrf.mxu3 }
 0x112   : > { %6242 = vst [vmem:[#allocation63_spill] sm:$0xff] %v4570_v37  ;;  %v4574_v39 = vpop.f32.mrf.mxu0  ;;  %v4576_v42 = vpop.f32.mrf.mxu1 }
 0x113   : > { %6243 = vst [vmem:[#allocation64_spill] sm:$0xff] %v4572_v44 }
 0x114   : > { %3419 = vmatmul.msk.f32.vlgmr.msra.gmra.mxu0 %vm292_vm0, %v4047_v16 }
 0x115   : > { %3435 = vmatmul.msk.f32.vlgmr.msra.gmra.mxu1 %vm292_vm0, %v4047_v16 }
 0x116   : > { %3451 = vmatmul.msk.f32.vlgmr.msra.gmra.mxu2 %vm292_vm0, %v4047_v16  ;;  %3467 = vmatmul.msk.f32.vlgmr.msra.gmra.mxu3 %vm292_vm0, %v4047_v16 }
 0x119   : > { %v4586_v33 = vpop.f32.mrf.mxu2  ;;  %v4588_v37 = vpop.f32.mrf.mxu3 }
 0x11a   : > { %6244 = vst [vmem:[#allocation65_spill] sm:$0xff] %v4586_v33  ;;  %v4590_v44 = vpop.f32.mrf.mxu0  ;;  %v4592_v43 = vpop.f32.mrf.mxu1 }
 0x11b   : > { %6245 = vst [vmem:[#allocation66_spill] sm:$0xff] %v4588_v37 }
 0x11c   : > { %3420 = vmatmul.msk.f32.gmra.mxu0 %vm292_vm0, %v4058_v17 }
 0x11d   : > { %3436 = vmatmul.msk.f32.gmra.mxu1 %vm292_vm0, %v4058_v17 }
 0x11e   : > { %3452 = vmatmul.msk.f32.gmra.mxu2 %vm292_vm0, %v4058_v17  ;;  %3468 = vmatmul.msk.f32.gmra.mxu3 %vm292_vm0, %v4058_v17 }
 0x121   : > { %v4602_v16 = vpop.f32.mrf.mxu2  ;;  %v4604_v41 = vpop.f32.mrf.mxu3 }
 0x122   : > { %v4606_v40 = vpop.f32.mrf.mxu0  ;;  %v4608_v38 = vpop.f32.mrf.mxu1 }
 0x124   : > { %3421 = vmatmul.msk.f32.gmra.mxu0 %vm292_vm0, %v4069_v18 }
 0x125   : > { %3437 = vmatmul.msk.f32.gmra.mxu1 %vm292_vm0, %v4069_v18 }
 0x126   : > { %3453 = vmatmul.msk.f32.gmra.mxu2 %vm292_vm0, %v4069_v18  ;;  %3469 = vmatmul.msk.f32.gmra.mxu3 %vm292_vm0, %v4069_v18 }
 0x129   : > { %v4618_v17 = vpop.f32.mrf.mxu2  ;;  %v4620_v31 = vpop.f32.mrf.mxu3 }
 0x12a   : > { %v4622_v30 = vpop.f32.mrf.mxu0  ;;  %v4624_v29 = vpop.f32.mrf.mxu1 }
 0x12c   : > { %3422 = vmatmul.msk.f32.gmra.mxu0 %vm292_vm0, %v4080_v19 }
 0x12d   : > { %3438 = vmatmul.msk.f32.gmra.mxu1 %vm292_vm0, %v4080_v19 }
 0x12e   : > { %3454 = vmatmul.msk.f32.gmra.mxu2 %vm292_vm0, %v4080_v19  ;;  %3470 = vmatmul.msk.f32.gmra.mxu3 %vm292_vm0, %v4080_v19 }
 0x131   : > { %v4634_v18 = vpop.f32.mrf.mxu2  ;;  %v4636_v25 = vpop.f32.mrf.mxu3 }
 0x132   : > { %v4638_v23 = vpop.f32.mrf.mxu0  ;;  %v4640_v22 = vpop.f32.mrf.mxu1 }
 0x134   : > { %3423 = vmatmul.msk.f32.gmra.mxu0 %vm292_vm0, %v4091_v20 }
 0x135   : > { %3439 = vmatmul.msk.f32.gmra.mxu1 %vm292_vm0, %v4091_v20 }
 0x136   : > { %3455 = vmatmul.msk.f32.gmra.mxu2 %vm292_vm0, %v4091_v20  ;;  %3471 = vmatmul.msk.f32.gmra.mxu3 %vm292_vm0, %v4091_v20 }
 0x139   : > { %v4650_v19 = vpop.f32.mrf.mxu2  ;;  %v4652_v21 = vpop.f32.mrf.mxu3 }
 0x13a   : > { %v4654_v15 = vpop.f32.mrf.mxu0  ;;  %v4656_v14 = vpop.f32.mrf.mxu1 }
 0x13c   : > { %3424 = vmatmul.msk.f32.gmra.mxu0 %vm292_vm0, %v4111_v24 }
 0x13d   : > { %3440 = vmatmul.msk.f32.gmra.mxu1 %vm292_vm0, %v4111_v24 }
 0x13e   : > { %3456 = vmatmul.msk.f32.gmra.mxu2 %vm292_vm0, %v4111_v24  ;;  %3472 = vmatmul.msk.f32.gmra.mxu3 %vm292_vm0, %v4111_v24 }
 0x141   : > { %v4666_v20 = vpop.f32.mrf.mxu2  ;;  %v4668_v13 = vpop.f32.mrf.mxu3 }
 0x142   : > { %v4670_v12 = vpop.f32.mrf.mxu0  ;;  %v4672_v11 = vpop.f32.mrf.mxu1 }
 0x144   : > { %3425 = vmatmul.msk.f32.gmra.mxu0 %vm292_vm0, %v4125_v26 }
 0x145   : > { %3441 = vmatmul.msk.f32.gmra.mxu1 %vm292_vm0, %v4125_v26 }
 0x146   : > { %3457 = vmatmul.msk.f32.gmra.mxu2 %vm292_vm0, %v4125_v26  ;;  %3473 = vmatmul.msk.f32.gmra.mxu3 %vm292_vm0, %v4125_v26 }
 0x149   : > { %v4682_v24 = vpop.f32.mrf.mxu2  ;;  %v4684_v10 = vpop.f32.mrf.mxu3 }
 0x14a   : > { %v4686_v9 = vpop.f32.mrf.mxu0  ;;  %v4688_v8 = vpop.f32.mrf.mxu1 }
 0x14c   : > { %3426 = vmatmul.msk.f32.gmra.mxu0 %vm292_vm0, %v4136_v27 }
 0x14d   : > { %3442 = vmatmul.msk.f32.gmra.mxu1 %vm292_vm0, %v4136_v27 }
 0x14e   : > { %3458 = vmatmul.msk.f32.gmra.mxu2 %vm292_vm0, %v4136_v27  ;;  %3474 = vmatmul.msk.f32.gmra.mxu3 %vm292_vm0, %v4136_v27 }
 0x151   : > { %v4698_v26 = vpop.f32.mrf.mxu2  ;;  %v4700_v7 = vpop.f32.mrf.mxu3 }
 0x152   : > { %v4702_v6 = vpop.f32.mrf.mxu0  ;;  %v4704_v5 = vpop.f32.mrf.mxu1 }
 0x154   : > { %3427 = vmatmul.msk.f32.gmra.mxu0 %vm292_vm0, %v4147_v28 }
 0x155   : > { %3443 = vmatmul.msk.f32.gmra.mxu1 %vm292_vm0, %v4147_v28 }
 0x156   : > { %3459 = vmatmul.msk.f32.gmra.mxu2 %vm292_vm0, %v4147_v28  ;;  %3475 = vmatmul.msk.f32.gmra.mxu3 %vm292_vm0, %v4147_v28 }
 0x159   : > { %v4714_v27 = vpop.f32.mrf.mxu2  ;;  %v4716_v4 = vpop.f32.mrf.mxu3 }
 0x15a   : > { %v4718_v3 = vpop.f32.mrf.mxu0  ;;  %v4720_v2 = vpop.f32.mrf.mxu1 }
 0x15c   : > { %3428 = vmatmul.msk.f32.gmra.mxu0 %vm292_vm0, %v4167_v32 }
 0x15d   : > { %3444 = vmatmul.msk.f32.gmra.mxu1 %vm292_vm0, %v4167_v32 }
 0x15e   : > { %3460 = vmatmul.msk.f32.gmra.mxu2 %vm292_vm0, %v4167_v32  ;;  %3476 = vmatmul.msk.f32.gmra.mxu3 %vm292_vm0, %v4167_v32 }
 0x161   : > { %v4730_v28 = vpop.f32.mrf.mxu2  ;;  %v4732_v1 = vpop.f32.mrf.mxu3 }
 0x162   : > { %v4734_v0 = vpop.f32.mrf.mxu0  ;;  %v4736_v63 = vpop.f32.mrf.mxu1 }
 0x164   : > { %3429 = vmatmul.msk.f32.gmra.mxu0 %vm292_vm0, %v4181_v34 }
 0x165   : > { %3445 = vmatmul.msk.f32.gmra.mxu1 %vm292_vm0, %v4181_v34 }
 0x166   : > { %3461 = vmatmul.msk.f32.gmra.mxu2 %vm292_vm0, %v4181_v34  ;;  %3477 = vmatmul.msk.f32.gmra.mxu3 %vm292_vm0, %v4181_v34 }
 0x169   : > { %v4746_v32 = vpop.f32.mrf.mxu2  ;;  %v4748_v62 = vpop.f32.mrf.mxu3 }
 0x16a   : > { %v651_v61 = vpop.f32.mrf.mxu0  ;;  %v716_v60 = vpop.f32.mrf.mxu1 }
 0x16c   : > { %3430 = vmatmul.msk.f32.gmra.mxu0 %vm292_vm0, %v4192_v35 }
 0x16d   : > { %3446 = vmatmul.msk.f32.gmra.mxu1 %vm292_vm0, %v4192_v35 }
 0x16e   : > { %3462 = vmatmul.msk.f32.gmra.mxu2 %vm292_vm0, %v4192_v35  ;;  %3478 = vmatmul.msk.f32.gmra.mxu3 %vm292_vm0, %v4192_v35 }
 0x171   : > { %v4758_v59 = vpop.f32.mrf.mxu2  ;;  %v4760_v34 = vpop.f32.mrf.mxu3 }
 0x172   : > { %v654_v58 = vpop.f32.mrf.mxu0  ;;  %v719_v57 = vpop.f32.mrf.mxu1 }
 0x174   : > { %3431 = vmatmul.msk.f32.gmra.mxu0 %vm292_vm0, %v4203_v36 }
 0x175   : > { %3447 = vmatmul.msk.f32.gmra.mxu1 %vm292_vm0, %v4203_v36 }
 0x176   : > { %3463 = vmatmul.msk.f32.gmra.mxu2 %vm292_vm0, %v4203_v36  ;;  %3479 = vmatmul.msk.f32.gmra.mxu3 %vm292_vm0, %v4203_v36 }
 0x179   : > { %v784_v56 = vpop.f32.mrf.mxu2  ;;  %v849_v35 = vpop.f32.mrf.mxu3 }
 0x17a   : > { %v657_v55 = vpop.f32.mrf.mxu0  ;;  %v722_v54 = vpop.f32.mrf.mxu1 }
 0x17c   : > { %3432 = vmatmul.msk.f32.gmra.mxu0 %vm292_vm0, %v4238_v45 }
 0x17d   : > { %3448 = vmatmul.msk.f32.gmra.mxu1 %vm292_vm0, %v4238_v45 }
 0x17e   : > { %3464 = vmatmul.msk.f32.gmra.mxu2 %vm292_vm0, %v4238_v45  ;;  %3480 = vmatmul.msk.f32.gmra.mxu3 %vm292_vm0, %v4238_v45 }
 0x181   : > { %v787_v53 = vpop.f32.mrf.mxu2  ;;  %v852_v52 = vpop.f32.mrf.mxu3 }
 0x182   : > { %v660_v51 = vpop.f32.mrf.mxu0  ;;  %v725_v36 = vpop.f32.mrf.mxu1 }
 0x184   : > { %3433 = vmatmul.msk.f32.gmra.mxu0 %vm292_vm0, %v4249_v46 }
 0x185   : > { %3449 = vmatmul.msk.f32.gmra.mxu1 %vm292_vm0, %v4249_v46 }
 0x186   : > { %3465 = vmatmul.msk.f32.gmra.mxu2 %vm292_vm0, %v4249_v46  ;;  %3481 = vmatmul.msk.f32.gmra.mxu3 %vm292_vm0, %v4249_v46 }
 0x189   : > { %v790_v50 = vpop.f32.mrf.mxu2  ;;  %v855_v37 = vpop.f32.mrf.mxu3 }
 0x18a   : > { %v663_v45 = vpop.f32.mrf.mxu0  ;;  %v728_v33 = vpop.f32.mrf.mxu1 }
 0x18b   : > { %3483 = vmatpush.xpose.msk.msrb.mxu0 %vm1137_vm1, %v663_v45  ;;  %3515 = vmatpush.xpose.msk.msrb.mxu1 %vm1137_vm1, %v728_v33 }
 0x18c   : > { %3434 = vmatmul.msk.f32.gmra.mxu0 %vm292_vm0, %v4260_v47 }
 0x18d   : > { %3450 = vmatmul.msk.f32.gmra.mxu1 %vm292_vm0, %v4260_v47 }
 0x18e   : > { %3466 = vmatmul.msk.f32.gmra.mxu2 %vm292_vm0, %v4260_v47  ;;  %3482 = vmatmul.msk.f32.gmra.mxu3 %vm292_vm0, %v4260_v47 }
 0x18f   : > { %3484 = vmatpush.xpose.msk.msrb.mxu0 %vm1137_vm1, %v660_v51  ;;  %3516 = vmatpush.xpose.msk.msrb.mxu1 %vm1137_vm1, %v725_v36 }
 0x191   : > { %v793_v46 = vpop.f32.mrf.mxu2  ;;  %v858_v45 = vpop.f32.mrf.mxu3 }
 0x192   : > { %3547 = vmatpush.xpose.msk.msrb.mxu2 %vm1137_vm1, %v793_v46  ;;  %3579 = vmatpush.xpose.msk.msrb.mxu3 %vm1137_vm1, %v858_v45  ;;  %v4800_v33 = vpop.f32.mrf.mxu0  ;;  %v4802_v49 = vpop.f32.mrf.mxu1  ;;  %v6267_v45 = vld [vmem:[#allocation17_spill] sm:$0xff] }
 0x193   : > { %3485 = vmatpush.xpose.msk.msrb.mxu0 %vm1137_vm1, %v657_v55  ;;  %3517 = vmatpush.xpose.msk.msrb.mxu1 %vm1137_vm1, %v722_v54 }
 0x196   : > { %3548 = vmatpush.xpose.msk.msrb.mxu2 %vm1137_vm1, %v790_v50  ;;  %3580 = vmatpush.xpose.msk.msrb.mxu3 %vm1137_vm1, %v855_v37 }
 0x197   : > { %3486 = vmatpush.xpose.msk.msrb.mxu0 %vm1137_vm1, %v654_v58  ;;  %3518 = vmatpush.xpose.msk.msrb.mxu1 %vm1137_vm1, %v719_v57 }
 0x199   : > { %v4810_v47 = vpop.f32.mrf.mxu2  ;;  %v4812_v51 = vpop.f32.mrf.mxu3 }
 0x19a   : > { %6246 = vst [vmem:[#allocation67_spill] sm:$0xff] %v4810_v47  ;;  %3549 = vmatpush.xpose.msk.msrb.mxu2 %vm1137_vm1, %v787_v53  ;;  %3581 = vmatpush.xpose.msk.msrb.mxu3 %vm1137_vm1, %v852_v52  ;;  %v4816_v36 = vpop.f32.mrf.mxu0  ;;  %v4818_v55 = vpop.f32.mrf.mxu1  ;;  %v6281_v47 = vld [vmem:[#allocation31_spill] sm:$0xff] }
 0x19b   : > { %6247 = vst [vmem:[#allocation68_spill] sm:$0xff] %v4812_v51  ;;  %3487 = vmatpush.xpose.msk.msrb.mxu0 %vm1137_vm1, %v651_v61  ;;  %3519 = vmatpush.xpose.msk.msrb.mxu1 %vm1137_vm1, %v716_v60 }
 0x19e   : > { %3550 = vmatpush.xpose.msk.msrb.mxu2 %vm1137_vm1, %v784_v56  ;;  %3582 = vmatpush.xpose.msk.msrb.mxu3 %vm1137_vm1, %v849_v35 }
 0x19f   : > { %3488 = vmatpush.xpose.msk.msrb.mxu0 %vm1137_vm1, %v4734_v0  ;;  %3520 = vmatpush.xpose.msk.msrb.mxu1 %vm1137_vm1, %v4736_v63 }
 0x1a1   : > { %v4828_v50 = vpop.f32.mrf.mxu2  ;;  %v4830_v52 = vpop.f32.mrf.mxu3 }
 0x1a2   : > { %6248 = vst [vmem:[#allocation69_spill] sm:$0xff] %v4828_v50  ;;  %3551 = vmatpush.xpose.msk.msrb.mxu2 %vm1137_vm1, %v4758_v59  ;;  %3583 = vmatpush.xpose.msk.msrb.mxu3 %vm1137_vm1, %v4760_v34  ;;  %v4836_v53 = vpop.f32.mrf.mxu0  ;;  %v4838_v54 = vpop.f32.mrf.mxu1  ;;  %v6266_v34 = vld [vmem:[#allocation16_spill] sm:$0xff]  ;;  %v6283_v50 = vld [vmem:[#allocation33_spill] sm:$0xff] }
 0x1a3   : > { %6249 = vst [vmem:[#allocation70_spill] sm:$0xff] %v4830_v52  ;;  %3489 = vmatpush.xpose.msk.msrb.mxu0 %vm1137_vm1, %v4718_v3  ;;  %3521 = vmatpush.xpose.msk.msrb.mxu1 %vm1137_vm1, %v4720_v2 }
 0x1a6   : > { %3552 = vmatpush.xpose.msk.msrb.mxu2 %vm1137_vm1, %v4746_v32  ;;  %3584 = vmatpush.xpose.msk.msrb.mxu3 %vm1137_vm1, %v4748_v62  ;;  %v6265_v32 = vld [vmem:[#allocation15_spill] sm:$0xff] }
 0x1a7   : > { %3490 = vmatpush.xpose.msk.msrb.mxu0 %vm1137_vm1, %v4702_v6  ;;  %3522 = vmatpush.xpose.msk.msrb.mxu1 %vm1137_vm1, %v4704_v5 }
 0x1a9   : > { %v4852_v56 = vpop.f32.mrf.mxu2  ;;  %v4854_v57 = vpop.f32.mrf.mxu3 }
 0x1aa   : > { %3553 = vmatpush.xpose.msk.msrb.mxu2 %vm1137_vm1, %v4730_v28  ;;  %3585 = vmatpush.xpose.msk.msrb.mxu3 %vm1137_vm1, %v4732_v1  ;;  %v4860_v58 = vpop.f32.mrf.mxu0  ;;  %v4862_v59 = vpop.f32.mrf.mxu1 }
 0x1ab   : > { %3491 = vmatpush.xpose.msk.msrb.mxu0 %vm1137_vm1, %v4686_v9  ;;  %3523 = vmatpush.xpose.msk.msrb.mxu1 %vm1137_vm1, %v4688_v8 }
 0x1ae   : > { %3554 = vmatpush.xpose.msk.msrb.mxu2 %vm1137_vm1, %v4714_v27  ;;  %3586 = vmatpush.xpose.msk.msrb.mxu3 %vm1137_vm1, %v4716_v4 }
 0x1af   : > { %3492 = vmatpush.xpose.msk.msrb.mxu0 %vm1137_vm1, %v4670_v12  ;;  %3524 = vmatpush.xpose.msk.msrb.mxu1 %vm1137_vm1, %v4672_v11  ;;  %v6250_v12 = vld [vmem:[#allocation2_spill] sm:$0xff] }
 0x1b1   : > { %v4876_v60 = vpop.f32.mrf.mxu2  ;;  %v4878_v61 = vpop.f32.mrf.mxu3 }
 0x1b2   : > { %3555 = vmatpush.xpose.msk.msrb.mxu2 %vm1137_vm1, %v4698_v26  ;;  %3587 = vmatpush.xpose.msk.msrb.mxu3 %vm1137_vm1, %v4700_v7  ;;  %v4884_v62 = vpop.f32.mrf.mxu0  ;;  %v4886_v63 = vpop.f32.mrf.mxu1  ;;  %v6264_v26 = vld [vmem:[#allocation14_spill] sm:$0xff] }
 0x1b3   : > { %3493 = vmatpush.xpose.msk.msrb.mxu0 %vm1137_vm1, %v4654_v15  ;;  %3525 = vmatpush.xpose.msk.msrb.mxu1 %vm1137_vm1, %v4656_v14  ;;  %v6252_v14 = vld [vmem:[#allocation66_spill] sm:$0xff] }
 0x1b6   : > { %3556 = vmatpush.xpose.msk.msrb.mxu2 %vm1137_vm1, %v4682_v24  ;;  %3588 = vmatpush.xpose.msk.msrb.mxu3 %vm1137_vm1, %v4684_v10  ;;  %v6263_v24 = vld [vmem:[#allocation13_spill] sm:$0xff] }
 0x1b7   : > { %3494 = vmatpush.xpose.msk.msrb.mxu0 %vm1137_vm1, %v4638_v23  ;;  %3526 = vmatpush.xpose.msk.msrb.mxu1 %vm1137_vm1, %v4640_v22  ;;  %v6253_v22 = vld [vmem:[#allocation3_spill] sm:$0xff]  ;;  %v6254_v23 = vld [vmem:[#allocation4_spill] sm:$0xff] }
 0x1b9   : > { %v4900_v0 = vpop.f32.mrf.mxu2  ;;  %v4902_v1 = vpop.f32.mrf.mxu3 }
 0x1ba   : > { %3557 = vmatpush.xpose.msk.msrb.mxu2 %vm1137_vm1, %v4666_v20  ;;  %3589 = vmatpush.xpose.msk.msrb.mxu3 %vm1137_vm1, %v4668_v13  ;;  %v4908_v2 = vpop.f32.mrf.mxu0  ;;  %v4910_v3 = vpop.f32.mrf.mxu1  ;;  %v6251_v13 = vld [vmem:[#allocation65_spill] sm:$0xff] }
 0x1bb   : > { %3495 = vmatpush.xpose.msk.msrb.mxu0 %vm1137_vm1, %v4622_v30  ;;  %3527 = vmatpush.xpose.msk.msrb.mxu1 %vm1137_vm1, %v4624_v29  ;;  %v6255_v29 = vld [vmem:[#allocation5_spill] sm:$0xff]  ;;  %v6256_v30 = vld [vmem:[#allocation6_spill] sm:$0xff] }
 0x1be   : > { %3558 = vmatpush.xpose.msk.msrb.mxu2 %vm1137_vm1, %v4650_v19  ;;  %3590 = vmatpush.xpose.msk.msrb.mxu3 %vm1137_vm1, %v4652_v21 }
 0x1bf   : > { %3496 = vmatpush.xpose.msk.msrb.mxu0 %vm1137_vm1, %v4606_v40  ;;  %3528 = vmatpush.xpose.msk.msrb.mxu1 %vm1137_vm1, %v4608_v38 }
 0x1c1   : > { %v4924_v4 = vpop.f32.mrf.mxu2  ;;  %v4926_v5 = vpop.f32.mrf.mxu3 }
 0x1c2   : > { %3559 = vmatpush.xpose.msk.msrb.mxu2 %vm1137_vm1, %v4634_v18  ;;  %3591 = vmatpush.xpose.msk.msrb.mxu3 %vm1137_vm1, %v4636_v25  ;;  %v4932_v6 = vpop.f32.mrf.mxu0  ;;  %v4934_v7 = vpop.f32.mrf.mxu1  ;;  %v6262_v18 = vld [vmem:[#allocation12_spill] sm:$0xff] }
 0x1c3   : > { %3497 = vmatpush.xpose.msk.msrb.mxu0 %vm1137_vm1, %v4590_v44  ;;  %3529 = vmatpush.xpose.msk.msrb.mxu1 %vm1137_vm1, %v4592_v43  ;;  %v6257_v44 = vld [vmem:[#allocation7_spill] sm:$0xff]  ;;  %v6258_v43 = vld [vmem:[#allocation8_spill] sm:$0xff] }
 0x1c6   : > { %3560 = vmatpush.xpose.msk.msrb.mxu2 %vm1137_vm1, %v4618_v17  ;;  %3592 = vmatpush.xpose.msk.msrb.mxu3 %vm1137_vm1, %v4620_v31  ;;  %v6261_v17 = vld [vmem:[#allocation11_spill] sm:$0xff] }
 0x1c7   : > { %3498 = vmatpush.xpose.msk.msrb.mxu0 %vm1137_vm1, %v4574_v39  ;;  %3530 = vmatpush.xpose.msk.msrb.mxu1 %vm1137_vm1, %v4576_v42  ;;  %v6259_v39 = vld [vmem:[#allocation9_spill] sm:$0xff]  ;;  %v6260_v42 = vld [vmem:[#allocation10_spill] sm:$0xff] }
 0x1c9   : > { %v4948_v8 = vpop.f32.mrf.mxu2  ;;  %v4950_v9 = vpop.f32.mrf.mxu3 }
 0x1ca   : > { %3561 = vmatpush.xpose.msk.msrb.mxu2 %vm1137_vm1, %v4602_v16  ;;  %3593 = vmatpush.xpose.msk.msrb.mxu3 %vm1137_vm1, %v4604_v41  ;;  %v4956_v10 = vpop.f32.mrf.mxu0  ;;  %v4958_v11 = vpop.f32.mrf.mxu1 }
 0x1cb   : > { %3499 = vmatmul.msk.f32.vlgmr.msrb.gmra.mxu0 %vm1137_vm1, %v4270_v48  ;;  %3531 = vmatmul.msk.f32.vlgmr.msrb.gmra.mxu1 %vm1137_vm1, %v6250_v12  ;;  %v6268_v12 = vld [vmem:[#allocation18_spill] sm:$0xff] }
 0x1ce   : > { %3562 = vmatpush.xpose.msk.msrb.mxu2 %vm1137_vm1, %v6251_v13  ;;  %3594 = vmatpush.xpose.msk.msrb.mxu3 %vm1137_vm1, %v6252_v14 }
 0x1d1   : > { %v4968_v15 = vpop.f32.mrf.mxu2  ;;  %v4970_v21 = vpop.f32.mrf.mxu3  ;;  %3563 = vmatmul.msk.f32.vlgmr.msrb.gmra.mxu2 %vm1137_vm1, %v6253_v22  ;;  %3595 = vmatmul.msk.f32.vlgmr.msrb.gmra.mxu3 %vm1137_vm1, %v6254_v23  ;;  %v6269_v22 = vld [vmem:[#allocation19_spill] sm:$0xff]  ;;  %v6270_v23 = vld [vmem:[#allocation20_spill] sm:$0xff] }
 0x1d2   : > { %v4976_v48 = vpop.f32.mrf.mxu0  ;;  %v4978_v25 = vpop.f32.mrf.mxu1 }
 0x1d3   : > { %3500 = vmatmul.msk.f32.gmra.mxu0 %vm1137_vm1, %v6255_v29  ;;  %3532 = vmatmul.msk.f32.gmra.mxu1 %vm1137_vm1, %v6256_v30 }
 0x1d9   : > { %v4984_v31 = vpop.f32.mrf.mxu2  ;;  %v4986_v38 = vpop.f32.mrf.mxu3  ;;  %3564 = vmatmul.msk.f32.gmra.mxu2 %vm1137_vm1, %v6257_v44  ;;  %3596 = vmatmul.msk.f32.gmra.mxu3 %vm1137_vm1, %v6258_v43  ;;  %v6271_v44 = vld [vmem:[#allocation21_spill] sm:$0xff]  ;;  %v6272_v43 = vld [vmem:[#allocation22_spill] sm:$0xff] }
 0x1da   : > { %v4992_v40 = vpop.f32.mrf.mxu0  ;;  %v4994_v41 = vpop.f32.mrf.mxu1 }
 0x1db   : > { %3501 = vmatmul.msk.f32.gmra.mxu0 %vm1137_vm1, %v6259_v39  ;;  %3533 = vmatmul.msk.f32.gmra.mxu1 %vm1137_vm1, %v6260_v42 }
 0x1e1   : > { %v5000_v37 = vpop.f32.mrf.mxu2  ;;  %v5002_v16 = vpop.f32.mrf.mxu3  ;;  %3565 = vmatmul.msk.f32.gmra.mxu2 %vm1137_vm1, %v6261_v17  ;;  %3597 = vmatmul.msk.f32.gmra.mxu3 %vm1137_vm1, %v6262_v18  ;;  %v6273_v17 = vld [vmem:[#allocation23_spill] sm:$0xff]  ;;  %v6274_v18 = vld [vmem:[#allocation24_spill] sm:$0xff] }
 0x1e2   : > { %v5008_v19 = vpop.f32.mrf.mxu0  ;;  %v5010_v20 = vpop.f32.mrf.mxu1 }
 0x1e3   : > { %3502 = vmatmul.msk.f32.gmra.mxu0 %vm1137_vm1, %v6263_v24  ;;  %3534 = vmatmul.msk.f32.gmra.mxu1 %vm1137_vm1, %v6264_v26 }
 0x1e9   : > { %v5016_v27 = vpop.f32.mrf.mxu2  ;;  %v5018_v28 = vpop.f32.mrf.mxu3  ;;  %3566 = vmatmul.msk.f32.gmra.mxu2 %vm1137_vm1, %v6265_v32  ;;  %3598 = vmatmul.msk.f32.gmra.mxu3 %vm1137_vm1, %v6266_v34  ;;  %v6275_v32 = vld [vmem:[#allocation25_spill] sm:$0xff]  ;;  %v6276_v34 = vld [vmem:[#allocation26_spill] sm:$0xff] }
 0x1ea   : > { %v911_v35 = vpop.f32.mrf.mxu0  ;;  %v976_v46 = vpop.f32.mrf.mxu1 }
 0x1eb   : > { %3503 = vmatmul.msk.f32.gmra.mxu0 %vm1137_vm1, %v6267_v45  ;;  %3535 = vmatmul.msk.f32.gmra.mxu1 %vm1137_vm1, %v6268_v12 }
 0x1f1   : > { %v5028_v13 = vpop.f32.mrf.mxu2  ;;  %v5030_v14 = vpop.f32.mrf.mxu3  ;;  %3567 = vmatmul.msk.f32.gmra.mxu2 %vm1137_vm1, %v6269_v22  ;;  %3599 = vmatmul.msk.f32.gmra.mxu3 %vm1137_vm1, %v6270_v23  ;;  %v6277_v22 = vld [vmem:[#allocation27_spill] sm:$0xff]  ;;  %v6278_v23 = vld [vmem:[#allocation28_spill] sm:$0xff] }
 0x1f2   : > { %v914_v29 = vpop.f32.mrf.mxu0  ;;  %v979_v30 = vpop.f32.mrf.mxu1 }
 0x1f3   : > { %3504 = vmatmul.msk.f32.gmra.mxu0 %vm1137_vm1, %v6271_v44  ;;  %3536 = vmatmul.msk.f32.gmra.mxu1 %vm1137_vm1, %v6272_v43 }
 0x1f9   : > { %v1044_v39 = vpop.f32.mrf.mxu2  ;;  %v1109_v42 = vpop.f32.mrf.mxu3  ;;  %3568 = vmatmul.msk.f32.gmra.mxu2 %vm1137_vm1, %v6273_v17  ;;  %3600 = vmatmul.msk.f32.gmra.mxu3 %vm1137_vm1, %v6274_v18  ;;  %v6279_v17 = vld [vmem:[#allocation29_spill] sm:$0xff]  ;;  %v6280_v18 = vld [vmem:[#allocation30_spill] sm:$0xff] }
 0x1fa   : > { %v917_v24 = vpop.f32.mrf.mxu0  ;;  %v982_v26 = vpop.f32.mrf.mxu1 }
 0x1fb   : > { %3505 = vmatmul.msk.f32.gmra.mxu0 %vm1137_vm1, %v6275_v32  ;;  %3537 = vmatmul.msk.f32.gmra.mxu1 %vm1137_vm1, %v6276_v34  ;;  %v6282_v34 = vld [vmem:[#allocation32_spill] sm:$0xff] }
 0x201   : > { %v1047_v45 = vpop.f32.mrf.mxu2  ;;  %v1112_v12 = vpop.f32.mrf.mxu3  ;;  %3569 = vmatmul.msk.f32.gmra.mxu2 %vm1137_vm1, %v6277_v22  ;;  %3601 = vmatmul.msk.f32.gmra.mxu3 %vm1137_vm1, %v6278_v23  ;;  %v6284_v23 = vld [vmem:[#allocation34_spill] sm:$0xff] }
 0x202   : > { %v920_v44 = vpop.f32.mrf.mxu0  ;;  %v985_v43 = vpop.f32.mrf.mxu1 }
 0x203   : > { %3506 = vmatmul.msk.f32.gmra.mxu0 %vm1137_vm1, %v6279_v17  ;;  %3538 = vmatmul.msk.f32.gmra.mxu1 %vm1137_vm1, %v6280_v18 }
 0x209   : > { %v1050_v32 = vpop.f32.mrf.mxu2  ;;  %v1115_v51 = vpop.f32.mrf.mxu3  ;;  %3570 = vmatmul.msk.f32.gmra.mxu2 %vm1137_vm1, %v6281_v47  ;;  %3602 = vmatmul.msk.f32.gmra.mxu3 %vm1137_vm1, %v6282_v34  ;;  %v6285_v47 = vld [vmem:[#allocation35_spill] sm:$0xff]  ;;  %v6286_v34 = vld [vmem:[#allocation36_spill] sm:$0xff] }
 0x20a   : > { %v923_v22 = vpop.f32.mrf.mxu0  ;;  %v988_v52 = vpop.f32.mrf.mxu1 }
 0x20b   : > { %3507 = vmatmul.msk.f32.gmra.mxu0 %vm1137_vm1, %v6283_v50  ;;  %3539 = vmatmul.msk.f32.gmra.mxu1 %vm1137_vm1, %v6284_v23  ;;  %v6287_v50 = vld [vmem:[#allocation37_spill] sm:$0xff] }
 0x20c   : > { %2358 = vmatpush.msra.mxu0 %v923_v22  ;;  %2423 = vmatpush.msra.mxu1 %v988_v52  ;;  %v6288_v52 = vld [vmem:[#allocation38_spill] sm:$0xff] }
 0x20d   : > { %v1125_v22 = vld [vmem:[%s6138_s4 + $0x20] sm:$0xff] }
 0x20e   : > { %2359 = vmatpush.msra.mxu0 %v920_v44  ;;  %2424 = vmatpush.msra.mxu1 %v985_v43 }
 0x210   : > { %2360 = vmatpush.msra.mxu0 %v917_v24  ;;  %2425 = vmatpush.msra.mxu1 %v982_v26 }
 0x211   : > { %v1053_v17 = vpop.f32.mrf.mxu2  ;;  %v1118_v18 = vpop.f32.mrf.mxu3  ;;  %3571 = vmatmul.msk.f32.gmra.mxu2 %vm1137_vm1, %v6285_v47  ;;  %3603 = vmatmul.msk.f32.gmra.mxu3 %vm1137_vm1, %v6286_v34 }
 0x212   : > { %2361 = vmatpush.msra.mxu0 %v914_v29  ;;  %2426 = vmatpush.msra.mxu1 %v979_v30  ;;  %v6289_v29 = vld [vmem:[#allocation39_spill] sm:$0xff]  ;;  %v6290_v30 = vld [vmem:[#allocation40_spill] sm:$0xff] }
 0x213   : > { %2488 = vmatpush.msra.mxu2 %v1053_v17  ;;  %2553 = vmatpush.msra.mxu3 %v1118_v18 }
 0x214   : > { %3508 = vmatmul.msk.f32.gmra.mxu0 %vm1137_vm1, %v6287_v50  ;;  %3540 = vmatmul.msk.f32.gmra.mxu1 %vm1137_vm1, %v6288_v52 }
 0x215   : > { %2362 = vmatpush.msra.mxu0 %v911_v35  ;;  %2427 = vmatpush.msra.mxu1 %v976_v46 }
 0x216   : > { %2489 = vmatpush.msra.mxu2 %v1050_v32  ;;  %2554 = vmatpush.msra.mxu3 %v1115_v51  ;;  %v6291_v51 = vld [vmem:[#allocation41_spill] sm:$0xff] }
 0x217   : > { %2363 = vmatpush.msra.mxu0 %v5008_v19  ;;  %2428 = vmatpush.msra.mxu1 %v5010_v20  ;;  %v1124_v32 = vld [vmem:[%s6138_s4 + $0x18] sm:$0xff] }
 0x218   : > { %2490 = vmatpush.msra.mxu2 %v1047_v45  ;;  %2555 = vmatpush.msra.mxu3 %v1112_v12 }
 0x219   : > { %2364 = vmatpush.msra.mxu0 %v4992_v40  ;;  %2429 = vmatpush.msra.mxu1 %v4994_v41  ;;  %v6292_v40 = vld [vmem:[#allocation42_spill] sm:$0xff] }
 0x21a   : > { %2491 = vmatpush.msra.mxu2 %v1044_v39  ;;  %2556 = vmatpush.msra.mxu3 %v1109_v42 }
 0x21b   : > { %3572 = vmatmul.msk.f32.gmra.mxu2 %vm1137_vm1, %v6289_v29  ;;  %3604 = vmatmul.msk.f32.gmra.mxu3 %vm1137_vm1, %v6290_v30 }
 0x21c   : > { %2365 = vmatpush.msra.mxu0 %v4976_v48  ;;  %2430 = vmatpush.msra.mxu1 %v4978_v25  ;;  %v1122_v48 = vld [vmem:[%s6138_s4 + $0x8] sm:$0xff] }
 0x21d   : > { %2492 = vmatpush.msra.mxu2 %v5028_v13  ;;  %2557 = vmatpush.msra.mxu3 %v5030_v14  ;;  %v6317_v25 = vld [vmem:[#allocation63_spill] sm:$0xff] }
 0x21e   : > { %3509 = vmatmul.msk.f32.gmra.mxu0 %vm1137_vm1, %v6291_v51  ;;  %3541 = vmatmul.msk.f32.gmra.mxu1 %vm1137_vm1, %v6292_v40 }
 0x21f   : > { %2366 = vmatpush.msra.mxu0 %v4956_v10  ;;  %2431 = vmatpush.msra.mxu1 %v4958_v11  ;;  %v6293_v10 = vld [vmem:[#allocation43_spill] sm:$0xff]  ;;  %v6294_v11 = vld [vmem:[#allocation44_spill] sm:$0xff] }
 0x220   : > { %2493 = vmatpush.msra.mxu2 %v5016_v27  ;;  %2558 = vmatpush.msra.mxu3 %v5018_v28  ;;  %v1123_v27 = vld [vmem:[%s6138_s4 + $0x10] sm:$0xff] }
 0x221   : > { %2367 = vmatpush.msra.mxu0 %v4932_v6  ;;  %2432 = vmatpush.msra.mxu1 %v4934_v7  ;;  %v6314_v6 = vld [vmem:[#allocation60_spill] sm:$0xff] }
 0x222   : > { %2494 = vmatpush.msra.mxu2 %v5000_v37  ;;  %2559 = vmatpush.msra.mxu3 %v5002_v16 }
 0x223   : > { %2368 = vmatpush.msra.mxu0 %v4908_v2  ;;  %2433 = vmatpush.msra.mxu1 %v4910_v3  ;;  %v6295_v2 = vld [vmem:[#allocation45_spill] sm:$0xff]  ;;  %v6296_v3 = vld [vmem:[#allocation46_spill] sm:$0xff] }
 0x224   : > { %2495 = vmatpush.msra.mxu2 %v4984_v31  ;;  %2560 = vmatpush.msra.mxu3 %v4986_v38  ;;  %v6318_v31 = vld [vmem:[#allocation64_spill] sm:$0xff] }
 0x225   : > { %3573 = vmatmul.msk.f32.gmra.mxu2 %vm1137_vm1, %v6293_v10  ;;  %3605 = vmatmul.msk.f32.gmra.mxu3 %vm1137_vm1, %v6294_v11  ;;  %v1126_v11 = vld [vmem:[%s6138_s4 + $0x28] sm:$0xff] }
 0x226   : > { %2369 = vmatpush.msra.mxu0 %v4884_v62  ;;  %2434 = vmatpush.msra.mxu1 %v4886_v63  ;;  %v6307_v62 = vld [vmem:[#allocation53_spill] sm:$0xff]  ;;  %v6310_v63 = vld [vmem:[#allocation56_spill] sm:$0xff] }
 0x227   : > { %2496 = vmatpush.msra.mxu2 %v4968_v15  ;;  %2561 = vmatpush.msra.mxu3 %v4970_v21  ;;  %v6315_v15 = vld [vmem:[#allocation61_spill] sm:$0xff]  ;;  %v6316_v21 = vld [vmem:[#allocation62_spill] sm:$0xff] }
 0x228   : > { %3510 = vmatmul.msk.f32.gmra.mxu0 %vm1137_vm1, %v6295_v2  ;;  %3542 = vmatmul.msk.f32.gmra.mxu1 %vm1137_vm1, %v6296_v3 }
 0x229   : > { %2370 = vmatpush.msra.mxu0 %v4860_v58  ;;  %2435 = vmatpush.msra.mxu1 %v4862_v59  ;;  %v6297_v58 = vld [vmem:[#allocation47_spill] sm:$0xff]  ;;  %v6298_v59 = vld [vmem:[#allocation48_spill] sm:$0xff] }
 0x22a   : > { %2497 = vmatpush.msra.mxu2 %v4948_v8  ;;  %2562 = vmatpush.msra.mxu3 %v4950_v9 }
 0x22b   : > { %2371 = vmatpush.msra.mxu0 %v4836_v53  ;;  %2436 = vmatpush.msra.mxu1 %v4838_v54  ;;  %v6301_v53 = vld [vmem:[#allocation69_spill] sm:$0xff]  ;;  %v6302_v54 = vld [vmem:[#allocation70_spill] sm:$0xff] }
 0x22c   : > { %2498 = vmatpush.msra.mxu2 %v4924_v4  ;;  %2563 = vmatpush.msra.mxu3 %v4926_v5  ;;  %v1121_v4 = vld [vmem:[%s6138_s4] sm:$0xff]  ;;  %v6313_v5 = vld [vmem:[#allocation59_spill] sm:$0xff] }
 0x22d   : > { %2372 = vmatpush.msra.mxu0 %v4816_v36  ;;  %2437 = vmatpush.msra.mxu1 %v4818_v55  ;;  %v6299_v36 = vld [vmem:[#allocation49_spill] sm:$0xff]  ;;  %v6300_v55 = vld [vmem:[#allocation50_spill] sm:$0xff] }
 0x22e   : > { %2499 = vmatpush.msra.mxu2 %v4900_v0  ;;  %2564 = vmatpush.msra.mxu3 %v4902_v1  ;;  %v6311_v0 = vld [vmem:[#allocation57_spill] sm:$0xff]  ;;  %v6312_v1 = vld [vmem:[#allocation58_spill] sm:$0xff] }
 0x22f   : > { %3574 = vmatmul.msk.f32.gmra.mxu2 %vm1137_vm1, %v6297_v58  ;;  %3606 = vmatmul.msk.f32.gmra.mxu3 %vm1137_vm1, %v6298_v59 }
 0x230   : > { %2373 = vmatpush.msra.mxu0 %v4800_v33  ;;  %2438 = vmatpush.msra.mxu1 %v4802_v49  ;;  %v6303_v33 = vld [vmem:[#allocation67_spill] sm:$0xff]  ;;  %v6304_v49 = vld [vmem:[#allocation68_spill] sm:$0xff] }
 0x231   : > { %2500 = vmatpush.msra.mxu2 %v4876_v60  ;;  %2565 = vmatpush.msra.mxu3 %v4878_v61  ;;  %v6305_v60 = vld [vmem:[#allocation51_spill] sm:$0xff]  ;;  %v6306_v61 = vld [vmem:[#allocation52_spill] sm:$0xff] }
 0x232   : > { %3511 = vmatmul.msk.f32.gmra.mxu0 %vm1137_vm1, %v6299_v36  ;;  %3543 = vmatmul.msk.f32.gmra.mxu1 %vm1137_vm1, %v6300_v55 }
 0x233   : > { %2501 = vmatpush.msra.mxu2 %v4852_v56  ;;  %2566 = vmatpush.msra.mxu3 %v4854_v57  ;;  %v6308_v56 = vld [vmem:[#allocation54_spill] sm:$0xff]  ;;  %v6309_v57 = vld [vmem:[#allocation55_spill] sm:$0xff] }
 0x235   : > { %2502 = vmatpush.msra.mxu2 %v6301_v53  ;;  %2567 = vmatpush.msra.mxu3 %v6302_v54 }
 0x237   : > { %2503 = vmatpush.msra.mxu2 %v6303_v33  ;;  %2568 = vmatpush.msra.mxu3 %v6304_v49 }
 0x238   : > { %3575 = vmatmul.msk.f32.gmra.mxu2 %vm1137_vm1, %v6305_v60  ;;  %3607 = vmatmul.msk.f32.gmra.mxu3 %vm1137_vm1, %v6306_v61 }
 0x23a   : > { %3512 = vmatmul.msk.f32.gmra.mxu0 %vm1137_vm1, %v6307_v62  ;;  %3544 = vmatmul.msk.f32.gmra.mxu1 %vm1137_vm1, %v6308_v56  ;;  %v1127_v62 = vld [vmem:[%s6138_s4 + $0x30] sm:$0xff] }
 0x240   : > { %3576 = vmatmul.msk.f32.gmra.mxu2 %vm1137_vm1, %v6309_v57  ;;  %3608 = vmatmul.msk.f32.gmra.mxu3 %vm1137_vm1, %v6310_v63 }
 0x242   : > { %3513 = vmatmul.msk.f32.gmra.mxu0 %vm1137_vm1, %v6311_v0  ;;  %3545 = vmatmul.msk.f32.gmra.mxu1 %vm1137_vm1, %v6312_v1 }
 0x248   : > { %3577 = vmatmul.msk.f32.gmra.mxu2 %vm1137_vm1, %v6313_v5  ;;  %3609 = vmatmul.msk.f32.gmra.mxu3 %vm1137_vm1, %v6314_v6  ;;  %v1251_v7 = vpop.f32.mrf.mxu0  ;;  %v1412_v8 = vpop.f32.mrf.mxu1 }
 0x249   : > { %v5165_v9 = vadd.f32 %v1251_v7, %v1121_v4  ;;  %v5181_v16 = vadd.f32 %v1412_v8, %v1121_v4 }
 0x24a   : > { %3514 = vmatmul.msk.f32.gmra.mxu0 %vm1137_vm1, %v6315_v15  ;;  %3546 = vmatmul.msk.f32.gmra.mxu1 %vm1137_vm1, %v6316_v21 }
 0x24b   : > { %1782 = vmax.xlane.f32.xlu1 %v5165_v9 }
 0x250   : > { %3578 = vmatmul.msk.f32.gmra.mxu2 %vm1137_vm1, %v6317_v25  ;;  %3610 = vmatmul.msk.f32.gmra.mxu3 %vm1137_vm1, %v6318_v31  ;;  %v1254_v38 = vpop.f32.mrf.mxu0  ;;  %v1415_v41 = vpop.f32.mrf.mxu1 }
 0x251   : > { %v5179_v37 = vadd.f32 %v1254_v38, %v1122_v48  ;;  %v5192_v14 = vadd.f32 %v1415_v41, %v1122_v48 }
 0x253   : > { %1784 = vmax.xlane.f32.xlu0 %v5179_v37  ;;  %1814 = vmax.xlane.f32.xlu1 %v5181_v16 }
 0x254   : > { %v1573_v19 = vpop.f32.mrf.mxu2  ;;  %v1734_v20 = vpop.f32.mrf.mxu3 }
 0x255   : > { %v5190_v13 = vadd.f32 %v1573_v19, %v1121_v4  ;;  %v5199_v45 = vadd.f32 %v1734_v20, %v1121_v4  ;;  %v1128_v4 = vld [vmem:[%s6138_s4 + $0x38] sm:$0xff]  ;;  %v1129_v19 = vld [vmem:[%s6138_s4 + $0x40] sm:$0xff] }
 0x258   : > { %v1418_v28 = vpop.f32.mrf.mxu1  ;;  %v1257_v35 = vpop.f32.mrf.mxu0 }
 0x259   : > { %v5188_v46 = vadd.f32 %v1418_v28, %v1123_v27  ;;  %v5201_v12 = vadd.f32 %v1257_v35, %v1123_v27 }
 0x25b   : > { %1818 = vmax.xlane.f32.xlu2 %v5188_v46  ;;  %1846 = vmax.xlane.f32.xlu0 %v5190_v13 }
 0x25c   : > { %1816 = vmax.xlane.f32.xlu1 %v5192_v14  ;;  %v1737_v39 = vpop.f32.mrf.mxu3  ;;  %v1576_v42 = vpop.f32.mrf.mxu2 }
 0x25d   : > { %v5197_v26 = vadd.f32 %v1576_v42, %v1122_v48  ;;  %v5212_v17 = vadd.f32 %v1737_v39, %v1122_v48 }
 0x260   : > { %v1421_v24 = vpop.f32.mrf.mxu1  ;;  %v1260_v44 = vpop.f32.mrf.mxu0 }
 0x261   : > { %v5214_v18 = vadd.f32 %v1421_v24, %v1124_v32  ;;  %v5221_v29 = vadd.f32 %v1260_v44, %v1124_v32  ;;  %v1130_v24 = vld [vmem:[%s6138_s4 + $0x48] sm:$0xff] }
 0x263   : > { %1848 = vmax.xlane.f32.xlu2 %v5197_v26  ;;  %1878 = vmax.xlane.f32.xlu0 %v5199_v45 }
 0x264   : > { %1786 = vmax.xlane.f32.xlu1 %v5201_v12  ;;  %v1740_v43 = vpop.f32.mrf.mxu3  ;;  %v1579_v34 = vpop.f32.mrf.mxu2 }
 0x265   : > { %v5223_v30 = vadd.f32 %v1740_v43, %v1123_v27  ;;  %v5233_v2 = vadd.f32 %v1579_v34, %v1123_v27 }
 0x268   : > { %v1424_v23 = vpop.f32.mrf.mxu1  ;;  %v1263_v50 = vpop.f32.mrf.mxu0 }
 0x269   : > { %v5216_v47 = vadd.f32 %v1424_v23, %v1125_v22  ;;  %v5235_v3 = vadd.f32 %v1263_v50, %v1125_v22 }
 0x26b   : > { %1880 = vmax.xlane.f32.xlu2 %v5212_v17  ;;  %1820 = vmax.xlane.f32.xlu0 %v5214_v18 }
 0x26c   : > { %1822 = vmax.xlane.f32.xlu1 %v5216_v47  ;;  %v1743_v52 = vpop.f32.mrf.mxu3  ;;  %v1582_v40 = vpop.f32.mrf.mxu2 }
 0x26d   : > { %v5225_v51 = vadd.f32 %v1743_v52, %v1124_v32  ;;  %v5244_v54 = vadd.f32 %v1582_v40, %v1124_v32  ;;  %v1131_v52 = vld [vmem:[%s6138_s4 + $0x50] sm:$0xff] }
 0x270   : > { %v1266_v10 = vpop.f32.mrf.mxu0  ;;  %v1427_v59 = vpop.f32.mrf.mxu1 }
 0x271   : > { %v5237_v58 = vadd.f32 %v1266_v10, %v1126_v11  ;;  %v5242_v53 = vadd.f32 %v1427_v59, %v1126_v11 }
 0x273   : > { %1788 = vmax.xlane.f32.xlu2 %v5221_v29  ;;  %1882 = vmax.xlane.f32.xlu0 %v5223_v30 }
 0x274   : > { %1884 = vmax.xlane.f32.xlu1 %v5225_v51  ;;  %v1746_v36 = vpop.f32.mrf.mxu3  ;;  %v1585_v55 = vpop.f32.mrf.mxu2 }
 0x275   : > { %v5246_v33 = vadd.f32 %v1585_v55, %v1125_v22  ;;  %v5254_v56 = vadd.f32 %v1746_v36, %v1125_v22 }
 0x278   : > { %v1269_v49 = vpop.f32.mrf.mxu0  ;;  %v1430_v60 = vpop.f32.mrf.mxu1 }
 0x279   : > { %v5258_v63 = vadd.f32 %v1269_v49, %v1127_v62  ;;  %v5266_v6 = vadd.f32 %v1430_v60, %v1127_v62 }
 0x27b   : > { %1850 = vmax.xlane.f32.xlu2 %v5233_v2  ;;  %1790 = vmax.xlane.f32.xlu0 %v5235_v3 }
 0x27c   : > { %1792 = vmax.xlane.f32.xlu1 %v5237_v58  ;;  %v1749_v61 = vpop.f32.mrf.mxu3  ;;  %v1588_v0 = vpop.f32.mrf.mxu2 }
 0x27d   : > { %v5256_v57 = vadd.f32 %v1749_v61, %v1126_v11  ;;  %v5275_v48 = vadd.f32 %v1588_v0, %v1126_v11 }
 0x280   : > { %v1272_v1 = vpop.f32.mrf.mxu0  ;;  %v1433_v5 = vpop.f32.mrf.mxu1 }
 0x281   : > { %v5268_v7 = vadd.f32 %v1272_v1, %v1128_v4  ;;  %v5270_v8 = vadd.f32 %v1433_v5, %v1128_v4  ;;  %v1132_v5 = vld [vmem:[%s6138_s4 + $0x58] sm:$0xff] }
 0x283   : > { %1824 = vmax.xlane.f32.xlu2 %v5242_v53  ;;  %1852 = vmax.xlane.f32.xlu0 %v5244_v54 }
 0x284   : > { %1854 = vmax.xlane.f32.xlu1 %v5246_v33  ;;  %v1591_v15 = vpop.f32.mrf.mxu2  ;;  %v1752_v21 = vpop.f32.mrf.mxu3 }
 0x285   : > { %v5277_v25 = vadd.f32 %v1591_v15, %v1127_v62  ;;  %v5279_v31 = vadd.f32 %v1752_v21, %v1127_v62 }
 0x288   : > { %v1436_v38 = vpop.f32.mrf.mxu1  ;;  %v1275_v41 = vpop.f32.mrf.mxu0 }
 0x289   : > { %v5287_v28 = vadd.f32 %v1275_v41, %v1129_v19  ;;  %v5289_v35 = vadd.f32 %v1436_v38, %v1129_v19 }
 0x28b   : > { %1886 = vmax.xlane.f32.xlu2 %v5254_v56  ;;  %1888 = vmax.xlane.f32.xlu0 %v5256_v57 }
 0x28c   : > { %1794 = vmax.xlane.f32.xlu1 %v5258_v63  ;;  %v1594_v20 = vpop.f32.mrf.mxu2  ;;  %v1755_v27 = vpop.f32.mrf.mxu3 }
 0x28d   : > { %v5291_v39 = vadd.f32 %v1755_v27, %v1128_v4  ;;  %v5301_v22 = vadd.f32 %v1594_v20, %v1128_v4 }
 0x28f   : > { %6319 = vst [vmem:[#allocation2_spill] sm:$0xff] %v5291_v39 }
 0x291   : > { %v1439_v42 = vpop.f32.mrf.mxu1  ;;  %v1278_v44 = vpop.f32.mrf.mxu0 }
 0x292   : > { %v5299_v32 = vadd.f32 %v1439_v42, %v1130_v24  ;;  %v5303_v23 = vadd.f32 %v1278_v44, %v1130_v24  ;;  %v1133_v42 = vld [vmem:[%s6138_s4 + $0x60] sm:$0xff] }
 0x293   : > { %1826 = vmax.xlane.f32.xlu2 %v5266_v6  ;;  %1796 = vmax.xlane.f32.xlu0 %v5268_v7 }
 0x294   : > { %1828 = vmax.xlane.f32.xlu1 %v5270_v8  ;;  %v1597_v43 = vpop.f32.mrf.mxu2  ;;  %6320 = vst [vmem:[#allocation65_spill] sm:$0xff] %v5299_v32  ;;  %v1758_v34 = vpop.f32.mrf.mxu3 }
 0x295   : > { %v5311_v40 = vadd.f32 %v1597_v43, %v1129_v19  ;;  %v5313_v10 = vadd.f32 %v1758_v34, %v1129_v19 }
 0x297   : > { %6321 = vst [vmem:[#allocation66_spill] sm:$0xff] %v5311_v40 }
 0x298   : > { %6322 = vst [vmem:[#allocation3_spill] sm:$0xff] %v5313_v10 }
 0x29b   : > { %1856 = vmax.xlane.f32.xlu2 %v5275_v48  ;;  %1858 = vmax.xlane.f32.xlu0 %v5277_v25  ;;  %v1442_v50 = vpop.f32.mrf.mxu1  ;;  %v1281_v59 = vpop.f32.mrf.mxu0 }
 0x29c   : > { %1890 = vmax.xlane.f32.xlu1 %v5279_v31  ;;  %v5315_v11 = vadd.f32 %v1442_v50, %v1131_v52  ;;  %v5322_v60 = vadd.f32 %v1281_v59, %v1131_v52 }
 0x29e   : > { %6323 = vst [vmem:[#allocation4_spill] sm:$0xff] %v5315_v11  ;;  %v1600_v36 = vpop.f32.mrf.mxu2  ;;  %v1761_v55 = vpop.f32.mrf.mxu3 }
 0x29f   : > { %v5320_v49 = vadd.f32 %v1761_v55, %v1130_v24  ;;  %6325 = vst [vmem:[#allocation6_spill] sm:$0xff] %v5322_v60  ;;  %v5324_v61 = vadd.f32 %v1600_v36, %v1130_v24 }
 0x2a1   : > { %6324 = vst [vmem:[#allocation5_spill] sm:$0xff] %v5320_v49 }
 0x2a2   : > { %6326 = vst [vmem:[#allocation7_spill] sm:$0xff] %v5324_v61 }
 0x2a3   : > { %1798 = vmax.xlane.f32.xlu2 %v5287_v28  ;;  %1830 = vmax.xlane.f32.xlu0 %v5289_v35 }
 0x2a4   : > { %1892 = vmax.xlane.f32.xlu1 %v5291_v39 }
 0x2a5   : > { %v1445_v62 = vpop.f32.mrf.mxu1  ;;  %v1284_v0 = vpop.f32.mrf.mxu0 }
 0x2a6   : > { %v5334_v21 = vadd.f32 %v1284_v0, %v1132_v5  ;;  %v5336_v38 = vadd.f32 %v1445_v62, %v1132_v5 }
 0x2a8   : > { %v1603_v1 = vpop.f32.mrf.mxu2  ;;  %v1764_v15 = vpop.f32.mrf.mxu3  ;;  %6327 = vst [vmem:[#allocation8_spill] sm:$0xff] %v5334_v21 }
 0x2a9   : > { %6328 = vst [vmem:[#allocation9_spill] sm:$0xff] %v5336_v38  ;;  %v5338_v41 = vadd.f32 %v1764_v15, %v1131_v52  ;;  %v5352_v34 = vadd.f32 %v1603_v1, %v1131_v52  ;;  %v1134_v52 = vld [vmem:[%s6138_s4 + $0x68] sm:$0xff] }
 0x2ab   : > { %1832 = vmax.xlane.f32.xlu2 %v5299_v32  ;;  %1860 = vmax.xlane.f32.xlu0 %v5301_v22  ;;  %6329 = vst [vmem:[#allocation10_spill] sm:$0xff] %v5338_v41 }
 0x2ac   : > { %1800 = vmax.xlane.f32.xlu1 %v5303_v23  ;;  %6331 = vst [vmem:[#allocation12_spill] sm:$0xff] %v5352_v34 }
 0x2af   : > { %v1448_v19 = vpop.f32.mrf.mxu1  ;;  %v1287_v24 = vpop.f32.mrf.mxu0 }
 0x2b0   : > { %v5350_v43 = vadd.f32 %v1448_v19, %v1133_v42  ;;  %v5354_v50 = vadd.f32 %v1287_v24, %v1133_v42 }
 0x2b2   : > { %v1606_v44 = vpop.f32.mrf.mxu2  ;;  %6330 = vst [vmem:[#allocation11_spill] sm:$0xff] %v5350_v43  ;;  %v1767_v59 = vpop.f32.mrf.mxu3 }
 0x2b3   : > { %1862 = vmax.xlane.f32.xlu2 %v5311_v40  ;;  %1894 = vmax.xlane.f32.xlu0 %v5313_v10  ;;  %6332 = vst [vmem:[#allocation13_spill] sm:$0xff] %v5354_v50  ;;  %v5368_v15 = vadd.f32 %v1606_v44, %v1132_v5  ;;  %v5370_v19 = vadd.f32 %v1767_v59, %v1132_v5 }
 0x2b4   : > { %1834 = vmax.xlane.f32.xlu1 %v5315_v11 }
 0x2b5   : > { %6333 = vst [vmem:[#allocation14_spill] sm:$0xff] %v5368_v15 }
 0x2b6   : > { %6334 = vst [vmem:[#allocation15_spill] sm:$0xff] %v5370_v19 }
 0x2b7   : > { %v1451_v62 = vpop.f32.mrf.mxu1 }
 0x2b8   : > { %v5372_v24 = vadd.f32 %v1451_v62, %v1134_v52 }
 0x2ba   : > { %6335 = vst [vmem:[#allocation16_spill] sm:$0xff] %v5372_v24 }
 0x2bb   : > { %1896 = vmax.xlane.f32.xlu2 %v5320_v49  ;;  %1802 = vmax.xlane.f32.xlu0 %v5322_v60  ;;  %v1609_v1 = vpop.f32.mrf.mxu2 }
 0x2bc   : > { %1864 = vmax.xlane.f32.xlu1 %v5324_v61  ;;  %v5385_v5 = vadd.f32 %v1609_v1, %v1133_v42 }
 0x2be   : > { %v5329_v4 = vpop.xlane.xlu1 %1782  ;;  %6338 = vst [vmem:[#allocation19_spill] sm:$0xff] %v5385_v5 }
 0x2bf   : > { %v1454_v59 = vpop.f32.mrf.mxu1 }
 0x2c3   : > { %1804 = vmax.xlane.f32.xlu2 %v5334_v21  ;;  %1836 = vmax.xlane.f32.xlu0 %v5336_v38  ;;  %v1290_v21 = vpop.f32.mrf.mxu0  ;;  %v1612_v62 = vpop.f32.mrf.mxu2 }
 0x2c4   : > { %1898 = vmax.xlane.f32.xlu1 %v5338_v41  ;;  %v5383_v44 = vadd.f32 %v1290_v21, %v1134_v52  ;;  %v1135_v21 = vld [vmem:[%s6138_s4 + $0x70] sm:$0xff] }
 0x2c5   : > { %v5401_v61 = vadd.f32 %v1454_v59, %v1135_v21 }
 0x2c6   : > { %v5343_v20 = vpop.xlane.xlu0 %1784  ;;  %v5345_v27 = vpop.xlane.xlu1 %1814  ;;  %6337 = vst [vmem:[#allocation18_spill] sm:$0xff] %v5383_v44 }
 0x2c7   : > { %6340 = vst [vmem:[#allocation21_spill] sm:$0xff] %v5401_v61  ;;  %v1926_v10 = vsub.f32 %v5181_v16, %v5345_v27 }
 0x2cb   : > { %1838 = vmax.xlane.f32.xlu2 %v5350_v43  ;;  %1866 = vmax.xlane.f32.xlu0 %v5352_v34 }
 0x2cc   : > { %1806 = vmax.xlane.f32.xlu1 %v5354_v50  ;;  %v1770_v50 = vpop.f32.mrf.mxu3 }
 0x2cd   : > { %v5381_v38 = vadd.f32 %v1770_v50, %v1133_v42 }
 0x2ce   : > { %v5359_v36 = vpop.xlane.xlu2 %1818  ;;  %v5361_v55 = vpop.xlane.xlu0 %1846 }
 0x2cf   : > { %v5363_v0 = vpop.xlane.xlu1 %1816  ;;  %6336 = vst [vmem:[#allocation17_spill] sm:$0xff] %v5381_v38 }
 0x2d3   : > { %1868 = vmax.xlane.f32.xlu2 %v5368_v15  ;;  %1900 = vmax.xlane.f32.xlu0 %v5370_v19 }
 0x2d4   : > { %1840 = vmax.xlane.f32.xlu1 %v5372_v24  ;;  %v1293_v24 = vpop.f32.mrf.mxu0  ;;  %v1773_v50 = vpop.f32.mrf.mxu3 }
 0x2d5   : > { %v5399_v1 = vadd.f32 %v1293_v24, %v1135_v21  ;;  %v1136_v24 = vld [vmem:[%s6138_s4 + $0x78] sm:$0xff] }
 0x2d6   : > { %v5377_v34 = vpop.xlane.xlu2 %1848  ;;  %v1879_v41 = vpop.xlane.xlu0 %1878 }
 0x2d7   : > { %v5379_v43 = vpop.xlane.xlu1 %1786  ;;  %6339 = vst [vmem:[#allocation20_spill] sm:$0xff] %v5399_v1 }
 0x2db   : > { %1902 = vmax.xlane.f32.xlu2 %v5381_v38  ;;  %1808 = vmax.xlane.f32.xlu0 %v5383_v44  ;;  %v5403_v38 = vadd.f32 %v1773_v50, %v1134_v52  ;;  %v1457_v44 = vpop.f32.mrf.mxu1 }
 0x2dc   : > { %1870 = vmax.xlane.f32.xlu1 %v5385_v5  ;;  %v1615_v5 = vpop.f32.mrf.mxu2  ;;  %v1296_v59 = vpop.f32.mrf.mxu0  ;;  %v5417_v50 = vadd.f32 %v1457_v44, %v1136_v24  ;;  %v1911_v44 = vsub.f32 %v5179_v37, %v5343_v20  ;;  %v1958_v37 = vsub.f32 %v5199_v45, %v1879_v41  ;;  %v1927_v45 = vsub.f32 %v5192_v14, %v5363_v0 }
 0x2dd   : > { %6341 = vst [vmem:[#allocation22_spill] sm:$0xff] %v5403_v38  ;;  %v1776_v40 = vpop.f32.mrf.mxu3 }
 0x2de   : > { %v5390_v15 = vpop.xlane.xlu2 %1880  ;;  %v5392_v19 = vpop.xlane.xlu0 %1820  ;;  %6342 = vst [vmem:[#allocation23_spill] sm:$0xff] %v5417_v50  ;;  %v5440_v32 = vadd.f32 %v1776_v40, %v1135_v21  ;;  %v2070_v20 = vmul.f32 1.442695, %v1958_v37  ;;  %v2008_v14 = vmul.f32 1.442695, %v1927_v45 }
 0x2df   : > { %v5397_v42 = vpop.xlane.xlu1 %1822 }
 0x2e3   : > { %1810 = vmax.xlane.f32.xlu2 %v5399_v1  ;;  %1842 = vmax.xlane.f32.xlu0 %v5401_v61  ;;  %v5419_v1 = vadd.f32 %v1612_v62, %v1134_v52  ;;  %v5421_v61 = vadd.f32 %v1296_v59, %v1136_v24 }
 0x2e4   : > { %1904 = vmax.xlane.f32.xlu1 %v5403_v38  ;;  %v1910_v38 = vsub.f32 %v5165_v9, %v5329_v4  ;;  %v1618_v39 = vpop.f32.mrf.mxu2  ;;  %v2006_v4 = vmul.f32 1.442695, %v1926_v10  ;;  %v1928_v10 = vsub.f32 %v5188_v46, %v5359_v36  ;;  %v1912_v46 = vsub.f32 %v5201_v12, %v5379_v43 }
 0x2e5   : > { %6343 = vst [vmem:[#allocation24_spill] sm:$0xff] %v5419_v1  ;;  %v5442_v16 = vadd.f32 %v1618_v39, %v1136_v24  ;;  %v1779_v41 = vpop.f32.mrf.mxu3  ;;  %v1943_v36 = vsub.f32 %v5197_v26, %v5377_v34  ;;  %v1942_v43 = vsub.f32 %v5190_v13, %v5361_v55  ;;  %v1929_v26 = vsub.f32 %v5214_v18, %v5392_v19 }
 0x2e6   : > { %v5408_v60 = vpop.xlane.xlu2 %1788  ;;  %v5410_v49 = vpop.xlane.xlu0 %1882  ;;  %v1974_v59 = vmul.f32 1.442695, %v1910_v38  ;;  %v1959_v19 = vsub.f32 %v5212_v17, %v5390_v15 }
 0x2e7   : > { %v5415_v11 = vpop.xlane.xlu1 %1884  ;;  %v2040_v37 = vmul.f32 1.442695, %v1943_v36  ;;  %v1960_v34 = vsub.f32 %v5223_v30, %v5410_v49  ;;  %v2038_v13 = vmul.f32 1.442695, %v1942_v43  ;;  %v2012_v45 = vmul.f32 1.442695, %v1929_v26 }
 0x2e8   : > { %3686 = vpow2.f32 %v1974_v59 }
 0x2e9   : > { %3688 = vpow2.f32 %v2006_v4  ;;  %v1978_v4 = vmul.f32 1.442695, %v1912_v46 }
 0x2eb   : > { %1844 = vmax.xlane.f32.xlu2 %v5417_v50  ;;  %1872 = vmax.xlane.f32.xlu0 %v5419_v1  ;;  %v1976_v50 = vmul.f32 1.442695, %v1911_v44  ;;  %v5438_v1 = vadd.f32 %v1615_v5, %v1135_v21  ;;  %v2010_v5 = vmul.f32 1.442695, %v1928_v10  ;;  %v5477_v10 = vadd.f32 %v1779_v41, %v1136_v24 }
 0x2ec   : > { %1812 = vmax.xlane.f32.xlu1 %v5421_v61  ;;  %v2074_v41 = vmul.f32 1.442695, %v1960_v34 }
 0x2ed   : > { %3690 = vpow2.f32 %v1976_v50 }
 0x2ee   : > { %v5432_v52 = vpop.xlane.xlu2 %1850  ;;  %v5434_v62 = vpop.xlane.xlu0 %1790  ;;  %3692 = vpow2.f32 %v2070_v20 }
 0x2ef   : > { %v5436_v9 = vpop.xlane.xlu1 %1792  ;;  %v5456_v27 = vpop.eup %3686  ;;  %3694 = vpow2.f32 %v2010_v5  ;;  %v1944_v30 = vsub.f32 %v5233_v2, %v5432_v52  ;;  %v1914_v49 = vsub.f32 %v5235_v3, %v5434_v62  ;;  %v1913_v52 = vsub.f32 %v5221_v29, %v5408_v60 }
 0x2f0   : > { %v5458_v21 = vpop.eup %3688  ;;  %3696 = vpow2.f32 %v2008_v14  ;;  %v1961_v3 = vsub.f32 %v5225_v51, %v5415_v11  ;;  %v1930_v11 = vsub.f32 %v5216_v47, %v5397_v42 }
 0x2f1   : > { %3698 = vpow2.f32 %v1978_v4  ;;  %v2042_v15 = vmul.f32 1.442695, %v1944_v30  ;;  %v1982_v26 = vmul.f32 1.442695, %v1914_v49 }
 0x2f2   : > { %3700 = vpow2.f32 %v2040_v37  ;;  %v2072_v37 = vmul.f32 1.442695, %v1959_v19  ;;  %v2076_v60 = vmul.f32 1.442695, %v1961_v3  ;;  %v2014_v47 = vmul.f32 1.442695, %v1930_v11 }
 0x2f3   : > { %1874 = vmax.xlane.f32.xlu2 %v5438_v1  ;;  %1906 = vmax.xlane.f32.xlu0 %v5440_v32  ;;  %v5460_v44 = vpop.eup %3690  ;;  %3702 = vpow2.f32 %v2038_v13 }
 0x2f4   : > { %1876 = vmax.xlane.f32.xlu1 %v5442_v16  ;;  %v5479_v20 = vpop.eup %3692  ;;  %3704 = vpow2.f32 %v2012_v45 }
 0x2f5   : > { %v5481_v12 = vpop.eup %3694  ;;  %3706 = vpow2.f32 %v2074_v41  ;;  %v1980_v41 = vmul.f32 1.442695, %v1913_v52 }
 0x2f6   : > { %v5450_v38 = vpop.xlane.xlu2 %1824  ;;  %v5452_v40 = vpop.xlane.xlu0 %1852  ;;  %3708 = vpow2.f32 %v2072_v37 }
 0x2f7   : > { %v5454_v39 = vpop.xlane.xlu1 %1854  ;;  %v5498_v46 = vpop.eup %3696  ;;  %3710 = vpow2.f32 %v2042_v15  ;;  %v1931_v62 = vsub.f32 %v5242_v53, %v5450_v38  ;;  %v1915_v53 = vsub.f32 %v5237_v58, %v5436_v9  ;;  %v1945_v9 = vsub.f32 %v5244_v54, %v5452_v40 }
 0x2f8   : > { %v5500_v36 = vpop.eup %3698  ;;  %3712 = vpow2.f32 %v1982_v26  ;;  %v1946_v38 = vsub.f32 %v5246_v33, %v5454_v39 }
 0x2f9   : > { %v5502_v18 = vpop.eup %3700  ;;  %v2016_v30 = vmul.f32 1.442695, %v1931_v62  ;;  %3714 = vpow2.f32 %v1980_v41  ;;  %v1984_v26 = vmul.f32 1.442695, %v1915_v53 }
 0x2fa   : > { %v5519_v43 = vpop.eup %3702  ;;  %3716 = vpow2.f32 %v2076_v60  ;;  %v2046_v3 = vmul.f32 1.442695, %v1946_v38 }
 0x2fb   : > { %2102 = vadd.xlane.f32.xlu2 %v5456_v27  ;;  %2134 = vadd.xlane.f32.xlu0 %v5458_v21  ;;  %v5521_v34 = vpop.eup %3704  ;;  %3718 = vpow2.f32 %v2016_v30  ;;  %v2044_v30 = vmul.f32 1.442695, %v1945_v9 }
 0x2fc   : > { %2104 = vadd.xlane.f32.xlu1 %v5460_v44  ;;  %v5523_v2 = vpop.eup %3706  ;;  %3720 = vpow2.f32 %v2014_v47 }
 0x2fd   : > { %v5540_v19 = vpop.eup %3708  ;;  %3722 = vpow2.f32 %v1984_v26 }
 0x2fe   : > { %v5471_v50 = vpop.xlane.xlu2 %1886  ;;  %v5473_v59 = vpop.xlane.xlu0 %1888  ;;  %3724 = vpow2.f32 %v2046_v3 }
 0x2ff   : > { %v5475_v0 = vpop.xlane.xlu1 %1794  ;;  %v5542_v49 = vpop.eup %3710  ;;  %v1963_v39 = vsub.f32 %v5256_v57, %v5473_v59  ;;  %3726 = vpow2.f32 %v2044_v30 }
 0x300   : > { %v5544_v51 = vpop.eup %3712 }
 0x301   : > { %v5561_v52 = vpop.eup %3714  ;;  %v2080_v53 = vmul.f32 1.442695, %v1963_v39 }
 0x302   : > { %v5563_v62 = vpop.eup %3716 }
 0x303   : > { %1908 = vmax.xlane.f32.xlu2 %v5477_v10  ;;  %2198 = vadd.xlane.f32.xlu0 %v5479_v20  ;;  %v5565_v58 = vpop.eup %3718 }
 0x304   : > { %2138 = vadd.xlane.f32.xlu1 %v5481_v12  ;;  %v5582_v11 = vpop.eup %3720 }
 0x305   : > { %v5584_v38 = vpop.eup %3722 }
 0x306   : > { %v5492_v24 = vpop.xlane.xlu2 %1826  ;;  %v5494_v5 = vpop.xlane.xlu0 %1796 }
 0x307   : > { %v5496_v55 = vpop.xlane.xlu1 %1828  ;;  %v1932_v33 = vsub.f32 %v5266_v6, %v5492_v24  ;;  %v5586_v6 = vpop.eup %3724  ;;  %v1962_v24 = vsub.f32 %v5254_v56, %v5471_v50  ;;  %v1917_v59 = vsub.f32 %v5268_v7, %v5494_v5 }
 0x308   : > { %v5603_v9 = vpop.eup %3726 }
 0x309   : > { %v2018_v40 = vmul.f32 1.442695, %v1932_v33  ;;  %v2078_v3 = vmul.f32 1.442695, %v1962_v24  ;;  %v1988_v33 = vmul.f32 1.442695, %v1917_v59 }
 0x30b   : > { %2136 = vadd.xlane.f32.xlu2 %v5498_v46  ;;  %2106 = vadd.xlane.f32.xlu0 %v5500_v36  ;;  %3728 = vpow2.f32 %v2018_v40 }
 0x30c   : > { %2168 = vadd.xlane.f32.xlu1 %v5502_v18  ;;  %3730 = vpow2.f32 %v2080_v53 }
 0x30d   : > { %3732 = vpow2.f32 %v2078_v3 }
 0x30e   : > { %v5513_v14 = vpop.xlane.xlu2 %1856  ;;  %v5515_v4 = vpop.xlane.xlu0 %1858 }
 0x30f   : > { %v5517_v17 = vpop.xlane.xlu1 %1890  ;;  %v1947_v57 = vsub.f32 %v5275_v48, %v5513_v14  ;;  %v1916_v14 = vsub.f32 %v5258_v63, %v5475_v0 }
 0x310   : > { %v1964_v7 = vsub.f32 %v5279_v31, %v5517_v17  ;;  %v1933_v17 = vsub.f32 %v5270_v8, %v5496_v55 }
 0x311   : > { %v2048_v50 = vmul.f32 1.442695, %v1947_v57  ;;  %v5605_v39 = vpop.eup %3728  ;;  %v1986_v53 = vmul.f32 1.442695, %v1916_v14 }
 0x312   : > { %v5607_v48 = vpop.eup %3730  ;;  %v2082_v0 = vmul.f32 1.442695, %v1964_v7 }
 0x313   : > { %2166 = vadd.xlane.f32.xlu2 %v5519_v43  ;;  %2140 = vadd.xlane.f32.xlu0 %v5521_v34  ;;  %3734 = vpow2.f32 %v2048_v50  ;;  %v5624_v24 = vpop.eup %3732 }
 0x314   : > { %2202 = vadd.xlane.f32.xlu1 %v5523_v2  ;;  %3736 = vpow2.f32 %v1988_v33  ;;  %v2020_v33 = vmul.f32 1.442695, %v1933_v17 }
 0x315   : > { %3738 = vpow2.f32 %v1986_v53 }
 0x316   : > { %v5534_v13 = vpop.xlane.xlu2 %1798  ;;  %v5536_v45 = vpop.xlane.xlu0 %1830  ;;  %3740 = vpow2.f32 %v2082_v0 }
 0x317   : > { %v5538_v29 = vpop.xlane.xlu1 %1892  ;;  %v1934_v5 = vsub.f32 %v5289_v35, %v5536_v45  ;;  %v1918_v35 = vsub.f32 %v5287_v28, %v5534_v13  ;;  %v1948_v13 = vsub.f32 %v5277_v25, %v5515_v4 }
 0x319   : > { %v2022_v57 = vmul.f32 1.442695, %v1934_v5  ;;  %v5626_v59 = vpop.eup %3734  ;;  %v1990_v55 = vmul.f32 1.442695, %v1918_v35  ;;  %v2050_v17 = vmul.f32 1.442695, %v1948_v13 }
 0x31a   : > { %v5628_v31 = vpop.eup %3736  ;;  %v6351_v13 = vld [vmem:[#allocation3_spill] sm:$0xff] }
 0x31b   : > { %2200 = vadd.xlane.f32.xlu2 %v5540_v19  ;;  %2170 = vadd.xlane.f32.xlu0 %v5542_v49  ;;  %3742 = vpow2.f32 %v2022_v57  ;;  %v5645_v14 = vpop.eup %3738 }
 0x31c   : > { %2110 = vadd.xlane.f32.xlu1 %v5544_v51  ;;  %v5647_v5 = vpop.eup %3740  ;;  %3744 = vpow2.f32 %v2020_v33 }
 0x31d   : > { %6344 = vst [vmem:[#allocation25_spill] sm:$0xff] %v5647_v5  ;;  %3746 = vpow2.f32 %v1990_v55  ;;  %v6350_v55 = vld [vmem:[#allocation66_spill] sm:$0xff] }
 0x31e   : > { %v5555_v37 = vpop.xlane.xlu2 %1832  ;;  %v5557_v15 = vpop.xlane.xlu0 %1860 }
 0x31f   : > { %v5559_v42 = vpop.xlane.xlu1 %1800  ;;  %v1949_v45 = vsub.f32 %v5301_v22, %v5557_v15  ;;  %v6346_v15 = vld [vmem:[#allocation65_spill] sm:$0xff] }
 0x320   : > { %v1919_v22 = vsub.f32 %v5303_v23, %v5559_v42  ;;  %v1935_v53 = vsub.f32 %v6346_v15, %v5555_v37  ;;  %v6349_v42 = vld [vmem:[#allocation2_spill] sm:$0xff] }
 0x321   : > { %v2052_v7 = vmul.f32 1.442695, %v1949_v45  ;;  %v5649_v28 = vpop.eup %3742  ;;  %v1965_v37 = vsub.f32 %v6349_v42, %v5538_v29 }
 0x322   : > { %6345 = vst [vmem:[#allocation26_spill] sm:$0xff] %v5649_v28  ;;  %v1992_v4 = vmul.f32 1.442695, %v1919_v22  ;;  %v5666_v35 = vpop.eup %3744  ;;  %v2024_v45 = vmul.f32 1.442695, %v1935_v53 }
 0x323   : > { %2108 = vadd.xlane.f32.xlu2 %v5561_v52  ;;  %2204 = vadd.xlane.f32.xlu0 %v5563_v62  ;;  %3748 = vpow2.f32 %v2052_v7  ;;  %v5668_v33 = vpop.eup %3746 }
 0x324   : > { %2144 = vadd.xlane.f32.xlu1 %v5565_v58  ;;  %6347 = vst [vmem:[#allocation27_spill] sm:$0xff] %v5668_v33  ;;  %3750 = vpow2.f32 %v2050_v17  ;;  %v2084_v17 = vmul.f32 1.442695, %v1965_v37 }
 0x325   : > { %3752 = vpow2.f32 %v1992_v4 }
 0x326   : > { %v5576_v41 = vpop.xlane.xlu2 %1862  ;;  %v5578_v60 = vpop.xlane.xlu0 %1894  ;;  %3754 = vpow2.f32 %v2024_v45  ;;  %v6355_v45 = vld [vmem:[#allocation4_spill] sm:$0xff] }
 0x327   : > { %v5580_v54 = vpop.xlane.xlu1 %1834  ;;  %v1950_v7 = vsub.f32 %v6350_v55, %v5576_v41  ;;  %v1966_v22 = vsub.f32 %v6351_v13, %v5578_v60  ;;  %3756 = vpow2.f32 %v2084_v17  ;;  %v6356_v60 = vld [vmem:[#allocation5_spill] sm:$0xff] }
 0x328   : > { %v1936_v55 = vsub.f32 %v6355_v45, %v5580_v54 }
 0x329   : > { %v5670_v23 = vpop.eup %3748  ;;  %v2054_v42 = vmul.f32 1.442695, %v1950_v7  ;;  %v2086_v4 = vmul.f32 1.442695, %v1966_v22  ;;  %v6357_v7 = vld [vmem:[#allocation6_spill] sm:$0xff] }
 0x32a   : > { %6348 = vst [vmem:[#allocation28_spill] sm:$0xff] %v5670_v23 }
 0x32b   : > { %2142 = vadd.xlane.f32.xlu2 %v5582_v11  ;;  %2112 = vadd.xlane.f32.xlu0 %v5584_v38  ;;  %3758 = vpow2.f32 %v2054_v42 }
 0x32c   : > { %2174 = vadd.xlane.f32.xlu1 %v5586_v6  ;;  %3760 = vpow2.f32 %v2086_v4  ;;  %v6361_v4 = vld [vmem:[#allocation7_spill] sm:$0xff] }
 0x32e   : > { %v5597_v47 = vpop.xlane.xlu2 %1896  ;;  %v5599_v26 = vpop.xlane.xlu0 %1802 }
 0x32f   : > { %v5601_v56 = vpop.xlane.xlu1 %1864  ;;  %v1967_v37 = vsub.f32 %v6356_v60, %v5597_v47  ;;  %v1920_v13 = vsub.f32 %v6357_v7, %v5599_v26  ;;  %v6362_v26 = vld [vmem:[#allocation9_spill] sm:$0xff] }
 0x330   : > { %v1951_v60 = vsub.f32 %v6361_v4, %v5601_v56 }
 0x331   : > { %v2088_v45 = vmul.f32 1.442695, %v1967_v37  ;;  %v1994_v42 = vmul.f32 1.442695, %v1920_v13  ;;  %v6363_v37 = vld [vmem:[#allocation11_spill] sm:$0xff] }
 0x333   : > { %2172 = vadd.xlane.f32.xlu2 %v5603_v9  ;;  %2146 = vadd.xlane.f32.xlu0 %v5605_v39 }
 0x334   : > { %2208 = vadd.xlane.f32.xlu1 %v5607_v48 }
 0x336   : > { %v5618_v30 = vpop.xlane.xlu2 %1804  ;;  %v5620_v40 = vpop.xlane.xlu0 %1836 }
 0x337   : > { %v5622_v63 = vpop.xlane.xlu1 %1898 }
 0x33b   : > { %2206 = vadd.xlane.f32.xlu2 %v5624_v24  ;;  %2176 = vadd.xlane.f32.xlu0 %v5626_v59 }
 0x33c   : > { %2116 = vadd.xlane.f32.xlu1 %v5628_v31 }
 0x33e   : > { %v5639_v3 = vpop.xlane.xlu2 %1838  ;;  %v5641_v50 = vpop.xlane.xlu0 %1866 }
 0x33f   : > { %v5643_v8 = vpop.xlane.xlu1 %1806  ;;  %v1938_v7 = vsub.f32 %v6363_v37, %v5639_v3  ;;  %v6368_v3 = vld [vmem:[#allocation12_spill] sm:$0xff] }
 0x343   : > { %2114 = vadd.xlane.f32.xlu2 %v5645_v14  ;;  %2210 = vadd.xlane.f32.xlu0 %v5647_v5 }
 0x344   : > { %2150 = vadd.xlane.f32.xlu1 %v5649_v28  ;;  %v5687_v28 = vpop.eup %3750 }
 0x345   : > { %6352 = vst [vmem:[#allocation29_spill] sm:$0xff] %v5687_v28 }
 0x346   : > { %v5660_v0 = vpop.xlane.xlu2 %1868  ;;  %v5662_v57 = vpop.xlane.xlu0 %1900 }
 0x347   : > { %v5664_v25 = vpop.xlane.xlu1 %1840 }
 0x34b   : > { %2148 = vadd.xlane.f32.xlu2 %v5666_v35  ;;  %2118 = vadd.xlane.f32.xlu0 %v5668_v33  ;;  %v5689_v33 = vpop.eup %3752 }
 0x34c   : > { %2180 = vadd.xlane.f32.xlu1 %v5670_v23  ;;  %6353 = vst [vmem:[#allocation30_spill] sm:$0xff] %v5689_v33  ;;  %v5691_v41 = vpop.eup %3754  ;;  %v2026_v23 = vmul.f32 1.442695, %v1936_v55  ;;  %v1937_v55 = vsub.f32 %v6362_v26, %v5620_v40 }
 0x34d   : > { %6354 = vst [vmem:[#allocation31_spill] sm:$0xff] %v5691_v41 }
 0x34e   : > { %v5681_v15 = vpop.xlane.xlu2 %1902  ;;  %v5683_v53 = vpop.xlane.xlu0 %1808  ;;  %3762 = vpow2.f32 %v2026_v23  ;;  %v2028_v4 = vmul.f32 1.442695, %v1937_v55  ;;  %v6369_v55 = vld [vmem:[#allocation15_spill] sm:$0xff] }
 0x34f   : > { %v5685_v29 = vpop.xlane.xlu1 %1870  ;;  %3764 = vpow2.f32 %v2088_v45  ;;  %v2030_v45 = vmul.f32 1.442695, %v1938_v7  ;;  %v1969_v37 = vsub.f32 %v6369_v55, %v5662_v57  ;;  %v6372_v57 = vld [vmem:[#allocation14_spill] sm:$0xff] }
 0x350   : > { %3766 = vpow2.f32 %v1994_v42  ;;  %v6367_v42 = vld [vmem:[#allocation10_spill] sm:$0xff]  ;;  %v1953_v55 = vsub.f32 %v6372_v57, %v5660_v0 }
 0x351   : > { %v1968_v26 = vsub.f32 %v6367_v42, %v5622_v63 }
 0x353   : > { %2178 = vadd.xlane.f32.xlu2 %v5687_v28  ;;  %2120 = vadd.xlane.f32.xlu0 %v5689_v33  ;;  %v5708_v28 = vpop.eup %3756 }
 0x354   : > { %2152 = vadd.xlane.f32.xlu1 %v5691_v41  ;;  %6358 = vst [vmem:[#allocation32_spill] sm:$0xff] %v5708_v28  ;;  %v5710_v33 = vpop.eup %3758  ;;  %v2056_v41 = vmul.f32 1.442695, %v1951_v60  ;;  %v1952_v60 = vsub.f32 %v6368_v3, %v5641_v50  ;;  %v6370_v50 = vld [vmem:[#allocation8_spill] sm:$0xff] }
 0x355   : > { %6359 = vst [vmem:[#allocation33_spill] sm:$0xff] %v5710_v33  ;;  %v5712_v47 = vpop.eup %3760  ;;  %v1921_v3 = vsub.f32 %v6370_v50, %v5618_v30  ;;  %v2060_v50 = vmul.f32 1.442695, %v1953_v55  ;;  %v6378_v55 = vld [vmem:[#allocation18_spill] sm:$0xff] }
 0x356   : > { %v5702_v22 = vpop.xlane.xlu2 %1810  ;;  %v5704_v17 = vpop.xlane.xlu0 %1842  ;;  %6360 = vst [vmem:[#allocation34_spill] sm:$0xff] %v5712_v47  ;;  %3768 = vpow2.f32 %v2056_v41  ;;  %v2058_v42 = vmul.f32 1.442695, %v1952_v60 }
 0x357   : > { %v5706_v54 = vpop.xlane.xlu1 %1904  ;;  %3770 = vpow2.f32 %v2028_v4  ;;  %v2092_v4 = vmul.f32 1.442695, %v1969_v37  ;;  %v1996_v37 = vmul.f32 1.442695, %v1921_v3 }
 0x358   : > { %3772 = vpow2.f32 %v2030_v45 }
 0x35b   : > { %2212 = vadd.xlane.f32.xlu2 %v5708_v28  ;;  %2182 = vadd.xlane.f32.xlu0 %v5710_v33  ;;  %v5729_v28 = vpop.eup %3762 }
 0x35c   : > { %2214 = vadd.xlane.f32.xlu1 %v5712_v47  ;;  %6364 = vst [vmem:[#allocation35_spill] sm:$0xff] %v5729_v28  ;;  %v5731_v33 = vpop.eup %3764  ;;  %v2090_v47 = vmul.f32 1.442695, %v1968_v26  ;;  %v6373_v26 = vld [vmem:[#allocation19_spill] sm:$0xff] }
 0x35d   : > { %6365 = vst [vmem:[#allocation36_spill] sm:$0xff] %v5731_v33  ;;  %v5733_v40 = vpop.eup %3766  ;;  %v1954_v60 = vsub.f32 %v6373_v26, %v5685_v29  ;;  %v6376_v29 = vld [vmem:[#allocation13_spill] sm:$0xff] }
 0x35e   : > { %v5723_v13 = vpop.xlane.xlu2 %1844  ;;  %v5725_v23 = vpop.xlane.xlu0 %1872  ;;  %6366 = vst [vmem:[#allocation37_spill] sm:$0xff] %v5733_v40  ;;  %3774 = vpow2.f32 %v2090_v47  ;;  %v1922_v26 = vsub.f32 %v6376_v29, %v5643_v8 }
 0x35f   : > { %v5727_v56 = vpop.xlane.xlu1 %1812  ;;  %3776 = vpow2.f32 %v2058_v42  ;;  %v2062_v5 = vmul.f32 1.442695, %v1954_v60  ;;  %v1923_v60 = vsub.f32 %v6378_v55, %v5683_v53 }
 0x360   : > { %3778 = vpow2.f32 %v2092_v4  ;;  %v1998_v29 = vmul.f32 1.442695, %v1922_v26  ;;  %v6380_v26 = vld [vmem:[#allocation24_spill] sm:$0xff] }
 0x363   : > { %2216 = vadd.xlane.f32.xlu0 %v5731_v33  ;;  %2154 = vadd.xlane.f32.xlu2 %v5729_v28  ;;  %v5750_v33 = vpop.eup %3768 }
 0x364   : > { %2122 = vadd.xlane.f32.xlu1 %v5733_v40  ;;  %v5752_v28 = vpop.eup %3770 }
 0x365   : > { %v5756_v45 = vpop.eup %3772 }
 0x366   : > { %v5744_v7 = vpop.xlane.xlu2 %1874  ;;  %v5746_v41 = vpop.xlane.xlu0 %1906  ;;  %6371 = vst [vmem:[#allocation38_spill] sm:$0xff] %v5756_v45 }
 0x367   : > { %v5748_v63 = vpop.xlane.xlu1 %1876  ;;  %v5765_v0 = vpop.eup %3774 }
 0x368   : > { %6374 = vst [vmem:[#allocation39_spill] sm:$0xff] %v5765_v0  ;;  %v5767_v57 = vpop.eup %3776 }
 0x369   : > { %v5769_v42 = vpop.eup %3778 }
 0x36a   : > { %6375 = vst [vmem:[#allocation40_spill] sm:$0xff] %v5769_v42 }
 0x36b   : > { %2156 = vadd.xlane.f32.xlu0 %v5752_v28  ;;  %2184 = vadd.xlane.f32.xlu2 %v5750_v33 }
 0x36c   : > { %2158 = vadd.xlane.f32.xlu1 %v5756_v45 }
 0x36e   : > { %v2103_v40 = vpop.xlane.xlu2 %2102  ;;  %v2135_v30 = vpop.xlane.xlu0 %2134 }
 0x36f   : > { %3780 = vrcp.f32 %v2103_v40  ;;  %v2105_v47 = vpop.xlane.xlu1 %2104  ;;  %v6377_v40 = vld [vmem:[#allocation17_spill] sm:$0xff] }
 0x370   : > { %3782 = vrcp.f32 %v2135_v30  ;;  %v1970_v4 = vsub.f32 %v6377_v40, %v5681_v15 }
 0x371   : > { %3784 = vpow2.f32 %v1996_v37 }
 0x372   : > { %3786 = vpow2.f32 %v2060_v50 }
 0x373   : > { %2186 = vadd.xlane.f32.xlu2 %v5767_v57  ;;  %2218 = vadd.xlane.f32.xlu0 %v5765_v0  ;;  %3788 = vpow2.f32 %v2062_v5  ;;  %v2094_v5 = vmul.f32 1.442695, %v1970_v4  ;;  %v1972_v4 = vsub.f32 %v5440_v32, %v5746_v41  ;;  %v6381_v32 = vld [vmem:[#allocation16_spill] sm:$0xff] }
 0x374   : > { %2220 = vadd.xlane.f32.xlu1 %v5769_v42  ;;  %3790 = vrcp.f32 %v2105_v47  ;;  %v2000_v42 = vmul.f32 1.442695, %v1923_v60  ;;  %v1939_v41 = vsub.f32 %v6381_v32, %v5664_v25 }
 0x375   : > { %v3781_v3 = vpop.eup %3780 }
 0x376   : > { %v3783_v37 = vpop.eup %3782  ;;  %v2294_v30 = vmul.f32 %v3781_v3, %v5456_v27  ;;  %v5781_v8 = vpop.xlane.xlu2 %1908  ;;  %v6379_v27 = vld [vmem:[#allocation22_spill] sm:$0xff] }
 0x377   : > { %v2199_v50 = vpop.xlane.xlu0 %2198  ;;  %v2310_v0 = vmul.f32 %v3783_v37, %v5458_v21  ;;  %v2139_v45 = vpop.xlane.xlu1 %2138  ;;  %v1971_v47 = vsub.f32 %v6379_v27, %v5706_v54  ;;  %v1955_v21 = vsub.f32 %v6380_v26, %v5725_v23 }
 0x378   : > { %3792 = vrcp.f32 %v2199_v50  ;;  %v5784_v15 = vpop.eup %3784  ;;  %2374 = vmatmul.f32.vlgmr.msra.gmra.mxu0 %v2294_v30 }
 0x379   : > { %v5786_v40 = vpop.eup %3786  ;;  %2439 = vmatmul.f32.vlgmr.msra.gmra.mxu1 %v2310_v0  ;;  %3794 = vpow2.f32 %v1998_v29  ;;  %v2096_v55 = vmul.f32 1.442695, %v1971_v47  ;;  %v2064_v23 = vmul.f32 1.442695, %v1955_v21  ;;  %v2098_v29 = vmul.f32 1.442695, %v1972_v4 }
 0x37a   : > { %v5788_v53 = vpop.eup %3788  ;;  %3796 = vpow2.f32 %v2094_v5  ;;  %v2032_v47 = vmul.f32 1.442695, %v1939_v41 }
 0x37b   : > { %v3791_v3 = vpop.eup %3790  ;;  %2124 = vadd.xlane.f32.xlu2 %v5784_v15  ;;  %2188 = vadd.xlane.f32.xlu0 %v5786_v40  ;;  %3798 = vpow2.f32 %v2000_v42 }
 0x37c   : > { %2190 = vadd.xlane.f32.xlu1 %v5788_v53  ;;  %v2295_v30 = vmul.f32 %v3791_v3, %v5460_v44  ;;  %v1957_v44 = vsub.f32 %v5442_v16, %v5748_v63 }
 0x37e   : > { %v3793_v0 = vpop.eup %3792  ;;  %v2137_v60 = vpop.xlane.xlu2 %2136  ;;  %v2068_v4 = vmul.f32 1.442695, %v1957_v44 }
 0x37f   : > { %v2342_v54 = vmul.f32 %v3793_v0, %v5479_v20  ;;  %v2107_v37 = vpop.xlane.xlu0 %2106  ;;  %3800 = vrcp.f32 %v2137_v60  ;;  %v2169_v50 = vpop.xlane.xlu1 %2168  ;;  %v1956_v20 = vsub.f32 %v5438_v1, %v5744_v7 }
 0x380   : > { %3802 = vrcp.f32 %v2107_v37  ;;  %2377 = vmatmul.f32.gmra.mxu0 %v2295_v30  ;;  %v5801_v5 = vpop.eup %3794 }
 0x381   : > { %2569 = vmatmul.f32.vlgmr.msra.gmra.mxu3 %v2342_v54  ;;  %v5805_v42 = vpop.eup %3796  ;;  %3804 = vpow2.f32 %v2096_v55  ;;  %v2066_v26 = vmul.f32 1.442695, %v1956_v20 }
 0x382   : > { %v5809_v27 = vpop.eup %3798  ;;  %3806 = vpow2.f32 %v2064_v23 }
 0x383   : > { %2222 = vadd.xlane.f32.xlu2 %v5805_v42  ;;  %2126 = vadd.xlane.f32.xlu0 %v5801_v5  ;;  %3808 = vpow2.f32 %v2098_v29 }
 0x384   : > { %2128 = vadd.xlane.f32.xlu1 %v5809_v27  ;;  %3810 = vrcp.f32 %v2139_v45  ;;  %v6382_v45 = vld [vmem:[#allocation20_spill] sm:$0xff] }
 0x385   : > { %v3801_v25 = vpop.eup %3800  ;;  %v1924_v60 = vsub.f32 %v6382_v45, %v5702_v22 }
 0x386   : > { %v3803_v3 = vpop.eup %3802  ;;  %v2167_v21 = vpop.xlane.xlu2 %2166  ;;  %v2311_v7 = vmul.f32 %v3801_v25, %v5498_v46  ;;  %v6383_v46 = vld [vmem:[#allocation21_spill] sm:$0xff] }
 0x387   : > { %v2141_v1 = vpop.xlane.xlu0 %2140  ;;  %3812 = vrcp.f32 %v2167_v21  ;;  %v2203_v0 = vpop.xlane.xlu1 %2202  ;;  %v2296_v16 = vmul.f32 %v3803_v3, %v5500_v36  ;;  %v1940_v30 = vsub.f32 %v6383_v46, %v5704_v17  ;;  %v6384_v36 = vld [vmem:[#allocation23_spill] sm:$0xff]  ;;  %v2002_v32 = vmul.f32 1.442695, %v1924_v60 }
 0x388   : > { %v5818_v63 = vpop.eup %3804  ;;  %2442 = vmatmul.f32.gmra.mxu1 %v2311_v7  ;;  %3814 = vpow2.f32 %v2032_v47  ;;  %v1941_v23 = vsub.f32 %v6384_v36, %v5723_v13 }
 0x389   : > { %v5820_v55 = vpop.eup %3806  ;;  %2380 = vmatmul.f32.gmra.mxu0 %v2296_v16  ;;  %3816 = vpow2.f32 %v2066_v26  ;;  %v2034_v25 = vmul.f32 1.442695, %v1940_v30 }
 0x38a   : > { %v5822_v54 = vpop.eup %3808  ;;  %3818 = vpow2.f32 %v2068_v4  ;;  %v2036_v13 = vmul.f32 1.442695, %v1941_v23 }
 0x38b   : > { %v3811_v37 = vpop.eup %3810  ;;  %2192 = vadd.xlane.f32.xlu2 %v5820_v55  ;;  %2224 = vadd.xlane.f32.xlu0 %v5818_v63  ;;  %3820 = vrcp.f32 %v2169_v50 }
 0x38c   : > { %2226 = vadd.xlane.f32.xlu1 %v5822_v54  ;;  %3822 = vrcp.f32 %v2141_v1  ;;  %v2312_v17 = vmul.f32 %v3811_v37, %v5481_v12  ;;  %v1973_v12 = vsub.f32 %v5477_v10, %v5781_v8 }
 0x38d   : > { %v3813_v29 = vpop.eup %3812 }
 0x38e   : > { %v2326_v22 = vmul.f32 %v3813_v29, %v5519_v43  ;;  %v2201_v41 = vpop.xlane.xlu2 %2200  ;;  %v5835_v44 = vpop.eup %3814  ;;  %v1925_v43 = vsub.f32 %v5421_v61, %v5727_v56  ;;  %v2100_v46 = vmul.f32 1.442695, %v1973_v12 }
 0x38f   : > { %v2171_v20 = vpop.xlane.xlu0 %2170  ;;  %3824 = vrcp.f32 %v2201_v41  ;;  %v2111_v47 = vpop.xlane.xlu1 %2110 }
 0x390   : > { %v5837_v3 = vpop.eup %3816  ;;  %2445 = vmatmul.f32.gmra.mxu1 %v2312_v17  ;;  %2504 = vmatmul.f32.vlgmr.msra.gmra.mxu2 %v2326_v22  ;;  %3826 = vpow2.f32 %v2002_v32  ;;  %v2004_v56 = vmul.f32 1.442695, %v1925_v43 }
 0x391   : > { %v5839_v50 = vpop.eup %3818  ;;  %3828 = vpow2.f32 %v2034_v25 }
 0x392   : > { %v3821_v26 = vpop.eup %3820  ;;  %3830 = vpow2.f32 %v2036_v13 }
 0x393   : > { %v3823_v21 = vpop.eup %3822  ;;  %2160 = vadd.xlane.f32.xlu2 %v5835_v44  ;;  %2194 = vadd.xlane.f32.xlu0 %v5837_v3  ;;  %3832 = vrcp.f32 %v2171_v20  ;;  %v2327_v45 = vmul.f32 %v3821_v26, %v5502_v18 }
 0x394   : > { %2196 = vadd.xlane.f32.xlu1 %v5839_v50  ;;  %3834 = vrcp.f32 %v2203_v0  ;;  %v2313_v16 = vmul.f32 %v3823_v21, %v5521_v34 }
 0x395   : > { %v3825_v1 = vpop.eup %3824 }
 0x396   : > { %v2109_v7 = vpop.xlane.xlu2 %2108  ;;  %v2343_v61 = vmul.f32 %v3825_v1, %v5540_v19  ;;  %v5851_v37 = vpop.eup %3826 }
 0x397   : > { %v2205_v4 = vpop.xlane.xlu0 %2204  ;;  %3836 = vrcp.f32 %v2109_v7  ;;  %v2145_v60 = vpop.xlane.xlu1 %2144 }
 0x398   : > { %2448 = vmatmul.f32.gmra.mxu1 %v2313_v16  ;;  %2507 = vmatmul.f32.gmra.mxu2 %v2327_v45  ;;  %v5853_v10 = vpop.eup %3828  ;;  %3838 = vpow2.f32 %v2004_v56 }
 0x399   : > { %2572 = vmatmul.f32.gmra.mxu3 %v2343_v61  ;;  %v5855_v8 = vpop.eup %3830  ;;  %3840 = vpow2.f32 %v2100_v46 }
 0x39a   : > { %v3833_v0 = vpop.eup %3832  ;;  %3842 = vrcp.f32 %v2111_v47 }
 0x39b   : > { %2130 = vadd.xlane.f32.xlu2 %v5851_v37  ;;  %2162 = vadd.xlane.f32.xlu0 %v5853_v10  ;;  %v3835_v18 = vpop.eup %3834  ;;  %3844 = vrcp.f32 %v2205_v4  ;;  %v2328_v23 = vmul.f32 %v3833_v0, %v5542_v49 }
 0x39c   : > { %2164 = vadd.xlane.f32.xlu1 %v5855_v8  ;;  %v2344_v32 = vmul.f32 %v3835_v18, %v5523_v2 }
 0x39d   : > { %v3837_v34 = vpop.eup %3836 }
 0x39e   : > { %v2143_v19 = vpop.xlane.xlu2 %2142  ;;  %v2297_v36 = vmul.f32 %v3837_v34, %v5561_v52  ;;  %v5863_v22 = vpop.eup %3838 }
 0x39f   : > { %v2113_v30 = vpop.xlane.xlu0 %2112  ;;  %3846 = vrcp.f32 %v2143_v19  ;;  %v2175_v29 = vpop.xlane.xlu1 %2174 }
 0x3a0   : > { %2383 = vmatmul.f32.gmra.mxu0 %v2297_v36  ;;  %2510 = vmatmul.f32.gmra.mxu2 %v2328_v23  ;;  %v5865_v41 = vpop.eup %3840  ;;  %3848 = vrcp.f32 %v2145_v60 }
 0x3a1   : > { %2575 = vmatmul.f32.gmra.mxu3 %v2344_v32  ;;  %v3843_v20 = vpop.eup %3842  ;;  %3850 = vrcp.f32 %v2113_v30 }
 0x3a2   : > { %v3845_v17 = vpop.eup %3844  ;;  %v2298_v2 = vmul.f32 %v3843_v20, %v5544_v51 }
 0x3a3   : > { %2228 = vadd.xlane.f32.xlu2 %v5865_v41  ;;  %2132 = vadd.xlane.f32.xlu0 %v5863_v22  ;;  %v2345_v26 = vmul.f32 %v3845_v17, %v5563_v62 }
 0x3a5   : > { %v3847_v52 = vpop.eup %3846 }
 0x3a6   : > { %v2173_v49 = vpop.xlane.xlu2 %2172  ;;  %v2314_v47 = vmul.f32 %v3847_v52, %v5582_v11  ;;  %v3849_v21 = vpop.eup %3848 }
 0x3a7   : > { %v2147_v25 = vpop.xlane.xlu0 %2146  ;;  %3852 = vrcp.f32 %v2173_v49  ;;  %v2209_v13 = vpop.xlane.xlu1 %2208  ;;  %v2315_v51 = vmul.f32 %v3849_v21, %v5565_v58  ;;  %v6385_v49 = vld [vmem:[#allocation25_spill] sm:$0xff]  ;;  %v6386_v21 = vld [vmem:[#allocation27_spill] sm:$0xff] }
 0x3a8   : > { %2386 = vmatmul.f32.gmra.mxu0 %v2298_v2  ;;  %2451 = vmatmul.f32.gmra.mxu1 %v2314_v47  ;;  %v3851_v43 = vpop.eup %3850  ;;  %3854 = vrcp.f32 %v2147_v25  ;;  %v2623_v2 = vld [vmem:[%s6136_s2 + $0x28] sm:$0xff]  ;;  %v2625_v47 = vld [vmem:[%s6136_s2 + $0x38] sm:$0xff] }
 0x3a9   : > { %2578 = vmatmul.f32.gmra.mxu3 %v2345_v26  ;;  %3856 = vrcp.f32 %v2175_v29  ;;  %v2299_v4 = vmul.f32 %v3851_v43, %v5584_v38  ;;  %2914 = vmatpush.msrb.mxu2 %v2623_v2 }
 0x3aa   : > { %3027 = vmatpush.msrb.mxu3 %v2625_v47 }
 0x3ad   : > { %v3853_v12 = vpop.eup %3852 }
 0x3ae   : > { %v2207_v1 = vpop.xlane.xlu2 %2206  ;;  %v2329_v11 = vmul.f32 %v3853_v12, %v5603_v9  ;;  %v3855_v62 = vpop.eup %3854  ;;  %v6387_v12 = vld [vmem:[#allocation26_spill] sm:$0xff] }
 0x3af   : > { %v2177_v7 = vpop.xlane.xlu0 %2176  ;;  %3858 = vrcp.f32 %v2207_v1  ;;  %v2117_v16 = vpop.xlane.xlu1 %2116  ;;  %v2316_v46 = vmul.f32 %v3855_v62, %v5605_v39 }
 0x3b0   : > { %2389 = vmatmul.f32.gmra.mxu0 %v2299_v4  ;;  %2454 = vmatmul.f32.gmra.mxu1 %v2315_v51  ;;  %v3857_v45 = vpop.eup %3856  ;;  %3860 = vrcp.f32 %v2209_v13 }
 0x3b1   : > { %2513 = vmatmul.f32.gmra.mxu2 %v2329_v11  ;;  %3862 = vrcp.f32 %v2177_v7  ;;  %v2330_v9 = vmul.f32 %v3857_v45, %v5586_v6  ;;  %v6388_v7 = vld [vmem:[#allocation29_spill] sm:$0xff]  ;;  %v2619_v11 = vld [vmem:[%s6136_s2 + $0x8] sm:$0xff] }
 0x3b2   : > { %2688 = vmatpush.msrb.mxu0 %v2619_v11 }
 0x3b5   : > { %v3859_v61 = vpop.eup %3858 }
 0x3b6   : > { %v2115_v56 = vpop.xlane.xlu2 %2114  ;;  %v2346_v38 = vmul.f32 %v3859_v61, %v5624_v24  ;;  %v3861_v0 = vpop.eup %3860 }
 0x3b7   : > { %v2211_v60 = vpop.xlane.xlu0 %2210  ;;  %3864 = vrcp.f32 %v2115_v56  ;;  %v2151_v58 = vpop.xlane.xlu1 %2150  ;;  %v2347_v39 = vmul.f32 %v3861_v0, %v5607_v48 }
 0x3b8   : > { %2457 = vmatmul.f32.gmra.mxu1 %v2316_v46  ;;  %2581 = vmatmul.f32.gmra.mxu3 %v2346_v38  ;;  %v3863_v18 = vpop.eup %3862  ;;  %3866 = vrcp.f32 %v2117_v16  ;;  %v2621_v16 = vld [vmem:[%s6136_s2 + $0x18] sm:$0xff]  ;;  %v6389_v38 = vld [vmem:[#allocation30_spill] sm:$0xff] }
 0x3b9   : > { %2516 = vmatmul.f32.gmra.mxu2 %v2330_v9  ;;  %3868 = vrcp.f32 %v2211_v60  ;;  %v2331_v23 = vmul.f32 %v3863_v18, %v5626_v59  ;;  %2801 = vmatpush.msrb.mxu1 %v2621_v16  ;;  %v6390_v9 = vld [vmem:[#allocation31_spill] sm:$0xff]  ;;  %v6391_v18 = vld [vmem:[#allocation32_spill] sm:$0xff] }
 0x3bd   : > { %v3865_v34 = vpop.eup %3864 }
 0x3be   : > { %v2149_v19 = vpop.xlane.xlu2 %2148  ;;  %v2300_v36 = vmul.f32 %v3865_v34, %v5645_v14  ;;  %v3867_v6 = vpop.eup %3866 }
 0x3bf   : > { %v2119_v30 = vpop.xlane.xlu0 %2118  ;;  %3870 = vrcp.f32 %v2149_v19  ;;  %v2181_v24 = vpop.xlane.xlu1 %2180  ;;  %v2301_v52 = vmul.f32 %v3867_v6, %v5628_v31 }
 0x3c0   : > { %2392 = vmatmul.f32.gmra.mxu0 %v2300_v36  ;;  %2584 = vmatmul.f32.gmra.mxu3 %v2347_v39  ;;  %v3869_v29 = vpop.eup %3868  ;;  %3872 = vrcp.f32 %v2151_v58 }
 0x3c1   : > { %2519 = vmatmul.f32.gmra.mxu2 %v2331_v23  ;;  %3874 = vrcp.f32 %v2119_v30  ;;  %v2348_v25 = vmul.f32 %v3869_v29, %v6385_v49  ;;  %v6392_v30 = vld [vmem:[#allocation28_spill] sm:$0xff]  ;;  %v6395_v49 = vld [vmem:[#allocation37_spill] sm:$0xff] }
 0x3c5   : > { %v3871_v32 = vpop.eup %3870 }
 0x3c6   : > { %v2179_v20 = vpop.xlane.xlu2 %2178  ;;  %v2317_v14 = vmul.f32 %v3871_v32, %v5666_v35  ;;  %v3873_v59 = vpop.eup %3872 }
 0x3c7   : > { %v2121_v17 = vpop.xlane.xlu0 %2120  ;;  %3876 = vrcp.f32 %v2179_v20  ;;  %v2153_v48 = vpop.xlane.xlu1 %2152  ;;  %v2318_v1 = vmul.f32 %v3873_v59, %v6387_v12  ;;  %v6396_v59 = vld [vmem:[#allocation34_spill] sm:$0xff] }
 0x3c8   : > { %2395 = vmatmul.f32.gmra.mxu0 %v2301_v52  ;;  %2460 = vmatmul.f32.gmra.mxu1 %v2317_v14  ;;  %v3875_v13 = vpop.eup %3874  ;;  %3878 = vrcp.f32 %v2121_v17  ;;  %v6393_v17 = vld [vmem:[#allocation35_spill] sm:$0xff]  ;;  %v6394_v14 = vld [vmem:[#allocation33_spill] sm:$0xff] }
 0x3c9   : > { %2587 = vmatmul.f32.gmra.mxu3 %v2348_v25  ;;  %3880 = vrcp.f32 %v2153_v48  ;;  %v2302_v43 = vmul.f32 %v3875_v13, %v6386_v21 }
 0x3ca   : > { %3882 = vrcp.f32 %v2181_v24 }
 0x3cd   : > { %v3877_v31 = vpop.eup %3876 }
 0x3ce   : > { %v2213_v35 = vpop.xlane.xlu2 %2212  ;;  %v2332_v4 = vmul.f32 %v3877_v31, %v6388_v7  ;;  %v3879_v62 = vpop.eup %3878 }
 0x3cf   : > { %v2183_v26 = vpop.xlane.xlu0 %2182  ;;  %3884 = vrcp.f32 %v2213_v35  ;;  %v2215_v51 = vpop.xlane.xlu1 %2214  ;;  %v2303_v58 = vmul.f32 %v3879_v62, %v6389_v38 }
 0x3d0   : > { %2398 = vmatmul.f32.gmra.mxu0 %v2302_v43  ;;  %2463 = vmatmul.f32.gmra.mxu1 %v2318_v1  ;;  %v3881_v45 = vpop.eup %3880  ;;  %3886 = vrcp.f32 %v2183_v26  ;;  %v6397_v1 = vld [vmem:[#allocation36_spill] sm:$0xff] }
 0x3d1   : > { %2522 = vmatmul.f32.gmra.mxu2 %v2332_v4  ;;  %v3883_v61 = vpop.eup %3882  ;;  %v2319_v0 = vmul.f32 %v3881_v45, %v6390_v9  ;;  %3888 = vrcp.f32 %v2215_v51 }
 0x3d2   : > { %v2333_v36 = vmul.f32 %v3883_v61, %v6392_v30  ;;  %v6398_v61 = vld [vmem:[#allocation38_spill] sm:$0xff] }
 0x3d5   : > { %v3885_v56 = vpop.eup %3884 }
 0x3d6   : > { %v2155_v46 = vpop.xlane.xlu2 %2154  ;;  %v2349_v34 = vmul.f32 %v3885_v56, %v6391_v18  ;;  %v3887_v39 = vpop.eup %3886 }
 0x3d7   : > { %v2217_v60 = vpop.xlane.xlu0 %2216  ;;  %v2123_v19 = vpop.xlane.xlu1 %2122  ;;  %3890 = vrcp.f32 %v2155_v46  ;;  %v2334_v48 = vmul.f32 %v3887_v39, %v6394_v14  ;;  %v2618_v14 = vld [vmem:[%s6136_s2] sm:$0xff] }
 0x3d8   : > { %2401 = vmatmul.f32.gmra.mxu0 %v2303_v58  ;;  %2466 = vmatmul.f32.gmra.mxu1 %v2319_v0  ;;  %3892 = vrcp.f32 %v2123_v19  ;;  %v3889_v24 = vpop.eup %3888  ;;  %v6400_v19 = vld [vmem:[#allocation40_spill] sm:$0xff] }
 0x3d9   : > { %2525 = vmatmul.f32.gmra.mxu2 %v2333_v36  ;;  %2590 = vmatmul.f32.gmra.mxu3 %v2349_v34  ;;  %3894 = vrcp.f32 %v2217_v60  ;;  %v2350_v2 = vmul.f32 %v3889_v24, %v6396_v59  ;;  %v6399_v60 = vld [vmem:[#allocation39_spill] sm:$0xff]  ;;  %v2622_v24 = vld [vmem:[%s6136_s2 + $0x20] sm:$0xff] }
 0x3da   : > { %2915 = vmatpush.msrb.mxu2 %v2622_v24  ;;  %2689 = vmatpush.msrb.mxu0 %v2618_v14 }
 0x3dd   : > { %v3891_v23 = vpop.eup %3890 }
 0x3de   : > { %v2185_v29 = vpop.xlane.xlu2 %2184  ;;  %v3893_v32 = vpop.eup %3892  ;;  %v2320_v52 = vmul.f32 %v3891_v23, %v6393_v17 }
 0x3df   : > { %v2157_v6 = vpop.xlane.xlu0 %2156  ;;  %v2159_v20 = vpop.xlane.xlu1 %2158  ;;  %v2304_v25 = vmul.f32 %v3893_v32, %v6395_v49 }
 0x3e0   : > { %3896 = vrcp.f32 %v2157_v6  ;;  %2469 = vmatmul.f32.gmra.mxu1 %v2320_v52  ;;  %v3895_v47 = vpop.eup %3894 }
 0x3e1   : > { %3898 = vrcp.f32 %v2185_v29  ;;  %2528 = vmatmul.f32.gmra.mxu2 %v2334_v48  ;;  %2404 = vmatmul.f32.gmra.mxu0 %v2304_v25  ;;  %v2351_v7 = vmul.f32 %v3895_v47, %v6397_v1 }
 0x3e2   : > { %2593 = vmatmul.f32.gmra.mxu3 %v2350_v2  ;;  %3900 = vrcp.f32 %v2159_v20 }
 0x3e6   : > { %v3897_v13 = vpop.eup %3896  ;;  %v2187_v35 = vpop.xlane.xlu2 %2186 }
 0x3e7   : > { %v3899_v31 = vpop.eup %3898  ;;  %v2219_v26 = vpop.xlane.xlu0 %2218  ;;  %v2321_v21 = vmul.f32 %v3897_v13, %v5752_v28  ;;  %3902 = vrcp.f32 %v2187_v35 }
 0x3e8   : > { %v2221_v43 = vpop.xlane.xlu1 %2220  ;;  %v2335_v12 = vmul.f32 %v3899_v31, %v5750_v33  ;;  %3904 = vrcp.f32 %v2219_v26  ;;  %v3901_v4 = vpop.eup %3900 }
 0x3e9   : > { %2472 = vmatmul.f32.gmra.mxu1 %v2321_v21  ;;  %3906 = vrcp.f32 %v2221_v43  ;;  %v2322_v56 = vmul.f32 %v3901_v4, %v6398_v61 }
 0x3ea   : > { %2531 = vmatmul.f32.gmra.mxu2 %v2335_v12  ;;  %2596 = vmatmul.f32.gmra.mxu3 %v2351_v7 }
 0x3ed   : > { %v3903_v51 = vpop.eup %3902 }
 0x3ee   : > { %v3905_v11 = vpop.eup %3904  ;;  %v2125_v16 = vpop.xlane.xlu2 %2124  ;;  %v2336_v45 = vmul.f32 %v3903_v51, %v5767_v57 }
 0x3ef   : > { %v2189_v62 = vpop.xlane.xlu0 %2188  ;;  %3908 = vrcp.f32 %v2125_v16  ;;  %v2352_v33 = vmul.f32 %v3905_v11, %v6399_v60  ;;  %v3907_v46 = vpop.eup %3906 }
 0x3f0   : > { %v2191_v28 = vpop.xlane.xlu1 %2190  ;;  %3910 = vrcp.f32 %v2189_v62  ;;  %v2353_v30 = vmul.f32 %v3907_v46, %v6400_v19 }
 0x3f1   : > { %2475 = vmatmul.f32.gmra.mxu1 %v2322_v56  ;;  %3912 = vrcp.f32 %v2191_v28 }
 0x3f2   : > { %2534 = vmatmul.f32.gmra.mxu2 %v2336_v45  ;;  %2599 = vmatmul.f32.gmra.mxu3 %v2352_v33 }
 0x3f5   : > { %v3909_v38 = vpop.eup %3908  ;;  %v2375_v21 = vpop.f32.mrf.mxu0 }
 0x3f6   : > { %v3911_v58 = vpop.eup %3910  ;;  %v2223_v9 = vpop.xlane.xlu2 %2222  ;;  %v2305_v0 = vmul.f32 %v3909_v38, %v5784_v15 }
 0x3f7   : > { %3914 = vrcp.f32 %v2223_v9  ;;  %v2127_v18 = vpop.xlane.xlu0 %2126  ;;  %v2337_v34 = vmul.f32 %v3911_v58, %v5786_v40  ;;  %v3913_v36 = vpop.eup %3912 }
 0x3f8   : > { %v2129_v57 = vpop.xlane.xlu1 %2128  ;;  %3916 = vrcp.f32 %v2127_v18  ;;  %2407 = vmatmul.f32.gmra.mxu0 %v2305_v0  ;;  %v2338_v20 = vmul.f32 %v3913_v36, %v5788_v53  ;;  %v2440_v12 = vpop.f32.mrf.mxu1 }
 0x3f9   : > { %3918 = vrcp.f32 %v2129_v57 }
 0x3fa   : > { %2537 = vmatmul.f32.gmra.mxu2 %v2337_v34  ;;  %2602 = vmatmul.f32.gmra.mxu3 %v2353_v30 }
 0x3fd   : > { %v3915_v39 = vpop.eup %3914 }
 0x3fe   : > { %v3917_v23 = vpop.eup %3916  ;;  %v2193_v15 = vpop.xlane.xlu2 %2192  ;;  %v2354_v6 = vmul.f32 %v3915_v39, %v5805_v42  ;;  %v2620_v42 = vld [vmem:[%s6136_s2 + $0x10] sm:$0xff] }
 0x3ff   : > { %3920 = vrcp.f32 %v2193_v15  ;;  %v2225_v40 = vpop.xlane.xlu0 %2224  ;;  %v2306_v32 = vmul.f32 %v3917_v23, %v5801_v5  ;;  %v3919_v17 = vpop.eup %3918  ;;  %v2624_v5 = vld [vmem:[%s6136_s2 + $0x30] sm:$0xff]  ;;  %2802 = vmatpush.msrb.mxu1 %v2620_v42 }
 0x400   : > { %v2227_v29 = vpop.xlane.xlu1 %2226  ;;  %3922 = vrcp.f32 %v2225_v40  ;;  %v2307_v59 = vmul.f32 %v3919_v17, %v5809_v27  ;;  %3028 = vmatpush.msrb.mxu3 %v2624_v5 }
 0x401   : > { %2410 = vmatmul.f32.gmra.mxu0 %v2306_v32  ;;  %3924 = vrcp.f32 %v2227_v29 }
 0x402   : > { %2540 = vmatmul.f32.gmra.mxu2 %v2338_v20  ;;  %2605 = vmatmul.f32.gmra.mxu3 %v2354_v6 }
 0x404   : > { %v2570_v56 = vpop.f32.mrf.mxu3 }
 0x405   : > { %v3921_v52 = vpop.eup %3920  ;;  %v2443_v28 = vpop.f32.mrf.mxu1 }
 0x406   : > { %v3923_v48 = vpop.eup %3922  ;;  %v2161_v53 = vpop.xlane.xlu2 %2160  ;;  %v2339_v49 = vmul.f32 %v3921_v52, %v5820_v55 }
 0x407   : > { %3926 = vrcp.f32 %v2161_v53  ;;  %v2195_v25 = vpop.xlane.xlu0 %2194  ;;  %v2355_v2 = vmul.f32 %v3923_v48, %v5818_v63  ;;  %v3925_v13 = vpop.eup %3924 }
 0x408   : > { %3928 = vrcp.f32 %v2195_v25  ;;  %v2197_v47 = vpop.xlane.xlu1 %2196  ;;  %v2356_v63 = vmul.f32 %v3925_v13, %v5822_v54  ;;  %v2378_v54 = vpop.f32.mrf.mxu0 }
 0x409   : > { %2413 = vmatmul.f32.gmra.mxu0 %v2307_v59  ;;  %3930 = vrcp.f32 %v2197_v47 }
 0x40a   : > { %2543 = vmatmul.f32.gmra.mxu2 %v2339_v49  ;;  %2608 = vmatmul.f32.gmra.mxu3 %v2355_v2 }
 0x40d   : > { %v3927_v31 = vpop.eup %3926  ;;  %v2446_v9 = vpop.f32.mrf.mxu1 }
 0x40e   : > { %v3929_v35 = vpop.eup %3928  ;;  %v2131_v26 = vpop.xlane.xlu2 %2130  ;;  %v2323_v55 = vmul.f32 %v3927_v31, %v5835_v44 }
 0x40f   : > { %3932 = vrcp.f32 %v2131_v26  ;;  %v2163_v43 = vpop.xlane.xlu0 %2162  ;;  %v2340_v27 = vmul.f32 %v3929_v35, %v5837_v3  ;;  %v3931_v7 = vpop.eup %3930 }
 0x410   : > { %3934 = vrcp.f32 %v2163_v43  ;;  %2478 = vmatmul.f32.gmra.mxu1 %v2323_v55  ;;  %v2165_v1 = vpop.xlane.xlu1 %2164  ;;  %v2341_v3 = vmul.f32 %v3931_v7, %v5839_v50  ;;  %v2381_v50 = vpop.f32.mrf.mxu0 }
 0x411   : > { %3936 = vrcp.f32 %v2165_v1 }
 0x412   : > { %2546 = vmatmul.f32.gmra.mxu2 %v2340_v27  ;;  %2611 = vmatmul.f32.gmra.mxu3 %v2356_v63 }
 0x413   : > { %v2505_v45 = vpop.f32.mrf.mxu2 }
 0x415   : > { %v3933_v4 = vpop.eup %3932  ;;  %v2449_v0 = vpop.f32.mrf.mxu1 }
 0x416   : > { %v3935_v51 = vpop.eup %3934  ;;  %v2229_v11 = vpop.xlane.xlu2 %2228  ;;  %v2308_v44 = vmul.f32 %v3933_v4, %v5851_v37 }
 0x417   : > { %3938 = vrcp.f32 %v2229_v11  ;;  %v2133_v16 = vpop.xlane.xlu0 %2132  ;;  %v2324_v62 = vmul.f32 %v3935_v51, %v5853_v10  ;;  %v3937_v61 = vpop.eup %3936 }
 0x418   : > { %3940 = vrcp.f32 %v2133_v16  ;;  %2416 = vmatmul.f32.gmra.mxu0 %v2308_v44  ;;  %v2325_v38 = vmul.f32 %v3937_v61, %v5855_v8 }
 0x419   : > { %2481 = vmatmul.f32.gmra.mxu1 %v2324_v62 }
 0x41a   : > { %2549 = vmatmul.f32.gmra.mxu2 %v2341_v3 }
 0x41b   : > { %v2508_v10 = vpop.f32.mrf.mxu2 }
 0x41c   : > { %v2573_v58 = vpop.f32.mrf.mxu3 }
 0x41d   : > { %v3939_v60 = vpop.eup %3938 }
 0x41e   : > { %v3941_v33 = vpop.eup %3940  ;;  %v2357_v46 = vmul.f32 %v3939_v60, %v5865_v41 }
 0x41f   : > { %v2309_v37 = vmul.f32 %v3941_v33, %v5863_v22  ;;  %v2384_v22 = vpop.f32.mrf.mxu0 }
 0x420   : > { %2614 = vmatmul.f32.gmra.mxu3 %v2357_v46 }
 0x421   : > { %2419 = vmatmul.f32.gmra.mxu0 %v2309_v37  ;;  %2484 = vmatmul.f32.gmra.mxu1 %v2325_v38 }
 0x422   : > { %3643 = vmatmul.msk.f32.vlgmr.msrb.gmra.mxu2 %vm1137_vm1, %v2505_v45 }
 0x423   : > { %v2511_v41 = vpop.f32.mrf.mxu2 }
 0x424   : > { %v2576_v8 = vpop.f32.mrf.mxu3 }
 0x425   : > { %v2452_v34 = vpop.f32.mrf.mxu1 }
 0x427   : > { %v2387_v18 = vpop.f32.mrf.mxu0 }
 0x428   : > { %3659 = vmatmul.msk.f32.vlgmr.msrb.gmra.mxu3 %vm1137_vm1, %v2570_v56 }
 0x429   : > { %3611 = vmatmul.msk.f32.vlgmr.msrb.gmra.mxu0 %vm1137_vm1, %v2375_v21  ;;  %3627 = vmatmul.msk.f32.vlgmr.msrb.gmra.mxu1 %vm1137_vm1, %v2440_v12 }
 0x42a   : > { %3644 = vmatmul.msk.f32.gmra.mxu2 %vm1137_vm1, %v2508_v10 }
 0x42c   : > { %v2579_v19 = vpop.f32.mrf.mxu3 }
 0x42d   : > { %v2455_v24 = vpop.f32.mrf.mxu1 }
 0x42f   : > { %v2390_v30 = vpop.f32.mrf.mxu0 }
 0x430   : > { %3660 = vmatmul.msk.f32.gmra.mxu3 %vm1137_vm1, %v2573_v58 }
 0x431   : > { %3612 = vmatmul.msk.f32.gmra.mxu0 %vm1137_vm1, %v2378_v54  ;;  %3628 = vmatmul.msk.f32.gmra.mxu1 %vm1137_vm1, %v2443_v28 }
 0x432   : > { %3645 = vmatmul.msk.f32.gmra.mxu2 %vm1137_vm1, %v2511_v41 }
 0x434   : > { %v2514_v57 = vpop.f32.mrf.mxu2 }
 0x435   : > { %v2458_v40 = vpop.f32.mrf.mxu1 }
 0x438   : > { %3661 = vmatmul.msk.f32.gmra.mxu3 %vm1137_vm1, %v2576_v8 }
 0x439   : > { %3613 = vmatmul.msk.f32.gmra.mxu0 %vm1137_vm1, %v2381_v50  ;;  %3629 = vmatmul.msk.f32.gmra.mxu1 %vm1137_vm1, %v2446_v9  ;;  %v6013_v9 = vld [vmem:[%s6137_s3] ss:$0 sm:$0xff] }
 0x43a   : > { %3646 = vmatmul.msk.f32.gmra.mxu2 %vm1137_vm1, %v2514_v57 }
 0x43b   : > { %v2582_v39 = vpop.f32.mrf.mxu3 }
 0x43c   : > { %v2517_v36 = vpop.f32.mrf.mxu2 }
 0x43d   : > { %v2393_v23 = vpop.f32.mrf.mxu0 }
 0x440   : > { %3662 = vmatmul.msk.f32.gmra.mxu3 %vm1137_vm1, %v2579_v19 }
 0x441   : > { %3614 = vmatmul.msk.f32.gmra.mxu0 %vm1137_vm1, %v2384_v22  ;;  %3630 = vmatmul.msk.f32.gmra.mxu1 %vm1137_vm1, %v2449_v0 }
 0x442   : > { %3647 = vmatmul.msk.f32.gmra.mxu2 %vm1137_vm1, %v2517_v36 }
 0x443   : > { %v2585_v6 = vpop.f32.mrf.mxu3 }
 0x444   : > { %v2520_v15 = vpop.f32.mrf.mxu2 }
 0x445   : > { %v2396_v29 = vpop.f32.mrf.mxu0  ;;  %v2461_v32 = vpop.f32.mrf.mxu1 }
 0x448   : > { %3663 = vmatmul.msk.f32.gmra.mxu3 %vm1137_vm1, %v2582_v39 }
 0x449   : > { %3615 = vmatmul.msk.f32.gmra.mxu0 %vm1137_vm1, %v2387_v18  ;;  %3631 = vmatmul.msk.f32.gmra.mxu1 %vm1137_vm1, %v2452_v34 }
 0x44a   : > { %3648 = vmatmul.msk.f32.gmra.mxu2 %vm1137_vm1, %v2520_v15 }
 0x44c   : > { %v2588_v20 = vpop.f32.mrf.mxu3 }
 0x44d   : > { %v2399_v52 = vpop.f32.mrf.mxu0  ;;  %v2464_v5 = vpop.f32.mrf.mxu1 }
 0x450   : > { %3664 = vmatmul.msk.f32.gmra.mxu3 %vm1137_vm1, %v2585_v6 }
 0x451   : > { %3616 = vmatmul.msk.f32.gmra.mxu0 %vm1137_vm1, %v2390_v30  ;;  %3632 = vmatmul.msk.f32.gmra.mxu1 %vm1137_vm1, %v2455_v24 }
 0x454   : > { %v2523_v17 = vpop.f32.mrf.mxu2 }
 0x455   : > { %3649 = vmatmul.msk.f32.gmra.mxu2 %vm1137_vm1, %v2523_v17  ;;  %v2402_v49 = vpop.f32.mrf.mxu0  ;;  %v2467_v25 = vpop.f32.mrf.mxu1 }
 0x458   : > { %3665 = vmatmul.msk.f32.gmra.mxu3 %vm1137_vm1, %v2588_v20 }
 0x459   : > { %3617 = vmatmul.msk.f32.gmra.mxu0 %vm1137_vm1, %v2393_v23  ;;  %3633 = vmatmul.msk.f32.gmra.mxu1 %vm1137_vm1, %v2458_v40 }
 0x45c   : > { %v2526_v14 = vpop.f32.mrf.mxu2  ;;  %v2591_v42 = vpop.f32.mrf.mxu3 }
 0x45d   : > { %3650 = vmatmul.msk.f32.gmra.mxu2 %vm1137_vm1, %v2526_v14  ;;  %v2470_v13 = vpop.f32.mrf.mxu1 }
 0x45e   : > { %v2405_v47 = vpop.f32.mrf.mxu0 }
 0x460   : > { %3666 = vmatmul.msk.f32.gmra.mxu3 %vm1137_vm1, %v2591_v42 }
 0x461   : > { %3618 = vmatmul.msk.f32.gmra.mxu0 %vm1137_vm1, %v2396_v29  ;;  %3634 = vmatmul.msk.f32.gmra.mxu1 %vm1137_vm1, %v2461_v32 }
 0x464   : > { %v2529_v48 = vpop.f32.mrf.mxu2 }
 0x465   : > { %v2594_v53 = vpop.f32.mrf.mxu3  ;;  %3651 = vmatmul.msk.f32.gmra.mxu2 %vm1137_vm1, %v2529_v48 }
 0x466   : > { %v2473_v55 = vpop.f32.mrf.mxu1 }
 0x468   : > { %3667 = vmatmul.msk.f32.gmra.mxu3 %vm1137_vm1, %v2594_v53 }
 0x469   : > { %3619 = vmatmul.msk.f32.gmra.mxu0 %vm1137_vm1, %v2399_v52  ;;  %3635 = vmatmul.msk.f32.gmra.mxu1 %vm1137_vm1, %v2464_v5 }
 0x46d   : > { %v2532_v59 = vpop.f32.mrf.mxu2  ;;  %v2597_v2 = vpop.f32.mrf.mxu3 }
 0x46e   : > { %3652 = vmatmul.msk.f32.gmra.mxu2 %vm1137_vm1, %v2532_v59  ;;  %v2476_v12 = vpop.f32.mrf.mxu1 }
 0x470   : > { %3668 = vmatmul.msk.f32.gmra.mxu3 %vm1137_vm1, %v2597_v2 }
 0x471   : > { %3620 = vmatmul.msk.f32.gmra.mxu0 %vm1137_vm1, %v2402_v49  ;;  %3636 = vmatmul.msk.f32.gmra.mxu1 %vm1137_vm1, %v2467_v25 }
 0x475   : > { %v2535_v31 = vpop.f32.mrf.mxu2  ;;  %v2600_v35 = vpop.f32.mrf.mxu3 }
 0x476   : > { %3653 = vmatmul.msk.f32.gmra.mxu2 %vm1137_vm1, %v2535_v31  ;;  %v2408_v26 = vpop.f32.mrf.mxu0 }
 0x478   : > { %3669 = vmatmul.msk.f32.gmra.mxu3 %vm1137_vm1, %v2600_v35 }
 0x479   : > { %3621 = vmatmul.msk.f32.gmra.mxu0 %vm1137_vm1, %v2405_v47  ;;  %3637 = vmatmul.msk.f32.gmra.mxu1 %vm1137_vm1, %v2470_v13 }
 0x47d   : > { %v2538_v21 = vpop.f32.mrf.mxu2  ;;  %v2603_v43 = vpop.f32.mrf.mxu3 }
 0x47e   : > { %3654 = vmatmul.msk.f32.gmra.mxu2 %vm1137_vm1, %v2538_v21  ;;  %v2411_v27 = vpop.f32.mrf.mxu0 }
 0x480   : > { %3670 = vmatmul.msk.f32.gmra.mxu3 %vm1137_vm1, %v2603_v43 }
 0x481   : > { %3622 = vmatmul.msk.f32.gmra.mxu0 %vm1137_vm1, %v2408_v26  ;;  %3638 = vmatmul.msk.f32.gmra.mxu1 %vm1137_vm1, %v2473_v55 }
 0x485   : > { %v2541_v63 = vpop.f32.mrf.mxu2  ;;  %v2606_v1 = vpop.f32.mrf.mxu3 }
 0x486   : > { %3655 = vmatmul.msk.f32.gmra.mxu2 %vm1137_vm1, %v2541_v63  ;;  %v2414_v7 = vpop.f32.mrf.mxu0 }
 0x488   : > { %3671 = vmatmul.msk.f32.gmra.mxu3 %vm1137_vm1, %v2606_v1 }
 0x489   : > { %3623 = vmatmul.msk.f32.gmra.mxu0 %vm1137_vm1, %v2411_v27  ;;  %3639 = vmatmul.msk.f32.gmra.mxu1 %vm1137_vm1, %v2476_v12 }
 0x48d   : > { %v2544_v4 = vpop.f32.mrf.mxu2  ;;  %v2609_v51 = vpop.f32.mrf.mxu3 }
 0x48e   : > { %3656 = vmatmul.msk.f32.gmra.mxu2 %vm1137_vm1, %v2544_v4  ;;  %v2479_v11 = vpop.f32.mrf.mxu1 }
 0x490   : > { %3672 = vmatmul.msk.f32.gmra.mxu3 %vm1137_vm1, %v2609_v51 }
 0x491   : > { %3624 = vmatmul.msk.f32.gmra.mxu0 %vm1137_vm1, %v2414_v7  ;;  %3640 = vmatmul.msk.f32.gmra.mxu1 %vm1137_vm1, %v2479_v11 }
 0x495   : > { %v2547_v44 = vpop.f32.mrf.mxu2  ;;  %v2417_v16 = vpop.f32.mrf.mxu0 }
 0x496   : > { %3657 = vmatmul.msk.f32.gmra.mxu2 %vm1137_vm1, %v2547_v44  ;;  %v2482_v62 = vpop.f32.mrf.mxu1  ;;  %v2612_v3 = vpop.f32.mrf.mxu3 }
 0x498   : > { %3673 = vmatmul.msk.f32.gmra.mxu3 %vm1137_vm1, %v2612_v3 }
 0x499   : > { %3625 = vmatmul.msk.f32.gmra.mxu0 %vm1137_vm1, %v2417_v16  ;;  %3641 = vmatmul.msk.f32.gmra.mxu1 %vm1137_vm1, %v2482_v62 }
 0x49d   : > { %v2550_v54 = vpop.f32.mrf.mxu2 }
 0x49e   : > { %3658 = vmatmul.msk.f32.gmra.mxu2 %vm1137_vm1, %v2550_v54  ;;  %v2420_v45 = vpop.f32.mrf.mxu0  ;;  %v2485_v28 = vpop.f32.mrf.mxu1 }
 0x4a1   : > { %3626 = vmatmul.msk.f32.gmra.mxu0 %vm1137_vm1, %v2420_v45  ;;  %3642 = vmatmul.msk.f32.gmra.mxu1 %vm1137_vm1, %v2485_v28 }
 0x4a3   : > { %v2615_v61 = vpop.f32.mrf.mxu3 }
 0x4a4   : > { %3674 = vmatmul.msk.f32.gmra.mxu3 %vm1137_vm1, %v2615_v61 }
 0x4a5   : > { %v2917_v56 = vpop.f32.mrf.mxu2 }
 0x4a6   : > { %v2691_v60 = vpop.f32.mrf.mxu0  ;;  %v2804_v33 = vpop.f32.mrf.mxu1  ;;  %v3081_v50 = vsel %vm292_vm0, %v2917_v56, 0.0 }
 0x4a7   : > { %v3078_v46 = vsel %vm292_vm0, %v2691_v60, 0.0  ;;  %v3079_v37 = vsel %vm292_vm0, %v2804_v33, 0.0 }
 0x4a8   : > { %v3080_v38 = vadd.f32 %v3079_v37, %v3078_v46 }
 0x4aa   : > { %v3082_v58 = vadd.f32 %v3081_v50, %v3080_v38 }
 0x4ab   : > { %v3030_v10 = vpop.f32.mrf.mxu3 }
 0x4ac   : > { %v3083_v22 = vsel %vm292_vm0, %v3030_v10, 0.0 }
 0x4ad   : > { %v2920_v41 = vpop.f32.mrf.mxu2  ;;  %v3084_v8 = vadd.f32 %v3083_v22, %v3082_v58 }
 0x4ae   : > { %v2694_v0 = vpop.f32.mrf.mxu0  ;;  %v2807_v18 = vpop.f32.mrf.mxu1  ;;  %v3088_v36 = vsel %vm292_vm0, %v2920_v41, 0.0 }
 0x4af   : > { %v3194_v57 = vadd.f32 %v6013_v9, %v3084_v8  ;;  %v3085_v34 = vsel %vm292_vm0, %v2694_v0, 0.0  ;;  %v3086_v19 = vsel %vm292_vm0, %v2807_v18, 0.0 }
 0x4b0   : > { %v3087_v30 = vadd.f32 %v3086_v19, %v3085_v34 }
 0x4b1   : > { %3210 = vst.msk [vmem:[%s6021_s16] sm:$0xff] %vm292_vm0, %v3194_v57 }
 0x4b2   : > { %v3089_v24 = vadd.f32 %v3088_v36, %v3087_v30 }
 0x4b3   : > { %v3033_v39 = vpop.f32.mrf.mxu3 }
 0x4b4   : > { %v3090_v23 = vsel %vm292_vm0, %v3033_v39, 0.0 }
 0x4b5   : > { %v2923_v15 = vpop.f32.mrf.mxu2  ;;  %v3091_v6 = vadd.f32 %v3090_v23, %v3089_v24 }
 0x4b6   : > { %v2697_v40 = vpop.f32.mrf.mxu0  ;;  %v2810_v29 = vpop.f32.mrf.mxu1  ;;  %v3095_v14 = vsel %vm292_vm0, %v2923_v15, 0.0 }
 0x4b7   : > { %v3195_v32 = vadd.f32 %v6013_v9, %v3091_v6  ;;  %v3092_v20 = vsel %vm292_vm0, %v2697_v40, 0.0  ;;  %v3093_v17 = vsel %vm292_vm0, %v2810_v29, 0.0 }
 0x4b8   : > { %v3094_v52 = vadd.f32 %v3093_v17, %v3092_v20 }
 0x4b9   : > { %3211 = vst.msk [vmem:[%s6021_s16 + $0x8] sm:$0xff] %vm292_vm0, %v3195_v32 }
 0x4ba   : > { %v3096_v5 = vadd.f32 %v3095_v14, %v3094_v52 }
 0x4bb   : > { %v3036_v42 = vpop.f32.mrf.mxu3 }
 0x4bc   : > { %v3097_v48 = vsel %vm292_vm0, %v3036_v42, 0.0 }
 0x4bd   : > { %v2926_v53 = vpop.f32.mrf.mxu2  ;;  %v3098_v49 = vadd.f32 %v3097_v48, %v3096_v5 }
 0x4be   : > { %v2700_v25 = vpop.f32.mrf.mxu0  ;;  %v2813_v59 = vpop.f32.mrf.mxu1  ;;  %v3102_v35 = vsel %vm292_vm0, %v2926_v53, 0.0 }
 0x4bf   : > { %v3196_v2 = vadd.f32 %v6013_v9, %v3098_v49  ;;  %v3099_v47 = vsel %vm292_vm0, %v2700_v25, 0.0  ;;  %v3100_v13 = vsel %vm292_vm0, %v2813_v59, 0.0 }
 0x4c0   : > { %v3101_v31 = vadd.f32 %v3100_v13, %v3099_v47 }
 0x4c1   : > { %3212 = vst.msk [vmem:[%s6021_s16 + $0x10] sm:$0xff] %vm292_vm0, %v3196_v2 }
 0x4c2   : > { %v3103_v55 = vadd.f32 %v3102_v35, %v3101_v31 }
 0x4c3   : > { %v3039_v26 = vpop.f32.mrf.mxu3 }
 0x4c4   : > { %v3104_v21 = vsel %vm292_vm0, %v3039_v26, 0.0 }
 0x4c5   : > { %v2929_v43 = vpop.f32.mrf.mxu2  ;;  %v3105_v27 = vadd.f32 %v3104_v21, %v3103_v55 }
 0x4c6   : > { %v2703_v63 = vpop.f32.mrf.mxu0  ;;  %v2816_v12 = vpop.f32.mrf.mxu1  ;;  %v3109_v11 = vsel %vm292_vm0, %v2929_v43, 0.0 }
 0x4c7   : > { %v3197_v1 = vadd.f32 %v6013_v9, %v3105_v27  ;;  %v3106_v7 = vsel %vm292_vm0, %v2703_v63, 0.0  ;;  %v3107_v4 = vsel %vm292_vm0, %v2816_v12, 0.0 }
 0x4c8   : > { %v3108_v51 = vadd.f32 %v3107_v4, %v3106_v7 }
 0x4c9   : > { %3213 = vst.msk [vmem:[%s6021_s16 + $0x18] sm:$0xff] %vm292_vm0, %v3197_v1 }
 0x4ca   : > { %v3110_v16 = vadd.f32 %v3109_v11, %v3108_v51 }
 0x4cb   : > { %v3042_v44 = vpop.f32.mrf.mxu3 }
 0x4cc   : > { %v3111_v62 = vsel %vm292_vm0, %v3042_v44, 0.0 }
 0x4cd   : > { %v3112_v3 = vadd.f32 %v3111_v62, %v3110_v16  ;;  %v2932_v28 = vpop.f32.mrf.mxu2 }
 0x4ce   : > { %v2706_v54 = vpop.f32.mrf.mxu0  ;;  %v2819_v45 = vpop.f32.mrf.mxu1  ;;  %v3116_v46 = vsel %vm292_vm0, %v2932_v28, 0.0 }
 0x4cf   : > { %v3198_v61 = vadd.f32 %v6013_v9, %v3112_v3  ;;  %v3113_v56 = vsel %vm292_vm0, %v2706_v54, 0.0  ;;  %v3114_v60 = vsel %vm292_vm0, %v2819_v45, 0.0 }
 0x4d0   : > { %v3115_v33 = vadd.f32 %v3114_v60, %v3113_v56 }
 0x4d1   : > { %3214 = vst.msk [vmem:[%s6021_s16 + $0x20] sm:$0xff] %vm292_vm0, %v3198_v61 }
 0x4d2   : > { %v3117_v38 = vadd.f32 %v3116_v46, %v3115_v33 }
 0x4d3   : > { %v3045_v37 = vpop.f32.mrf.mxu3 }
 0x4d4   : > { %v3118_v50 = vsel %vm292_vm0, %v3045_v37, 0.0 }
 0x4d5   : > { %v3119_v10 = vadd.f32 %v3118_v50, %v3117_v38 }
 0x4d6   : > { %v2709_v58 = vpop.f32.mrf.mxu0  ;;  %v2822_v22 = vpop.f32.mrf.mxu1 }
 0x4d7   : > { %v3199_v41 = vadd.f32 %v6013_v9, %v3119_v10  ;;  %v3120_v8 = vsel %vm292_vm0, %v2709_v58, 0.0  ;;  %v3121_v0 = vsel %vm292_vm0, %v2822_v22, 0.0 }
 0x4d8   : > { %v3122_v18 = vadd.f32 %v3121_v0, %v3120_v8  ;;  %v2935_v57 = vpop.f32.mrf.mxu2 }
 0x4d9   : > { %3215 = vst.msk [vmem:[%s6021_s16 + $0x28] sm:$0xff] %vm292_vm0, %v3199_v41  ;;  %v3123_v34 = vsel %vm292_vm0, %v2935_v57, 0.0 }
 0x4da   : > { %v3124_v19 = vadd.f32 %v3123_v34, %v3122_v18 }
 0x4db   : > { %v3048_v30 = vpop.f32.mrf.mxu3 }
 0x4dc   : > { %v3125_v36 = vsel %vm292_vm0, %v3048_v30, 0.0 }
 0x4dd   : > { %v3126_v39 = vadd.f32 %v3125_v36, %v3124_v19 }
 0x4de   : > { %v2712_v24 = vpop.f32.mrf.mxu0  ;;  %v2825_v23 = vpop.f32.mrf.mxu1 }
 0x4df   : > { %v3200_v15 = vadd.f32 %v6013_v9, %v3126_v39  ;;  %v3127_v6 = vsel %vm292_vm0, %v2712_v24, 0.0  ;;  %v3128_v40 = vsel %vm292_vm0, %v2825_v23, 0.0 }
 0x4e0   : > { %v3129_v29 = vadd.f32 %v3128_v40, %v3127_v6  ;;  %v2938_v32 = vpop.f32.mrf.mxu2 }
 0x4e1   : > { %3216 = vst.msk [vmem:[%s6021_s16 + $0x30] sm:$0xff] %vm292_vm0, %v3200_v15  ;;  %v3130_v20 = vsel %vm292_vm0, %v2938_v32, 0.0 }
 0x4e2   : > { %v3131_v17 = vadd.f32 %v3130_v20, %v3129_v29 }
 0x4e3   : > { %v3051_v52 = vpop.f32.mrf.mxu3 }
 0x4e4   : > { %v3132_v14 = vsel %vm292_vm0, %v3051_v52, 0.0 }
 0x4e5   : > { %v3133_v42 = vadd.f32 %v3132_v14, %v3131_v17 }
 0x4e6   : > { %v2715_v5 = vpop.f32.mrf.mxu0  ;;  %v2828_v48 = vpop.f32.mrf.mxu1 }
 0x4e7   : > { %v3201_v53 = vadd.f32 %v6013_v9, %v3133_v42  ;;  %v3134_v49 = vsel %vm292_vm0, %v2715_v5, 0.0  ;;  %v3135_v25 = vsel %vm292_vm0, %v2828_v48, 0.0 }
 0x4e8   : > { %v3136_v59 = vadd.f32 %v3135_v25, %v3134_v49  ;;  %v2941_v2 = vpop.f32.mrf.mxu2 }
 0x4e9   : > { %3217 = vst.msk [vmem:[%s6021_s16 + $0x38] sm:$0xff] %vm292_vm0, %v3201_v53  ;;  %v3137_v47 = vsel %vm292_vm0, %v2941_v2, 0.0 }
 0x4ea   : > { %v3138_v13 = vadd.f32 %v3137_v47, %v3136_v59 }
 0x4eb   : > { %v3054_v31 = vpop.f32.mrf.mxu3 }
 0x4ec   : > { %v3139_v35 = vsel %vm292_vm0, %v3054_v31, 0.0 }
 0x4ed   : > { %v3140_v26 = vadd.f32 %v3139_v35, %v3138_v13 }
 0x4ee   : > { %v2718_v55 = vpop.f32.mrf.mxu0  ;;  %v2831_v21 = vpop.f32.mrf.mxu1 }
 0x4ef   : > { %v3202_v43 = vadd.f32 %v6013_v9, %v3140_v26  ;;  %v3141_v27 = vsel %vm292_vm0, %v2718_v55, 0.0  ;;  %v3142_v63 = vsel %vm292_vm0, %v2831_v21, 0.0 }
 0x4f0   : > { %v3143_v12 = vadd.f32 %v3142_v63, %v3141_v27 }
 0x4f1   : > { %v2944_v1 = vpop.f32.mrf.mxu2  ;;  %3218 = vst.msk [vmem:[%s6021_s16 + $0x40] sm:$0xff] %vm292_vm0, %v3202_v43 }
 0x4f2   : > { %v3144_v7 = vsel %vm292_vm0, %v2944_v1, 0.0 }
 0x4f3   : > { %v3145_v4 = vadd.f32 %v3144_v7, %v3143_v12  ;;  %v3057_v51 = vpop.f32.mrf.mxu3 }
 0x4f4   : > { %v3146_v11 = vsel %vm292_vm0, %v3057_v51, 0.0 }
 0x4f5   : > { %v3147_v44 = vadd.f32 %v3146_v11, %v3145_v4 }
 0x4f6   : > { %v2721_v16 = vpop.f32.mrf.mxu0  ;;  %v2834_v62 = vpop.f32.mrf.mxu1 }
 0x4f7   : > { %v3203_v3 = vadd.f32 %v6013_v9, %v3147_v44  ;;  %v3148_v54 = vsel %vm292_vm0, %v2721_v16, 0.0  ;;  %v3149_v45 = vsel %vm292_vm0, %v2834_v62, 0.0 }
 0x4f8   : > { %v3150_v28 = vadd.f32 %v3149_v45, %v3148_v54 }
 0x4f9   : > { %v2947_v61 = vpop.f32.mrf.mxu2  ;;  %3219 = vst.msk [vmem:[%s6021_s16 + $0x48] sm:$0xff] %vm292_vm0, %v3203_v3 }
 0x4fa   : > { %v3151_v56 = vsel %vm292_vm0, %v2947_v61, 0.0 }
 0x4fb   : > { %v3152_v60 = vadd.f32 %v3151_v56, %v3150_v28  ;;  %v3060_v33 = vpop.f32.mrf.mxu3 }
 0x4fc   : > { %v3153_v46 = vsel %vm292_vm0, %v3060_v33, 0.0 }
 0x4fd   : > { %v3154_v37 = vadd.f32 %v3153_v46, %v3152_v60 }
 0x4fe   : > { %v2724_v38 = vpop.f32.mrf.mxu0  ;;  %v2837_v50 = vpop.f32.mrf.mxu1 }
 0x4ff   : > { %v3204_v10 = vadd.f32 %v6013_v9, %v3154_v37  ;;  %v3155_v58 = vsel %vm292_vm0, %v2724_v38, 0.0  ;;  %v3156_v22 = vsel %vm292_vm0, %v2837_v50, 0.0 }
 0x500   : > { %v3157_v41 = vadd.f32 %v3156_v22, %v3155_v58 }
 0x501   : > { %v2950_v8 = vpop.f32.mrf.mxu2  ;;  %3220 = vst.msk [vmem:[%s6021_s16 + $0x50] sm:$0xff] %vm292_vm0, %v3204_v10 }
 0x502   : > { %v3158_v0 = vsel %vm292_vm0, %v2950_v8, 0.0 }
 0x503   : > { %v3159_v18 = vadd.f32 %v3158_v0, %v3157_v41  ;;  %v3063_v57 = vpop.f32.mrf.mxu3 }
 0x504   : > { %v3160_v34 = vsel %vm292_vm0, %v3063_v57, 0.0 }
 0x505   : > { %v3161_v19 = vadd.f32 %v3160_v34, %v3159_v18 }
 0x506   : > { %v2727_v30 = vpop.f32.mrf.mxu0  ;;  %v2840_v36 = vpop.f32.mrf.mxu1 }
 0x507   : > { %v3205_v39 = vadd.f32 %v6013_v9, %v3161_v19  ;;  %v3162_v24 = vsel %vm292_vm0, %v2727_v30, 0.0  ;;  %v3163_v23 = vsel %vm292_vm0, %v2840_v36, 0.0 }
 0x508   : > { %v3164_v15 = vadd.f32 %v3163_v23, %v3162_v24 }
 0x509   : > { %v2953_v6 = vpop.f32.mrf.mxu2  ;;  %3221 = vst.msk [vmem:[%s6021_s16 + $0x58] sm:$0xff] %vm292_vm0, %v3205_v39 }
 0x50a   : > { %v3165_v40 = vsel %vm292_vm0, %v2953_v6, 0.0 }
 0x50b   : > { %v3166_v29 = vadd.f32 %v3165_v40, %v3164_v15  ;;  %v3066_v32 = vpop.f32.mrf.mxu3 }
 0x50c   : > { %v3167_v20 = vsel %vm292_vm0, %v3066_v32, 0.0 }
 0x50d   : > { %v3168_v17 = vadd.f32 %v3167_v20, %v3166_v29 }
 0x50e   : > { %v2730_v52 = vpop.f32.mrf.mxu0  ;;  %v2843_v14 = vpop.f32.mrf.mxu1 }
 0x50f   : > { %v3206_v42 = vadd.f32 %v6013_v9, %v3168_v17  ;;  %v3169_v5 = vsel %vm292_vm0, %v2730_v52, 0.0  ;;  %v3170_v48 = vsel %vm292_vm0, %v2843_v14, 0.0 }
 0x510   : > { %v3171_v53 = vadd.f32 %v3170_v48, %v3169_v5 }
 0x511   : > { %v2956_v49 = vpop.f32.mrf.mxu2  ;;  %3222 = vst.msk [vmem:[%s6021_s16 + $0x60] sm:$0xff] %vm292_vm0, %v3206_v42 }
 0x512   : > { %v3172_v25 = vsel %vm292_vm0, %v2956_v49, 0.0 }
 0x513   : > { %v3173_v59 = vadd.f32 %v3172_v25, %v3171_v53  ;;  %v3069_v2 = vpop.f32.mrf.mxu3 }
 0x514   : > { %v3174_v47 = vsel %vm292_vm0, %v3069_v2, 0.0 }
 0x515   : > { %v3175_v13 = vadd.f32 %v3174_v47, %v3173_v59 }
 0x516   : > { %v2733_v31 = vpop.f32.mrf.mxu0  ;;  %v2846_v35 = vpop.f32.mrf.mxu1 }
 0x517   : > { %v3207_v26 = vadd.f32 %v6013_v9, %v3175_v13  ;;  %v3176_v55 = vsel %vm292_vm0, %v2733_v31, 0.0  ;;  %v3177_v21 = vsel %vm292_vm0, %v2846_v35, 0.0 }
 0x518   : > { %v3178_v43 = vadd.f32 %v3177_v21, %v3176_v55 }
 0x519   : > { %v2959_v27 = vpop.f32.mrf.mxu2  ;;  %3223 = vst.msk [vmem:[%s6021_s16 + $0x68] sm:$0xff] %vm292_vm0, %v3207_v26 }
 0x51a   : > { %v3179_v63 = vsel %vm292_vm0, %v2959_v27, 0.0 }
 0x51b   : > { %v3180_v12 = vadd.f32 %v3179_v63, %v3178_v43  ;;  %v3072_v1 = vpop.f32.mrf.mxu3 }
 0x51c   : > { %v3181_v7 = vsel %vm292_vm0, %v3072_v1, 0.0 }
 0x51d   : > { %v3182_v4 = vadd.f32 %v3181_v7, %v3180_v12 }
 0x51e   : > { %v2736_v51 = vpop.f32.mrf.mxu0  ;;  %v2849_v11 = vpop.f32.mrf.mxu1 }
 0x51f   : > { %v3208_v44 = vadd.f32 %v6013_v9, %v3182_v4  ;;  %v3183_v16 = vsel %vm292_vm0, %v2736_v51, 0.0  ;;  %v3184_v62 = vsel %vm292_vm0, %v2849_v11, 0.0 }
 0x520   : > { %v3185_v54 = vadd.f32 %v3184_v62, %v3183_v16 }
 0x521   : > { %3224 = vst.msk [vmem:[%s6021_s16 + $0x70] sm:$0xff] %vm292_vm0, %v3208_v44  ;;  %v2962_v3 = vpop.f32.mrf.mxu2 }
 0x522   : > { %v3186_v45 = vsel %vm292_vm0, %v2962_v3, 0.0 }
 0x523   : > { %v3187_v28 = vadd.f32 %v3186_v45, %v3185_v54 }
 0x527   : > { %v3075_v61 = vpop.f32.mrf.mxu3 }
 0x528   : > { %v3188_v56 = vsel %vm292_vm0, %v3075_v61, 0.0 }
 0x529   : > { %v3189_v60 = vadd.f32 %v3188_v56, %v3187_v28 }
 0x52b   : > { %v3209_v33 = vadd.f32 %v6013_v9, %v3189_v60 }
 0x52d   : > { %3225 = vst.msk [vmem:[%s6021_s16 + $0x78] sm:$0xff] %vm292_vm0, %v3209_v33 }
 0x52e PF: > { %s15_s18 = sadd.s32 1, %s3948_s18  }
 0x52f   : > { %p12_p4 = scmp.ge.s32.totalorder %s15_s18, 4  }
 0x531   :  { %14 = sbr.rel (!%p12_p4) target bundleno = 1 (0x1), region = 70 }

</bundles_post_ra>
